<compile_context>
chip_gen: v6e
topology: v6e:2x2x1
jax: 0.10.0
libtpu: 0.0.40
codegen_flags: <defaults>
</compile_context>

<pallas_src>
import functools

import numpy as np

import jax
import jax.numpy as jnp
from jax.experimental import pallas as pl
from jax.experimental.pallas import tpu as pltpu


_LANE = 128
_FAST_PATH_BYTES = 1 << 20         # below this, a plain XLA multiply wins over Pallas launch cost
_SPLIT_FOR_CORES_BYTES = 8 << 20   # only split a single-block grid (v7x 2 TCs) when halves stay >= ~4 MiB


def _ceil_to(n, m):
    return ((n + m - 1) // m) * m


def _target_block_bytes():
    """~4 MiB of x per block; a bit larger on 128 MiB-VMEM chips (v5e/v6e)."""
    vmem = 64 << 20  # conservative default (v7x physical VMEM)
    try:
        vmem = int(pltpu.get_tpu_info().vmem_capacity_bytes)
    except Exception:
        pass
    return (6 << 20) if vmem >= (100 << 20) else (4 << 20)


def _vmem_limit_bytes(double_buffered_footprint):
    # ~1.25x the computed footprint plus a small margin; never over-request.
    limit = int(double_buffered_footprint * 1.25) + (2 << 20)
    return int(min(max(limit, 4 << 20), 100 << 20))


def _mc_dropout_kernel(x_ref, m_ref, o_ref, *, scale):
    # x_ref: (TB, TS, 128) or (TB, TF)   input tile
    # m_ref: (1,  TS, 128) or (1,  TF)   bf16 keep mask tile {0, 1}
    # o_ref: same shape/dtype as x_ref   output tile
    keep = m_ref[...].astype(jnp.float32) * scale        # {0, 1/(1-p)}, small tile
    o_ref[...] = (x_ref[...].astype(jnp.float32) * keep).astype(o_ref.dtype)


def _pick_tiles_3d(B, S, itemsize, target_bytes):
    """Pick (TB, TS) for the (B, S, 128) view so the x block is ~target_bytes."""
    row_bytes = _LANE * itemsize
    budget_rows = max(8, target_bytes // row_bytes)
    if S <= budget_rows:
        TS = S                                   # full feature extent (legal even if S % 8 != 0)
        TB = max(1, min(B, budget_rows // S))    # no divisor requirement; tail block is masked
    else:
        TB = 1
        TS = max(8, (budget_rows // 8) * 8)
        # prefer a TS that divides S (avoids a padded tail block), without
        # shrinking below half the budget to find one
        for cand in range(TS, max(8, TS // 2) - 1, -8):
            if S % cand == 0:
                TS = cand
                break
    return TB, TS


def _forward_3d(x2, keep_flat, scale, target_bytes):
    """Lane-dense path for F % 128 == 0: view x as (B, S, 128)."""
    B, F = x2.shape
    itemsize = jnp.dtype(x2.dtype).itemsize
    S = F // _LANE
    x3 = x2.reshape(B, S, _LANE)
    m3 = keep_flat.reshape(1, S, _LANE)

    TB, TS = _pick_tiles_3d(B, S, itemsize, target_bytes)
    n_s = pl.cdiv(S, TS)
    n_b = pl.cdiv(B, TB)

    # Megacore (v7x has 2 TCs): if everything landed in one block but the tensor
    # is large enough that halved steps are still cheap to pipeline, split so both
    # cores get work. Single-TC chips only see this for >= 8 MiB tensors, where
    # the extra grid step is noise.
    total_bytes = B * F * itemsize
    if n_s * n_b == 1 and total_bytes >= _SPLIT_FOR_CORES_BYTES:
        if S >= 16 and S % 16 == 0:
            TS = S // 2            # equal halves, each a multiple of 8; per-core resident mask
        elif B >= 2:
            TB = (B + 1) // 2      # near-equal batch halves (tail block masked)
        elif S >= 16:
            TS = max(8, (((S + 1) // 2 + 7) // 8) * 8)
        n_s = pl.cdiv(S, TS)
        n_b = pl.cdiv(B, TB)

    x_blk = TB * TS * _LANE * itemsize
    m_blk = TS * _LANE * 2  # bf16 mask
    vmem_limit = _vmem_limit_bytes(2 * (2 * x_blk + m_blk))

    kernel = functools.partial(_mc_dropout_kernel, scale=scale)
    out3 = pl.pallas_call(
        kernel,
        out_shape=jax.ShapeDtypeStruct((B, S, _LANE), x2.dtype),
        grid_spec=pltpu.PrefetchScalarGridSpec(
            num_scalar_prefetch=0,
            # batch is the innermost grid axis so the mask block index stays
            # constant across consecutive steps and is not re-fetched from HBM.
            grid=(n_s, n_b),
            in_specs=[
                pl.BlockSpec((TB, TS, _LANE), lambda s, b: (b, s, 0)),
                pl.BlockSpec((1, TS, _LANE), lambda s, b: (0, s, 0)),
            ],
            out_specs=pl.BlockSpec((TB, TS, _LANE), lambda s, b: (b, s, 0)),
        ),
        compiler_params=pltpu.CompilerParams(
            dimension_semantics=("parallel", "parallel"),
            vmem_limit_bytes=vmem_limit,
        ),
    )(x3, m3)
    return out3.reshape(B, F)


def _forward_2d(x2, keep_flat, scale, target_bytes):
    """Masked-tail path for F % 128 != 0: tile the raw (B, F) view (no pad/slice copies)."""
    B, F = x2.shape
    itemsize = jnp.dtype(x2.dtype).itemsize
    m2 = keep_flat.reshape(1, F)

    if B <= 8:
        TB = B                                                   # equals full dim -> legal
    else:
        rows = max(8, (target_bytes // max(1, F * itemsize)) // 8 * 8)
        TB = min(_ceil_to(B, 8), rows)                           # multiple of 8 -> legal, tail masked
    if TB * F * itemsize <= target_bytes:
        TF = F                                                   # full feature extent -> legal
    else:
        TF = max(_LANE, (target_bytes // (TB * itemsize)) // _LANE * _LANE)

    n_f = pl.cdiv(F, TF)
    n_b = pl.cdiv(B, TB)

    x_blk = TB * TF * itemsize
    m_blk = TF * 2  # bf16 mask
    vmem_limit = _vmem_limit_bytes(2 * (2 * x_blk + m_blk))

    kernel = functools.partial(_mc_dropout_kernel, scale=scale)
    return pl.pallas_call(
        kernel,
        out_shape=jax.ShapeDtypeStruct((B, F), x2.dtype),
        grid_spec=pltpu.PrefetchScalarGridSpec(
            num_scalar_prefetch=0,
            grid=(n_f, n_b),
            in_specs=[
                pl.BlockSpec((TB, TF), lambda f, b: (b, f)),
                pl.BlockSpec((1, TF), lambda f, b: (0, f)),
            ],
            out_specs=pl.BlockSpec((TB, TF), lambda f, b: (b, f)),
        ),
        compiler_params=pltpu.CompilerParams(
            dimension_semantics=("parallel", "parallel"),
            vmem_limit_bytes=vmem_limit,
        ),
    )(x2, m2)


def consistent_mc_dropout_forward(x, keep_flat, scale):
    """x: (B, *feat); keep_flat: (prod(feat),) bf16 keep mask {0, 1}; scale: 1/(1-p)."""
    orig_shape = x.shape
    B = int(x.shape[0])
    F = int(np.prod(x.shape[1:], dtype=np.int64)) if x.ndim > 1 else 1
    itemsize = jnp.dtype(x.dtype).itemsize
    total_bytes = B * F * itemsize

    x2 = x.reshape(B, F)

    if total_bytes < _FAST_PATH_BYTES:
        # Net-sized activations: Pallas launch + pipeline overhead dominates; let XLA
        # do (and potentially fuse) the multiply instead.
        keep = keep_flat.astype(jnp.float32) * scale
        out2 = (x2.astype(jnp.float32) * keep[None, :]).astype(x.dtype)
        return out2.reshape(orig_shape)

    target = _target_block_bytes()
    if F % _LANE == 0:
        out2 = _forward_3d(x2, keep_flat, scale, target)
    else:
        out2 = _forward_2d(x2, keep_flat, scale, target)
    return out2.reshape(orig_shape)


class ConsistentMCDropoutMask:
    """JAX/Pallas port of _ConsistentMCDropoutMask.

    Bernoulli mask creation and the mask_dict cache are host-side glue (like
    torch's bernoulli_); the masked_fill + 1/(1-p) rescale hot path runs in the
    Pallas kernel as a single broadcast multiply by a cached bf16 {0, 1} keep
    mask and a compile-time 1/(1-p) scale.
    """

    def __init__(self, p=0.8):
        if p < 0 or p > 1:
            raise ValueError(
                'dropout probability has to be between 0 and 1, but got {}'.format(p))
        self.p = float(p)
        self.mask_dict = {}     # m -> bool drop mask (True = drop), shape = x.shape[1:]
        self._keep_cache = {}   # (m, feat_shape) -> flat bf16 keep mask {0, 1}

    def reset_mask(self):
        self.mask_dict = {}
        self._keep_cache = {}

    def _create_mask(self, x, num, key):
        mask_shape = x.shape[1:]
        # torch: bernoulli_(p) on a bool tensor -> True (drop) with probability p
        mask = jax.random.bernoulli(key, self.p, shape=mask_shape)
        self.mask_dict[num] = mask
        return mask

    def _keep_flat(self, m, feat_shape):
        cache_key = (m, tuple(feat_shape))
        if cache_key not in self._keep_cache:
            drop = self.mask_dict[m]
            if tuple(drop.shape) != tuple(feat_shape):
                raise ValueError(
                    'mask id {} was created for feature shape {} but got {}'.format(
                        m, tuple(drop.shape), tuple(feat_shape)))
            keep = jnp.where(drop, 0.0, 1.0).astype(jnp.bfloat16).reshape(-1)
            self._keep_cache[cache_key] = keep
        return self._keep_cache[cache_key]

    def __call__(self, x, m, key=None):
        if self.p == 0.0:
            return x
        if m not in self.mask_dict:
            if key is None:
                key = jax.random.PRNGKey(m)
            self._create_mask(x, m, key)
        if self.p == 1.0:
            # torch's masked_fill / (1 - p) would hit 0/0 here; standard dropout
            # semantics for p == 1 are "everything dropped".
            return jnp.zeros_like(x)
        scale = 1.0 / (1.0 - self.p)
        keep_flat = self._keep_flat(m, x.shape[1:])
        return consistent_mc_dropout_forward(x, keep_flat, scale)


if __name__ == "__main__":
    root = jax.random.PRNGKey(0)
    k1, k2, k3, k4, k5 = jax.random.split(root, 5)

    # --- Net-sized conv feature map (fast XLA path; launch overhead dominated) ---
    B, C, H, W = 2, 4, 16, 16
    x = jax.random.normal(k1, (B, C, H, W), dtype=jnp.float32)
    mod = ConsistentMCDropoutMask(p=0.8)
    out = jax.block_until_ready(mod(x, m=0, key=k2))
    assert out.shape == x.shape and out.dtype == x.dtype
    mask = mod.mask_dict[0]
    ref = jnp.where(mask[None], 0.0, x) / (1.0 - mod.p)
    np.testing.assert_allclose(np.asarray(out), np.asarray(ref), rtol=1e-5, atol=1e-6)

    # Consistency: the same mask id reuses the cached mask / multiplier.
    out_again = jax.block_until_ready(mod(x, m=0))
    np.testing.assert_allclose(np.asarray(out_again), np.asarray(out), rtol=0, atol=0)

    # Flat activations like Net's second dropout: (B, 256) with p=0.5 (fast path).
    x_fc = jax.random.normal(k3, (2, 256), dtype=jnp.float32)
    mod_fc = ConsistentMCDropoutMask(p=0.5)
    out_fc = jax.block_until_ready(mod_fc(x_fc, m=1))
    ref_fc = jnp.where(mod_fc.mask_dict[1][None], 0.0, x_fc) / (1.0 - mod_fc.p)
    np.testing.assert_allclose(np.asarray(out_fc), np.asarray(ref_fc), rtol=1e-5, atol=1e-6)

    # --- Larger batched call: Pallas lane-dense (B, S, 128) path (F = 4608 = 36*128) ---
    x_big = jax.random.normal(k4, (128, 32, 12, 12), dtype=jnp.float32)   # ~2.25 MiB
    mod_big = ConsistentMCDropoutMask(p=0.8)
    out_big = jax.block_until_ready(mod_big(x_big, m=0, key=k2))
    ref_big = jnp.where(mod_big.mask_dict[0][None], 0.0, x_big) / (1.0 - mod_big.p)
    np.testing.assert_allclose(np.asarray(out_big), np.asarray(ref_big), rtol=1e-5, atol=1e-6)

    # --- Non-128-multiple feature count: Pallas 2-D path, no pad/slice copies ---
    x_odd = jax.random.normal(k5, (96, 3, 34, 34), dtype=jnp.float32)     # F = 3468, ~1.27 MiB
    mod_odd = ConsistentMCDropoutMask(p=0.8)
    out_odd = jax.block_until_ready(mod_odd(x_odd, m=7))
    ref_odd = jnp.where(mod_odd.mask_dict[7][None], 0.0, x_odd) / (1.0 - mod_odd.p)
    np.testing.assert_allclose(np.asarray(out_odd), np.asarray(ref_odd), rtol=1e-5, atol=1e-6)

    # p == 0.0 is the identity (no kernel launch).
    ident = ConsistentMCDropoutMask(p=0.0)(x, m=3)
    np.testing.assert_allclose(np.asarray(ident), np.asarray(x), rtol=0, atol=0)

    print("KERNEL_OK")
</pallas_src>

<mosaic_0001>
module attributes {stable_mosaic.version = 11 : i64} {
  func.func @_mc_dropout_kernel(%arg0: i32, %arg1: i32, %arg2: memref<128x36x128xf32, #tpu.memory_space<vmem>>, %arg3: memref<1x36x128xbf16, #tpu.memory_space<vmem>>, %arg4: memref<128x36x128xf32, #tpu.memory_space<vmem>>) attributes {dimension_semantics = [#tpu.dimension_semantics<parallel>, #tpu.dimension_semantics<parallel>], iteration_bounds = array<i64: 1, 1>, scalar_prefetch = 0 : i64, scratch_operands = 0 : i64, tpu.core_type = #tpu.core_type<tc>, window_params = [{transform_indices = @transform_0, window_bounds = array<i64: 128, 36, 128>}, {transform_indices = @transform_1, window_bounds = array<i64: 1, 36, 128>}, {transform_indices = @transform_2, window_bounds = array<i64: 128, 36, 128>}]} {
    %c0 = arith.constant 0 : index
    %c0_0 = arith.constant 0 : index
    %c0_1 = arith.constant 0 : index
    %0 = vector.load %arg3[%c0, %c0_0, %c0_1] : memref<1x36x128xbf16, #tpu.memory_space<vmem>>, vector<1x36x128xbf16>
    %1 = arith.extf %0 : vector<1x36x128xbf16> to vector<1x36x128xf32>
    %cst = arith.constant 5.000000e+00 : f32
    %2 = vector.broadcast %cst : f32 to vector<1x36x128xf32>
    %3 = arith.mulf %1, %2 : vector<1x36x128xf32>
    %c0_2 = arith.constant 0 : index
    %c0_3 = arith.constant 0 : index
    %c0_4 = arith.constant 0 : index
    %4 = vector.load %arg2[%c0_2, %c0_3, %c0_4] : memref<128x36x128xf32, #tpu.memory_space<vmem>>, vector<128x36x128xf32>
    %5 = vector.broadcast %3 : vector<1x36x128xf32> to vector<128x36x128xf32>
    %6 = arith.mulf %4, %5 : vector<128x36x128xf32>
    %c0_5 = arith.constant 0 : index
    %c0_6 = arith.constant 0 : index
    %c0_7 = arith.constant 0 : index
    %7 = vector.load %arg4[%c0_5, %c0_6, %c0_7] : memref<128x36x128xf32, #tpu.memory_space<vmem>>, vector<128x36x128xf32>
    tpu.vector_store %arg4[%c0_5, %c0_6, %c0_7], %6 {strides = array<i32>} : memref<128x36x128xf32, #tpu.memory_space<vmem>>, vector<128x36x128xf32>,
    return
  }
  func.func @transform_0(%arg0: i32, %arg1: i32) -> (i32, i32, i32) {
    %c0_i32 = arith.constant 0 : i32
    %c0_i32_0 = arith.constant 0 : i32
    return %arg1, %arg0, %c0_i32 : i32, i32, i32
  }
  func.func @transform_1(%arg0: i32, %arg1: i32) -> (i32, i32, i32) {
    %c0_i32 = arith.constant 0 : i32
    %c0_i32_0 = arith.constant 0 : i32
    %c0_i32_1 = arith.constant 0 : i32
    return %c0_i32, %arg0, %c0_i32_0 : i32, i32, i32
  }
  func.func @transform_2(%arg0: i32, %arg1: i32) -> (i32, i32, i32) {
    %c0_i32 = arith.constant 0 : i32
    %c0_i32_0 = arith.constant 0 : i32
    return %arg1, %arg0, %c0_i32 : i32, i32, i32
  }
}

</mosaic_0001>

<bundles_post_ra>
// kernel: tpu_custom_call.1
= control target key start
LH: loop header
LB: loop body
LE: loop exit
PB: predicated region body
PF: predicated region fallthrough
CT: control target
= control target key end

     0   :  { %s6473_s0 = inlined_call_operand.vmem [shape: f32[128,36,128], index: 0, kind: input, shape index: {}]   ;;  %s6474_s1 = inlined_call_operand.vmem [shape: bf16[1,36,128], index: 1, kind: input, shape index: {}]   ;;  %s6475_s2 = inlined_call_operand.vmem [shape: f32[128,36,128], index: 2, kind: output, shape index: {}]  }
   0x1   :  { %v1951_v0 = vld [vmem:[%s6474_s1] sm:$0xff]   ;;  %v27_v2 = vld [vmem:[%s6473_s0 + $0x8] sm:$0xff]  ;;  %v28_v6 = vld [vmem:[%s6473_s0 + $0x10] sm:$0xff] }
   0x2   :  { %v26_v1 = vld [vmem:[%s6473_s0] sm:$0xff]  ;;  %v1952_v3 = vunpack.c.l.bf16 %v1951_v0  ;;  %v1953_v4 = vunpack.c.h.bf16 %v1951_v0  ;;  %v1958_v5 = vld [vmem:[%s6474_s1 + $0x8] sm:$0xff]   ;;  %v29_v7 = vld [vmem:[%s6473_s0 + $0x18] sm:$0xff] }
   0x3   :  { %v1956_v8 = vunpack.c.l.bf16 %v1958_v5  ;;  %v1957_v9 = vunpack.c.h.bf16 %v1958_v5  ;;  %v15_v10 = vld [vmem:[%s6474_s1 + $0x10] sm:$0x3]  ;;  %v30_v11 = vld [vmem:[%s6473_s0 + $0x20] sm:$0xf]  ;;  %v31_v12 = vld [vmem:[%s6473_s0 + $0x28] sm:$0xff] }
   0x4   :  { %v2001_v13 = vmul.f32 5.0, %v1952_v3  ;;  %v2003_v14 = vmul.f32 5.0, %v1953_v4  ;;  %v20_v15 = vunpack.c.l.bf16 %v15_v10  ;;  %v32_v16 = vld [vmem:[%s6473_s0 + $0x30] sm:$0xff]  ;;  %v33_v17 = vld [vmem:[%s6473_s0 + $0x38] sm:$0xff]  ;;  %v34_v18 = vld [vmem:[%s6473_s0 + $0x40] sm:$0xff] }
   0x5   :  { %v2014_v19 = vmul.f32 5.0, %v1956_v8  ;;  %v2016_v20 = vmul.f32 5.0, %v1957_v9  ;;  %v35_v21 = vld [vmem:[%s6473_s0 + $0x48] sm:$0xf]  ;;  %v36_v22 = vld [vmem:[%s6473_s0 + $0x50] sm:$0xff]  ;;  %v37_v23 = vld [vmem:[%s6473_s0 + $0x58] sm:$0xff] }
   0x6   :  { %v666_v24 = vmul.f32 %v26_v1, %v2001_v13  ;;  %v667_v25 = vmul.f32 %v27_v2, %v2003_v14  ;;  %v2029_v26 = vmul.f32 5.0, %v20_v15  ;;  %v671_v27 = vmul.f32 %v31_v12, %v2001_v13  ;;  %v38_v28 = vld [vmem:[%s6473_s0 + $0x60] sm:$0xff]  ;;  %v39_v29 = vld [vmem:[%s6473_s0 + $0x68] sm:$0xff]  ;;  %v40_v30 = vld [vmem:[%s6473_s0 + $0x70] sm:$0xf] }
   0x7   :  { %v668_v31 = vmul.f32 %v28_v6, %v2014_v19  ;;  %v669_v32 = vmul.f32 %v29_v7, %v2016_v20  ;;  %v672_v33 = vmul.f32 %v32_v16, %v2003_v14  ;;  %v673_v34 = vmul.f32 %v33_v17, %v2014_v19  ;;  %v41_v35 = vld [vmem:[%s6473_s0 + $0x78] sm:$0xff]  ;;  %v42_v36 = vld [vmem:[%s6473_s0 + $0x80] sm:$0xff]  ;;  %v43_v37 = vld [vmem:[%s6473_s0 + $0x88] sm:$0xff] }
   0x8   :  { %1306 = vst [vmem:[%s6475_s2] sm:$0xff] %v666_v24  ;;  %1307 = vst [vmem:[%s6475_s2 + $0x8] sm:$0xff] %v667_v25  ;;  %v670_v38 = vmul.f32 %v30_v11, %v2029_v26  ;;  %v674_v39 = vmul.f32 %v34_v18, %v2016_v20  ;;  %v675_v40 = vmul.f32 %v35_v21, %v2029_v26  ;;  %v44_v42 = vld [vmem:[%s6473_s0 + $0x90] sm:$0xff]  ;;  %v45_v43 = vld [vmem:[%s6473_s0 + $0x98] sm:$0xf] }
   0x9   :  { %1311 = vst [vmem:[%s6475_s2 + $0x28] sm:$0xff] %v671_v27  ;;  %v676_v41 = vmul.f32 %v36_v22, %v2001_v13  ;;  %v46_v44 = vld [vmem:[%s6473_s0 + $0xa0] sm:$0xff]  ;;  %1308 = vst [vmem:[%s6475_s2 + $0x10] sm:$0xff] %v668_v31  ;;  %v677_v45 = vmul.f32 %v37_v23, %v2003_v14  ;;  %v678_v46 = vmul.f32 %v38_v28, %v2014_v19  ;;  %v47_v49 = vld [vmem:[%s6473_s0 + $0xa8] sm:$0xff] }
   0xa   :  { %1309 = vst [vmem:[%s6475_s2 + $0x18] sm:$0xff] %v669_v32  ;;  %1312 = vst [vmem:[%s6475_s2 + $0x30] sm:$0xff] %v672_v33  ;;  %v679_v47 = vmul.f32 %v39_v29, %v2016_v20  ;;  %v680_v48 = vmul.f32 %v40_v30, %v2029_v26  ;;  %v48_v50 = vld [vmem:[%s6473_s0 + $0xb0] sm:$0xff]  ;;  %v49_v51 = vld [vmem:[%s6473_s0 + $0xb8] sm:$0xff]  ;;  %v681_v52 = vmul.f32 %v41_v35, %v2001_v13 }
   0xb   :  { %1313 = vst [vmem:[%s6475_s2 + $0x38] sm:$0xff] %v673_v34  ;;  %1310 = vst [vmem:[%s6475_s2 + $0x20] sm:$0xf] %v670_v38  ;;  %v682_v53 = vmul.f32 %v42_v36, %v2003_v14  ;;  %v683_v54 = vmul.f32 %v43_v37, %v2014_v19  ;;  %v684_v55 = vmul.f32 %v44_v42, %v2016_v20  ;;  %v50_v56 = vld [vmem:[%s6473_s0 + $0xc0] sm:$0xf]  ;;  %v51_v57 = vld [vmem:[%s6473_s0 + $0xc8] sm:$0xff] }
   0xc   :  { %1314 = vst [vmem:[%s6475_s2 + $0x40] sm:$0xff] %v674_v39  ;;  %1315 = vst [vmem:[%s6475_s2 + $0x48] sm:$0xf] %v675_v40  ;;  %v52_v58 = vld [vmem:[%s6473_s0 + $0xd0] sm:$0xff]  ;;  %v685_v59 = vmul.f32 %v45_v43, %v2029_v26  ;;  %v686_v60 = vmul.f32 %v46_v44, %v2001_v13  ;;  %v687_v61 = vmul.f32 %v47_v49, %v2003_v14  ;;  %v53_v63 = vld [vmem:[%s6473_s0 + $0xd8] sm:$0xff] }
   0xd   :  { %1316 = vst [vmem:[%s6475_s2 + $0x50] sm:$0xff] %v676_v41  ;;  %1317 = vst [vmem:[%s6475_s2 + $0x58] sm:$0xff] %v677_v45  ;;  %v688_v62 = vmul.f32 %v48_v50, %v2014_v19  ;;  %v54_v0 = vld [vmem:[%s6473_s0 + $0xe0] sm:$0xff]  ;;  %v55_v1 = vld [vmem:[%s6473_s0 + $0xe8] sm:$0xf]  ;;  %v689_v2 = vmul.f32 %v49_v51, %v2016_v20  ;;  %v690_v3 = vmul.f32 %v50_v56, %v2029_v26 }
   0xe   :  { %1318 = vst [vmem:[%s6475_s2 + $0x60] sm:$0xff] %v678_v46  ;;  %1319 = vst [vmem:[%s6475_s2 + $0x68] sm:$0xff] %v679_v47  ;;  %v691_v4 = vmul.f32 %v51_v57, %v2001_v13  ;;  %v692_v5 = vmul.f32 %v52_v58, %v2003_v14  ;;  %v56_v6 = vld [vmem:[%s6473_s0 + $0xf0] sm:$0xff]  ;;  %v57_v7 = vld [vmem:[%s6473_s0 + $0xf8] sm:$0xff]  ;;  %v693_v9 = vmul.f32 %v53_v63, %v2014_v19 }
   0xf   :  { %1320 = vst [vmem:[%s6475_s2 + $0x70] sm:$0xf] %v680_v48  ;;  %1321 = vst [vmem:[%s6475_s2 + $0x78] sm:$0xff] %v681_v52  ;;  %v58_v8 = vld [vmem:[%s6473_s0 + $0x100] sm:$0xff]  ;;  %v694_v10 = vmul.f32 %v54_v0, %v2016_v20  ;;  %v695_v11 = vmul.f32 %v55_v1, %v2029_v26  ;;  %v696_v12 = vmul.f32 %v56_v6, %v2001_v13  ;;  %v59_v15 = vld [vmem:[%s6473_s0 + $0x108] sm:$0xff] }
  0x10   :  { %1322 = vst [vmem:[%s6475_s2 + $0x80] sm:$0xff] %v682_v53  ;;  %1323 = vst [vmem:[%s6475_s2 + $0x88] sm:$0xff] %v683_v54  ;;  %v60_v16 = vld [vmem:[%s6473_s0 + $0x110] sm:$0xf]  ;;  %v61_v17 = vld [vmem:[%s6473_s0 + $0x118] sm:$0xff]  ;;  %v697_v18 = vmul.f32 %v57_v7, %v2003_v14  ;;  %v698_v21 = vmul.f32 %v58_v8, %v2014_v19  ;;  %v699_v22 = vmul.f32 %v59_v15, %v2016_v20 }
  0x11   :  { %1324 = vst [vmem:[%s6475_s2 + $0x90] sm:$0xff] %v684_v55  ;;  %1325 = vst [vmem:[%s6475_s2 + $0x98] sm:$0xf] %v685_v59  ;;  %v700_v23 = vmul.f32 %v60_v16, %v2029_v26  ;;  %v62_v24 = vld [vmem:[%s6473_s0 + $0x120] sm:$0xff]  ;;  %v63_v25 = vld [vmem:[%s6473_s0 + $0x128] sm:$0xff]  ;;  %v701_v28 = vmul.f32 %v61_v17, %v2001_v13 }
  0x12   :  { %1326 = vst [vmem:[%s6475_s2 + $0xa0] sm:$0xff] %v686_v60  ;;  %1327 = vst [vmem:[%s6475_s2 + $0xa8] sm:$0xff] %v687_v61  ;;  %v64_v27 = vld [vmem:[%s6473_s0 + $0x130] sm:$0xff]  ;;  %v702_v29 = vmul.f32 %v62_v24, %v2003_v14  ;;  %v703_v30 = vmul.f32 %v63_v25, %v2014_v19  ;;  %v65_v32 = vld [vmem:[%s6473_s0 + $0x138] sm:$0xf] }
  0x13   :  { %1328 = vst [vmem:[%s6475_s2 + $0xb0] sm:$0xff] %v688_v62  ;;  %1329 = vst [vmem:[%s6475_s2 + $0xb8] sm:$0xff] %v689_v2  ;;  %v704_v31 = vmul.f32 %v64_v27, %v2016_v20  ;;  %v66_v33 = vld [vmem:[%s6473_s0 + $0x140] sm:$0xff]  ;;  %v67_v34 = vld [vmem:[%s6473_s0 + $0x148] sm:$0xff]  ;;  %v705_v35 = vmul.f32 %v65_v32, %v2029_v26 }
  0x14   :  { %1330 = vst [vmem:[%s6475_s2 + $0xc0] sm:$0xf] %v690_v3  ;;  %1331 = vst [vmem:[%s6475_s2 + $0xc8] sm:$0xff] %v691_v4  ;;  %v706_v36 = vmul.f32 %v66_v33, %v2001_v13  ;;  %v707_v37 = vmul.f32 %v67_v34, %v2003_v14  ;;  %v68_v38 = vld [vmem:[%s6473_s0 + $0x150] sm:$0xff]  ;;  %v69_v39 = vld [vmem:[%s6473_s0 + $0x158] sm:$0xff] }
  0x15   :  { %1332 = vst [vmem:[%s6475_s2 + $0xd0] sm:$0xff] %v692_v5  ;;  %1333 = vst [vmem:[%s6475_s2 + $0xd8] sm:$0xff] %v693_v9  ;;  %v70_v40 = vld [vmem:[%s6473_s0 + $0x160] sm:$0xf]  ;;  %v708_v41 = vmul.f32 %v68_v38, %v2014_v19  ;;  %v709_v42 = vmul.f32 %v69_v39, %v2016_v20  ;;  %v71_v44 = vld [vmem:[%s6473_s0 + $0x168] sm:$0xff] }
  0x16   :  { %1334 = vst [vmem:[%s6475_s2 + $0xe0] sm:$0xff] %v694_v10  ;;  %1335 = vst [vmem:[%s6475_s2 + $0xe8] sm:$0xf] %v695_v11  ;;  %v710_v43 = vmul.f32 %v70_v40, %v2029_v26  ;;  %v72_v45 = vld [vmem:[%s6473_s0 + $0x170] sm:$0xff]  ;;  %v73_v46 = vld [vmem:[%s6473_s0 + $0x178] sm:$0xff]  ;;  %v711_v47 = vmul.f32 %v71_v44, %v2001_v13 }
  0x17   :  { %1336 = vst [vmem:[%s6475_s2 + $0xf0] sm:$0xff] %v696_v12  ;;  %1337 = vst [vmem:[%s6475_s2 + $0xf8] sm:$0xff] %v697_v18  ;;  %v712_v48 = vmul.f32 %v72_v45, %v2003_v14  ;;  %v713_v49 = vmul.f32 %v73_v46, %v2014_v19  ;;  %v74_v50 = vld [vmem:[%s6473_s0 + $0x180] sm:$0xff]  ;;  %v75_v51 = vld [vmem:[%s6473_s0 + $0x188] sm:$0xf] }
  0x18   :  { %1338 = vst [vmem:[%s6475_s2 + $0x100] sm:$0xff] %v698_v21  ;;  %1339 = vst [vmem:[%s6475_s2 + $0x108] sm:$0xff] %v699_v22  ;;  %v76_v52 = vld [vmem:[%s6473_s0 + $0x190] sm:$0xff]  ;;  %v714_v53 = vmul.f32 %v74_v50, %v2016_v20  ;;  %v715_v54 = vmul.f32 %v75_v51, %v2029_v26  ;;  %v77_v56 = vld [vmem:[%s6473_s0 + $0x198] sm:$0xff] }
  0x19   :  { %1340 = vst [vmem:[%s6475_s2 + $0x110] sm:$0xf] %v700_v23  ;;  %1341 = vst [vmem:[%s6475_s2 + $0x118] sm:$0xff] %v701_v28  ;;  %v716_v55 = vmul.f32 %v76_v52, %v2001_v13  ;;  %v78_v57 = vld [vmem:[%s6473_s0 + $0x1a0] sm:$0xff]  ;;  %v79_v58 = vld [vmem:[%s6473_s0 + $0x1a8] sm:$0xff]  ;;  %v717_v59 = vmul.f32 %v77_v56, %v2003_v14 }
  0x1a   :  { %1342 = vst [vmem:[%s6475_s2 + $0x120] sm:$0xff] %v702_v29  ;;  %1343 = vst [vmem:[%s6475_s2 + $0x128] sm:$0xff] %v703_v30  ;;  %v718_v60 = vmul.f32 %v78_v57, %v2014_v19  ;;  %v719_v61 = vmul.f32 %v79_v58, %v2016_v20  ;;  %v80_v62 = vld [vmem:[%s6473_s0 + $0x1b0] sm:$0xf]  ;;  %v81_v63 = vld [vmem:[%s6473_s0 + $0x1b8] sm:$0xff] }
  0x1b   :  { %1344 = vst [vmem:[%s6475_s2 + $0x130] sm:$0xff] %v704_v31  ;;  %1345 = vst [vmem:[%s6475_s2 + $0x138] sm:$0xf] %v705_v35  ;;  %v82_v0 = vld [vmem:[%s6473_s0 + $0x1c0] sm:$0xff]  ;;  %v720_v1 = vmul.f32 %v80_v62, %v2029_v26  ;;  %v721_v2 = vmul.f32 %v81_v63, %v2001_v13  ;;  %v83_v4 = vld [vmem:[%s6473_s0 + $0x1c8] sm:$0xff] }
  0x1c   :  { %1346 = vst [vmem:[%s6475_s2 + $0x140] sm:$0xff] %v706_v36  ;;  %1347 = vst [vmem:[%s6475_s2 + $0x148] sm:$0xff] %v707_v37  ;;  %v722_v3 = vmul.f32 %v82_v0, %v2003_v14  ;;  %v84_v5 = vld [vmem:[%s6473_s0 + $0x1d0] sm:$0xff]  ;;  %v85_v6 = vld [vmem:[%s6473_s0 + $0x1d8] sm:$0xf]  ;;  %v723_v7 = vmul.f32 %v83_v4, %v2014_v19 }
  0x1d   :  { %1348 = vst [vmem:[%s6475_s2 + $0x150] sm:$0xff] %v708_v41  ;;  %1349 = vst [vmem:[%s6475_s2 + $0x158] sm:$0xff] %v709_v42  ;;  %v724_v8 = vmul.f32 %v84_v5, %v2016_v20  ;;  %v725_v9 = vmul.f32 %v85_v6, %v2029_v26  ;;  %v86_v10 = vld [vmem:[%s6473_s0 + $0x1e0] sm:$0xff]  ;;  %v87_v11 = vld [vmem:[%s6473_s0 + $0x1e8] sm:$0xff] }
  0x1e   :  { %1350 = vst [vmem:[%s6475_s2 + $0x160] sm:$0xf] %v710_v43  ;;  %1351 = vst [vmem:[%s6475_s2 + $0x168] sm:$0xff] %v711_v47  ;;  %v88_v12 = vld [vmem:[%s6473_s0 + $0x1f0] sm:$0xff]  ;;  %v726_v15 = vmul.f32 %v86_v10, %v2001_v13  ;;  %v727_v16 = vmul.f32 %v87_v11, %v2003_v14  ;;  %v89_v18 = vld [vmem:[%s6473_s0 + $0x1f8] sm:$0xff] }
  0x1f   :  { %1352 = vst [vmem:[%s6475_s2 + $0x170] sm:$0xff] %v712_v48  ;;  %1353 = vst [vmem:[%s6475_s2 + $0x178] sm:$0xff] %v713_v49  ;;  %v728_v17 = vmul.f32 %v88_v12, %v2014_v19  ;;  %v90_v21 = vld [vmem:[%s6473_s0 + $0x200] sm:$0xf]  ;;  %v91_v22 = vld [vmem:[%s6473_s0 + $0x208] sm:$0xff]  ;;  %v729_v23 = vmul.f32 %v89_v18, %v2016_v20 }
  0x20   :  { %1354 = vst [vmem:[%s6475_s2 + $0x180] sm:$0xff] %v714_v53  ;;  %1355 = vst [vmem:[%s6475_s2 + $0x188] sm:$0xf] %v715_v54  ;;  %v730_v24 = vmul.f32 %v90_v21, %v2029_v26  ;;  %v731_v25 = vmul.f32 %v91_v22, %v2001_v13  ;;  %v92_v27 = vld [vmem:[%s6473_s0 + $0x210] sm:$0xff]  ;;  %v93_v28 = vld [vmem:[%s6473_s0 + $0x218] sm:$0xff] }
  0x21   :  { %1356 = vst [vmem:[%s6475_s2 + $0x190] sm:$0xff] %v716_v55  ;;  %1357 = vst [vmem:[%s6475_s2 + $0x198] sm:$0xff] %v717_v59  ;;  %v94_v29 = vld [vmem:[%s6473_s0 + $0x220] sm:$0xff]  ;;  %v732_v30 = vmul.f32 %v92_v27, %v2003_v14  ;;  %v733_v31 = vmul.f32 %v93_v28, %v2014_v19  ;;  %v95_v33 = vld [vmem:[%s6473_s0 + $0x228] sm:$0xf] }
  0x22   :  { %1358 = vst [vmem:[%s6475_s2 + $0x1a0] sm:$0xff] %v718_v60  ;;  %1359 = vst [vmem:[%s6475_s2 + $0x1a8] sm:$0xff] %v719_v61  ;;  %v734_v32 = vmul.f32 %v94_v29, %v2016_v20  ;;  %v96_v34 = vld [vmem:[%s6473_s0 + $0x230] sm:$0xff]  ;;  %v97_v35 = vld [vmem:[%s6473_s0 + $0x238] sm:$0xff]  ;;  %v735_v36 = vmul.f32 %v95_v33, %v2029_v26 }
  0x23   :  { %1360 = vst [vmem:[%s6475_s2 + $0x1b0] sm:$0xf] %v720_v1  ;;  %1361 = vst [vmem:[%s6475_s2 + $0x1b8] sm:$0xff] %v721_v2  ;;  %v736_v37 = vmul.f32 %v96_v34, %v2001_v13  ;;  %v737_v38 = vmul.f32 %v97_v35, %v2003_v14  ;;  %v98_v39 = vld [vmem:[%s6473_s0 + $0x240] sm:$0xff]  ;;  %v99_v40 = vld [vmem:[%s6473_s0 + $0x248] sm:$0xff] }
  0x24   :  { %1362 = vst [vmem:[%s6475_s2 + $0x1c0] sm:$0xff] %v722_v3  ;;  %1363 = vst [vmem:[%s6475_s2 + $0x1c8] sm:$0xff] %v723_v7  ;;  %v100_v41 = vld [vmem:[%s6473_s0 + $0x250] sm:$0xf]  ;;  %v738_v42 = vmul.f32 %v98_v39, %v2014_v19  ;;  %v739_v43 = vmul.f32 %v99_v40, %v2016_v20  ;;  %v101_v45 = vld [vmem:[%s6473_s0 + $0x258] sm:$0xff] }
  0x25   :  { %1364 = vst [vmem:[%s6475_s2 + $0x1d0] sm:$0xff] %v724_v8  ;;  %1365 = vst [vmem:[%s6475_s2 + $0x1d8] sm:$0xf] %v725_v9  ;;  %v740_v44 = vmul.f32 %v100_v41, %v2029_v26  ;;  %v102_v46 = vld [vmem:[%s6473_s0 + $0x260] sm:$0xff]  ;;  %v103_v47 = vld [vmem:[%s6473_s0 + $0x268] sm:$0xff]  ;;  %v741_v48 = vmul.f32 %v101_v45, %v2001_v13 }
  0x26   :  { %1366 = vst [vmem:[%s6475_s2 + $0x1e0] sm:$0xff] %v726_v15  ;;  %1367 = vst [vmem:[%s6475_s2 + $0x1e8] sm:$0xff] %v727_v16  ;;  %v742_v49 = vmul.f32 %v102_v46, %v2003_v14  ;;  %v743_v50 = vmul.f32 %v103_v47, %v2014_v19  ;;  %v104_v51 = vld [vmem:[%s6473_s0 + $0x270] sm:$0xff]  ;;  %v105_v52 = vld [vmem:[%s6473_s0 + $0x278] sm:$0xf] }
  0x27   :  { %1368 = vst [vmem:[%s6475_s2 + $0x1f0] sm:$0xff] %v728_v17  ;;  %1369 = vst [vmem:[%s6475_s2 + $0x1f8] sm:$0xff] %v729_v23  ;;  %v106_v53 = vld [vmem:[%s6473_s0 + $0x280] sm:$0xff]  ;;  %v744_v54 = vmul.f32 %v104_v51, %v2016_v20  ;;  %v745_v55 = vmul.f32 %v105_v52, %v2029_v26  ;;  %v107_v57 = vld [vmem:[%s6473_s0 + $0x288] sm:$0xff] }
  0x28   :  { %1370 = vst [vmem:[%s6475_s2 + $0x200] sm:$0xf] %v730_v24  ;;  %1371 = vst [vmem:[%s6475_s2 + $0x208] sm:$0xff] %v731_v25  ;;  %v746_v56 = vmul.f32 %v106_v53, %v2001_v13  ;;  %v108_v58 = vld [vmem:[%s6473_s0 + $0x290] sm:$0xff]  ;;  %v109_v59 = vld [vmem:[%s6473_s0 + $0x298] sm:$0xff]  ;;  %v747_v60 = vmul.f32 %v107_v57, %v2003_v14 }
  0x29   :  { %1372 = vst [vmem:[%s6475_s2 + $0x210] sm:$0xff] %v732_v30  ;;  %1373 = vst [vmem:[%s6475_s2 + $0x218] sm:$0xff] %v733_v31  ;;  %v748_v61 = vmul.f32 %v108_v58, %v2014_v19  ;;  %v749_v62 = vmul.f32 %v109_v59, %v2016_v20  ;;  %v110_v63 = vld [vmem:[%s6473_s0 + $0x2a0] sm:$0xf]  ;;  %v111_v0 = vld [vmem:[%s6473_s0 + $0x2a8] sm:$0xff] }
  0x2a   :  { %1374 = vst [vmem:[%s6475_s2 + $0x220] sm:$0xff] %v734_v32  ;;  %1375 = vst [vmem:[%s6475_s2 + $0x228] sm:$0xf] %v735_v36  ;;  %v112_v1 = vld [vmem:[%s6473_s0 + $0x2b0] sm:$0xff]  ;;  %v750_v2 = vmul.f32 %v110_v63, %v2029_v26  ;;  %v751_v3 = vmul.f32 %v111_v0, %v2001_v13  ;;  %v113_v5 = vld [vmem:[%s6473_s0 + $0x2b8] sm:$0xff] }
  0x2b   :  { %1376 = vst [vmem:[%s6475_s2 + $0x230] sm:$0xff] %v736_v37  ;;  %1377 = vst [vmem:[%s6475_s2 + $0x238] sm:$0xff] %v737_v38  ;;  %v752_v4 = vmul.f32 %v112_v1, %v2003_v14  ;;  %v114_v6 = vld [vmem:[%s6473_s0 + $0x2c0] sm:$0xff]  ;;  %v115_v7 = vld [vmem:[%s6473_s0 + $0x2c8] sm:$0xf]  ;;  %v753_v8 = vmul.f32 %v113_v5, %v2014_v19 }
  0x2c   :  { %1378 = vst [vmem:[%s6475_s2 + $0x240] sm:$0xff] %v738_v42  ;;  %1379 = vst [vmem:[%s6475_s2 + $0x248] sm:$0xff] %v739_v43  ;;  %v754_v9 = vmul.f32 %v114_v6, %v2016_v20  ;;  %v755_v10 = vmul.f32 %v115_v7, %v2029_v26  ;;  %v116_v11 = vld [vmem:[%s6473_s0 + $0x2d0] sm:$0xff]  ;;  %v117_v12 = vld [vmem:[%s6473_s0 + $0x2d8] sm:$0xff] }
  0x2d   :  { %1380 = vst [vmem:[%s6475_s2 + $0x250] sm:$0xf] %v740_v44  ;;  %1381 = vst [vmem:[%s6475_s2 + $0x258] sm:$0xff] %v741_v48  ;;  %v118_v15 = vld [vmem:[%s6473_s0 + $0x2e0] sm:$0xff]  ;;  %v756_v16 = vmul.f32 %v116_v11, %v2001_v13  ;;  %v757_v17 = vmul.f32 %v117_v12, %v2003_v14  ;;  %v119_v21 = vld [vmem:[%s6473_s0 + $0x2e8] sm:$0xff] }
  0x2e   :  { %1382 = vst [vmem:[%s6475_s2 + $0x260] sm:$0xff] %v742_v49  ;;  %1383 = vst [vmem:[%s6475_s2 + $0x268] sm:$0xff] %v743_v50  ;;  %v758_v18 = vmul.f32 %v118_v15, %v2014_v19  ;;  %v120_v22 = vld [vmem:[%s6473_s0 + $0x2f0] sm:$0xf]  ;;  %v121_v23 = vld [vmem:[%s6473_s0 + $0x2f8] sm:$0xff]  ;;  %v759_v24 = vmul.f32 %v119_v21, %v2016_v20 }
  0x2f   :  { %1384 = vst [vmem:[%s6475_s2 + $0x270] sm:$0xff] %v744_v54  ;;  %1385 = vst [vmem:[%s6475_s2 + $0x278] sm:$0xf] %v745_v55  ;;  %v760_v25 = vmul.f32 %v120_v22, %v2029_v26  ;;  %v761_v27 = vmul.f32 %v121_v23, %v2001_v13  ;;  %v122_v28 = vld [vmem:[%s6473_s0 + $0x300] sm:$0xff]  ;;  %v123_v29 = vld [vmem:[%s6473_s0 + $0x308] sm:$0xff] }
  0x30   :  { %1386 = vst [vmem:[%s6475_s2 + $0x280] sm:$0xff] %v746_v56  ;;  %1387 = vst [vmem:[%s6475_s2 + $0x288] sm:$0xff] %v747_v60  ;;  %v124_v30 = vld [vmem:[%s6473_s0 + $0x310] sm:$0xff]  ;;  %v762_v31 = vmul.f32 %v122_v28, %v2003_v14  ;;  %v763_v32 = vmul.f32 %v123_v29, %v2014_v19  ;;  %v125_v34 = vld [vmem:[%s6473_s0 + $0x318] sm:$0xf] }
  0x31   :  { %1388 = vst [vmem:[%s6475_s2 + $0x290] sm:$0xff] %v748_v61  ;;  %1389 = vst [vmem:[%s6475_s2 + $0x298] sm:$0xff] %v749_v62  ;;  %v764_v33 = vmul.f32 %v124_v30, %v2016_v20  ;;  %v126_v35 = vld [vmem:[%s6473_s0 + $0x320] sm:$0xff]  ;;  %v127_v36 = vld [vmem:[%s6473_s0 + $0x328] sm:$0xff]  ;;  %v765_v37 = vmul.f32 %v125_v34, %v2029_v26 }
  0x32   :  { %1390 = vst [vmem:[%s6475_s2 + $0x2a0] sm:$0xf] %v750_v2  ;;  %1391 = vst [vmem:[%s6475_s2 + $0x2a8] sm:$0xff] %v751_v3  ;;  %v766_v38 = vmul.f32 %v126_v35, %v2001_v13  ;;  %v767_v39 = vmul.f32 %v127_v36, %v2003_v14  ;;  %v128_v40 = vld [vmem:[%s6473_s0 + $0x330] sm:$0xff]  ;;  %v129_v41 = vld [vmem:[%s6473_s0 + $0x338] sm:$0xff] }
  0x33   :  { %1392 = vst [vmem:[%s6475_s2 + $0x2b0] sm:$0xff] %v752_v4  ;;  %1393 = vst [vmem:[%s6475_s2 + $0x2b8] sm:$0xff] %v753_v8  ;;  %v130_v42 = vld [vmem:[%s6473_s0 + $0x340] sm:$0xf]  ;;  %v768_v43 = vmul.f32 %v128_v40, %v2014_v19  ;;  %v769_v44 = vmul.f32 %v129_v41, %v2016_v20  ;;  %v131_v46 = vld [vmem:[%s6473_s0 + $0x348] sm:$0xff] }
  0x34   :  { %1394 = vst [vmem:[%s6475_s2 + $0x2c0] sm:$0xff] %v754_v9  ;;  %1395 = vst [vmem:[%s6475_s2 + $0x2c8] sm:$0xf] %v755_v10  ;;  %v770_v45 = vmul.f32 %v130_v42, %v2029_v26  ;;  %v132_v47 = vld [vmem:[%s6473_s0 + $0x350] sm:$0xff]  ;;  %v133_v48 = vld [vmem:[%s6473_s0 + $0x358] sm:$0xff]  ;;  %v771_v49 = vmul.f32 %v131_v46, %v2001_v13 }
  0x35   :  { %1396 = vst [vmem:[%s6475_s2 + $0x2d0] sm:$0xff] %v756_v16  ;;  %1397 = vst [vmem:[%s6475_s2 + $0x2d8] sm:$0xff] %v757_v17  ;;  %v772_v50 = vmul.f32 %v132_v47, %v2003_v14  ;;  %v773_v51 = vmul.f32 %v133_v48, %v2014_v19  ;;  %v134_v52 = vld [vmem:[%s6473_s0 + $0x360] sm:$0xff]  ;;  %v135_v53 = vld [vmem:[%s6473_s0 + $0x368] sm:$0xf] }
  0x36   :  { %1398 = vst [vmem:[%s6475_s2 + $0x2e0] sm:$0xff] %v758_v18  ;;  %1399 = vst [vmem:[%s6475_s2 + $0x2e8] sm:$0xff] %v759_v24  ;;  %v136_v54 = vld [vmem:[%s6473_s0 + $0x370] sm:$0xff]  ;;  %v774_v55 = vmul.f32 %v134_v52, %v2016_v20  ;;  %v775_v56 = vmul.f32 %v135_v53, %v2029_v26  ;;  %v137_v58 = vld [vmem:[%s6473_s0 + $0x378] sm:$0xff] }
  0x37   :  { %1400 = vst [vmem:[%s6475_s2 + $0x2f0] sm:$0xf] %v760_v25  ;;  %1401 = vst [vmem:[%s6475_s2 + $0x2f8] sm:$0xff] %v761_v27  ;;  %v776_v57 = vmul.f32 %v136_v54, %v2001_v13  ;;  %v138_v59 = vld [vmem:[%s6473_s0 + $0x380] sm:$0xff]  ;;  %v139_v60 = vld [vmem:[%s6473_s0 + $0x388] sm:$0xff]  ;;  %v777_v61 = vmul.f32 %v137_v58, %v2003_v14 }
  0x38   :  { %1402 = vst [vmem:[%s6475_s2 + $0x300] sm:$0xff] %v762_v31  ;;  %1403 = vst [vmem:[%s6475_s2 + $0x308] sm:$0xff] %v763_v32  ;;  %v778_v62 = vmul.f32 %v138_v59, %v2014_v19  ;;  %v779_v63 = vmul.f32 %v139_v60, %v2016_v20  ;;  %v140_v0 = vld [vmem:[%s6473_s0 + $0x390] sm:$0xf]  ;;  %v141_v1 = vld [vmem:[%s6473_s0 + $0x398] sm:$0xff] }
  0x39   :  { %1404 = vst [vmem:[%s6475_s2 + $0x310] sm:$0xff] %v764_v33  ;;  %1405 = vst [vmem:[%s6475_s2 + $0x318] sm:$0xf] %v765_v37  ;;  %v142_v2 = vld [vmem:[%s6473_s0 + $0x3a0] sm:$0xff]  ;;  %v780_v3 = vmul.f32 %v140_v0, %v2029_v26  ;;  %v781_v4 = vmul.f32 %v141_v1, %v2001_v13  ;;  %v143_v6 = vld [vmem:[%s6473_s0 + $0x3a8] sm:$0xff] }
  0x3a   :  { %1406 = vst [vmem:[%s6475_s2 + $0x320] sm:$0xff] %v766_v38  ;;  %1407 = vst [vmem:[%s6475_s2 + $0x328] sm:$0xff] %v767_v39  ;;  %v782_v5 = vmul.f32 %v142_v2, %v2003_v14  ;;  %v144_v7 = vld [vmem:[%s6473_s0 + $0x3b0] sm:$0xff]  ;;  %v145_v8 = vld [vmem:[%s6473_s0 + $0x3b8] sm:$0xf]  ;;  %v783_v9 = vmul.f32 %v143_v6, %v2014_v19 }
  0x3b   :  { %1408 = vst [vmem:[%s6475_s2 + $0x330] sm:$0xff] %v768_v43  ;;  %1409 = vst [vmem:[%s6475_s2 + $0x338] sm:$0xff] %v769_v44  ;;  %v784_v10 = vmul.f32 %v144_v7, %v2016_v20  ;;  %v785_v11 = vmul.f32 %v145_v8, %v2029_v26  ;;  %v146_v12 = vld [vmem:[%s6473_s0 + $0x3c0] sm:$0xff]  ;;  %v147_v15 = vld [vmem:[%s6473_s0 + $0x3c8] sm:$0xff] }
  0x3c   :  { %1410 = vst [vmem:[%s6475_s2 + $0x340] sm:$0xf] %v770_v45  ;;  %1411 = vst [vmem:[%s6475_s2 + $0x348] sm:$0xff] %v771_v49  ;;  %v148_v16 = vld [vmem:[%s6473_s0 + $0x3d0] sm:$0xff]  ;;  %v786_v17 = vmul.f32 %v146_v12, %v2001_v13  ;;  %v787_v18 = vmul.f32 %v147_v15, %v2003_v14  ;;  %v149_v22 = vld [vmem:[%s6473_s0 + $0x3d8] sm:$0xff] }
  0x3d   :  { %1412 = vst [vmem:[%s6475_s2 + $0x350] sm:$0xff] %v772_v50  ;;  %1413 = vst [vmem:[%s6475_s2 + $0x358] sm:$0xff] %v773_v51  ;;  %v788_v21 = vmul.f32 %v148_v16, %v2014_v19  ;;  %v150_v23 = vld [vmem:[%s6473_s0 + $0x3e0] sm:$0xf]  ;;  %v151_v24 = vld [vmem:[%s6473_s0 + $0x3e8] sm:$0xff]  ;;  %v789_v25 = vmul.f32 %v149_v22, %v2016_v20 }
  0x3e   :  { %1414 = vst [vmem:[%s6475_s2 + $0x360] sm:$0xff] %v774_v55  ;;  %1415 = vst [vmem:[%s6475_s2 + $0x368] sm:$0xf] %v775_v56  ;;  %v790_v27 = vmul.f32 %v150_v23, %v2029_v26  ;;  %v791_v28 = vmul.f32 %v151_v24, %v2001_v13  ;;  %v152_v29 = vld [vmem:[%s6473_s0 + $0x3f0] sm:$0xff]  ;;  %v153_v30 = vld [vmem:[%s6473_s0 + $0x3f8] sm:$0xff] }
  0x3f   :  { %1416 = vst [vmem:[%s6475_s2 + $0x370] sm:$0xff] %v776_v57  ;;  %1417 = vst [vmem:[%s6475_s2 + $0x378] sm:$0xff] %v777_v61  ;;  %v154_v31 = vld [vmem:[%s6473_s0 + $0x400] sm:$0xff]  ;;  %v792_v32 = vmul.f32 %v152_v29, %v2003_v14  ;;  %v793_v33 = vmul.f32 %v153_v30, %v2014_v19  ;;  %v155_v35 = vld [vmem:[%s6473_s0 + $0x408] sm:$0xf] }
  0x40   :  { %1418 = vst [vmem:[%s6475_s2 + $0x380] sm:$0xff] %v778_v62  ;;  %1419 = vst [vmem:[%s6475_s2 + $0x388] sm:$0xff] %v779_v63  ;;  %v794_v34 = vmul.f32 %v154_v31, %v2016_v20  ;;  %v156_v36 = vld [vmem:[%s6473_s0 + $0x410] sm:$0xff]  ;;  %v157_v37 = vld [vmem:[%s6473_s0 + $0x418] sm:$0xff]  ;;  %v795_v38 = vmul.f32 %v155_v35, %v2029_v26 }
  0x41   :  { %1420 = vst [vmem:[%s6475_s2 + $0x390] sm:$0xf] %v780_v3  ;;  %1421 = vst [vmem:[%s6475_s2 + $0x398] sm:$0xff] %v781_v4  ;;  %v796_v39 = vmul.f32 %v156_v36, %v2001_v13  ;;  %v797_v40 = vmul.f32 %v157_v37, %v2003_v14  ;;  %v158_v41 = vld [vmem:[%s6473_s0 + $0x420] sm:$0xff]  ;;  %v159_v42 = vld [vmem:[%s6473_s0 + $0x428] sm:$0xff] }
  0x42   :  { %1422 = vst [vmem:[%s6475_s2 + $0x3a0] sm:$0xff] %v782_v5  ;;  %1423 = vst [vmem:[%s6475_s2 + $0x3a8] sm:$0xff] %v783_v9  ;;  %v160_v43 = vld [vmem:[%s6473_s0 + $0x430] sm:$0xf]  ;;  %v798_v44 = vmul.f32 %v158_v41, %v2014_v19  ;;  %v799_v45 = vmul.f32 %v159_v42, %v2016_v20  ;;  %v161_v47 = vld [vmem:[%s6473_s0 + $0x438] sm:$0xff] }
  0x43   :  { %1424 = vst [vmem:[%s6475_s2 + $0x3b0] sm:$0xff] %v784_v10  ;;  %1425 = vst [vmem:[%s6475_s2 + $0x3b8] sm:$0xf] %v785_v11  ;;  %v800_v46 = vmul.f32 %v160_v43, %v2029_v26  ;;  %v162_v48 = vld [vmem:[%s6473_s0 + $0x440] sm:$0xff]  ;;  %v163_v49 = vld [vmem:[%s6473_s0 + $0x448] sm:$0xff]  ;;  %v801_v50 = vmul.f32 %v161_v47, %v2001_v13 }
  0x44   :  { %1426 = vst [vmem:[%s6475_s2 + $0x3c0] sm:$0xff] %v786_v17  ;;  %1427 = vst [vmem:[%s6475_s2 + $0x3c8] sm:$0xff] %v787_v18  ;;  %v802_v51 = vmul.f32 %v162_v48, %v2003_v14  ;;  %v803_v52 = vmul.f32 %v163_v49, %v2014_v19  ;;  %v164_v53 = vld [vmem:[%s6473_s0 + $0x450] sm:$0xff]  ;;  %v165_v54 = vld [vmem:[%s6473_s0 + $0x458] sm:$0xf] }
  0x45   :  { %1428 = vst [vmem:[%s6475_s2 + $0x3d0] sm:$0xff] %v788_v21  ;;  %1429 = vst [vmem:[%s6475_s2 + $0x3d8] sm:$0xff] %v789_v25  ;;  %v166_v55 = vld [vmem:[%s6473_s0 + $0x460] sm:$0xff]  ;;  %v804_v56 = vmul.f32 %v164_v53, %v2016_v20  ;;  %v805_v57 = vmul.f32 %v165_v54, %v2029_v26  ;;  %v167_v59 = vld [vmem:[%s6473_s0 + $0x468] sm:$0xff] }
  0x46   :  { %1430 = vst [vmem:[%s6475_s2 + $0x3e0] sm:$0xf] %v790_v27  ;;  %1431 = vst [vmem:[%s6475_s2 + $0x3e8] sm:$0xff] %v791_v28  ;;  %v806_v58 = vmul.f32 %v166_v55, %v2001_v13  ;;  %v168_v60 = vld [vmem:[%s6473_s0 + $0x470] sm:$0xff]  ;;  %v169_v61 = vld [vmem:[%s6473_s0 + $0x478] sm:$0xff]  ;;  %v807_v62 = vmul.f32 %v167_v59, %v2003_v14 }
  0x47   :  { %1432 = vst [vmem:[%s6475_s2 + $0x3f0] sm:$0xff] %v792_v32  ;;  %1433 = vst [vmem:[%s6475_s2 + $0x3f8] sm:$0xff] %v793_v33  ;;  %v808_v63 = vmul.f32 %v168_v60, %v2014_v19  ;;  %v809_v0 = vmul.f32 %v169_v61, %v2016_v20  ;;  %v170_v1 = vld [vmem:[%s6473_s0 + $0x480] sm:$0xf]  ;;  %v171_v2 = vld [vmem:[%s6473_s0 + $0x488] sm:$0xff] }
  0x48   :  { %1434 = vst [vmem:[%s6475_s2 + $0x400] sm:$0xff] %v794_v34  ;;  %1435 = vst [vmem:[%s6475_s2 + $0x408] sm:$0xf] %v795_v38  ;;  %v172_v3 = vld [vmem:[%s6473_s0 + $0x490] sm:$0xff]  ;;  %v810_v4 = vmul.f32 %v170_v1, %v2029_v26  ;;  %v811_v5 = vmul.f32 %v171_v2, %v2001_v13  ;;  %v173_v7 = vld [vmem:[%s6473_s0 + $0x498] sm:$0xff] }
  0x49   :  { %1436 = vst [vmem:[%s6475_s2 + $0x410] sm:$0xff] %v796_v39  ;;  %1437 = vst [vmem:[%s6475_s2 + $0x418] sm:$0xff] %v797_v40  ;;  %v812_v6 = vmul.f32 %v172_v3, %v2003_v14  ;;  %v174_v8 = vld [vmem:[%s6473_s0 + $0x4a0] sm:$0xff]  ;;  %v175_v9 = vld [vmem:[%s6473_s0 + $0x4a8] sm:$0xf]  ;;  %v813_v10 = vmul.f32 %v173_v7, %v2014_v19 }
  0x4a   :  { %1438 = vst [vmem:[%s6475_s2 + $0x420] sm:$0xff] %v798_v44  ;;  %1439 = vst [vmem:[%s6475_s2 + $0x428] sm:$0xff] %v799_v45  ;;  %v814_v11 = vmul.f32 %v174_v8, %v2016_v20  ;;  %v815_v12 = vmul.f32 %v175_v9, %v2029_v26  ;;  %v176_v15 = vld [vmem:[%s6473_s0 + $0x4b0] sm:$0xff]  ;;  %v177_v16 = vld [vmem:[%s6473_s0 + $0x4b8] sm:$0xff] }
  0x4b   :  { %1440 = vst [vmem:[%s6475_s2 + $0x430] sm:$0xf] %v800_v46  ;;  %1441 = vst [vmem:[%s6475_s2 + $0x438] sm:$0xff] %v801_v50  ;;  %v178_v17 = vld [vmem:[%s6473_s0 + $0x4c0] sm:$0xff]  ;;  %v816_v18 = vmul.f32 %v176_v15, %v2001_v13  ;;  %v817_v21 = vmul.f32 %v177_v16, %v2003_v14  ;;  %v179_v23 = vld [vmem:[%s6473_s0 + $0x4c8] sm:$0xff] }
  0x4c   :  { %1442 = vst [vmem:[%s6475_s2 + $0x440] sm:$0xff] %v802_v51  ;;  %1443 = vst [vmem:[%s6475_s2 + $0x448] sm:$0xff] %v803_v52  ;;  %v818_v22 = vmul.f32 %v178_v17, %v2014_v19  ;;  %v180_v24 = vld [vmem:[%s6473_s0 + $0x4d0] sm:$0xf]  ;;  %v181_v25 = vld [vmem:[%s6473_s0 + $0x4d8] sm:$0xff]  ;;  %v819_v27 = vmul.f32 %v179_v23, %v2016_v20 }
  0x4d   :  { %1444 = vst [vmem:[%s6475_s2 + $0x450] sm:$0xff] %v804_v56  ;;  %1445 = vst [vmem:[%s6475_s2 + $0x458] sm:$0xf] %v805_v57  ;;  %v820_v28 = vmul.f32 %v180_v24, %v2029_v26  ;;  %v821_v29 = vmul.f32 %v181_v25, %v2001_v13  ;;  %v182_v30 = vld [vmem:[%s6473_s0 + $0x4e0] sm:$0xff]  ;;  %v183_v31 = vld [vmem:[%s6473_s0 + $0x4e8] sm:$0xff] }
  0x4e   :  { %1446 = vst [vmem:[%s6475_s2 + $0x460] sm:$0xff] %v806_v58  ;;  %1447 = vst [vmem:[%s6475_s2 + $0x468] sm:$0xff] %v807_v62  ;;  %v184_v32 = vld [vmem:[%s6473_s0 + $0x4f0] sm:$0xff]  ;;  %v822_v33 = vmul.f32 %v182_v30, %v2003_v14  ;;  %v823_v34 = vmul.f32 %v183_v31, %v2014_v19  ;;  %v185_v36 = vld [vmem:[%s6473_s0 + $0x4f8] sm:$0xf] }
  0x4f   :  { %1448 = vst [vmem:[%s6475_s2 + $0x470] sm:$0xff] %v808_v63  ;;  %1449 = vst [vmem:[%s6475_s2 + $0x478] sm:$0xff] %v809_v0  ;;  %v824_v35 = vmul.f32 %v184_v32, %v2016_v20  ;;  %v186_v37 = vld [vmem:[%s6473_s0 + $0x500] sm:$0xff]  ;;  %v187_v38 = vld [vmem:[%s6473_s0 + $0x508] sm:$0xff]  ;;  %v825_v39 = vmul.f32 %v185_v36, %v2029_v26 }
  0x50   :  { %1450 = vst [vmem:[%s6475_s2 + $0x480] sm:$0xf] %v810_v4  ;;  %1451 = vst [vmem:[%s6475_s2 + $0x488] sm:$0xff] %v811_v5  ;;  %v826_v40 = vmul.f32 %v186_v37, %v2001_v13  ;;  %v827_v41 = vmul.f32 %v187_v38, %v2003_v14  ;;  %v188_v42 = vld [vmem:[%s6473_s0 + $0x510] sm:$0xff]  ;;  %v189_v43 = vld [vmem:[%s6473_s0 + $0x518] sm:$0xff] }
  0x51   :  { %1452 = vst [vmem:[%s6475_s2 + $0x490] sm:$0xff] %v812_v6  ;;  %1453 = vst [vmem:[%s6475_s2 + $0x498] sm:$0xff] %v813_v10  ;;  %v190_v44 = vld [vmem:[%s6473_s0 + $0x520] sm:$0xf]  ;;  %v828_v45 = vmul.f32 %v188_v42, %v2014_v19  ;;  %v829_v46 = vmul.f32 %v189_v43, %v2016_v20  ;;  %v191_v48 = vld [vmem:[%s6473_s0 + $0x528] sm:$0xff] }
  0x52   :  { %1454 = vst [vmem:[%s6475_s2 + $0x4a0] sm:$0xff] %v814_v11  ;;  %1455 = vst [vmem:[%s6475_s2 + $0x4a8] sm:$0xf] %v815_v12  ;;  %v830_v47 = vmul.f32 %v190_v44, %v2029_v26  ;;  %v192_v49 = vld [vmem:[%s6473_s0 + $0x530] sm:$0xff]  ;;  %v193_v50 = vld [vmem:[%s6473_s0 + $0x538] sm:$0xff]  ;;  %v831_v51 = vmul.f32 %v191_v48, %v2001_v13 }
  0x53   :  { %1456 = vst [vmem:[%s6475_s2 + $0x4b0] sm:$0xff] %v816_v18  ;;  %1457 = vst [vmem:[%s6475_s2 + $0x4b8] sm:$0xff] %v817_v21  ;;  %v832_v52 = vmul.f32 %v192_v49, %v2003_v14  ;;  %v833_v53 = vmul.f32 %v193_v50, %v2014_v19  ;;  %v194_v54 = vld [vmem:[%s6473_s0 + $0x540] sm:$0xff]  ;;  %v195_v55 = vld [vmem:[%s6473_s0 + $0x548] sm:$0xf] }
  0x54   :  { %1458 = vst [vmem:[%s6475_s2 + $0x4c0] sm:$0xff] %v818_v22  ;;  %1459 = vst [vmem:[%s6475_s2 + $0x4c8] sm:$0xff] %v819_v27  ;;  %v196_v56 = vld [vmem:[%s6473_s0 + $0x550] sm:$0xff]  ;;  %v834_v57 = vmul.f32 %v194_v54, %v2016_v20  ;;  %v835_v58 = vmul.f32 %v195_v55, %v2029_v26  ;;  %v197_v60 = vld [vmem:[%s6473_s0 + $0x558] sm:$0xff] }
  0x55   :  { %1460 = vst [vmem:[%s6475_s2 + $0x4d0] sm:$0xf] %v820_v28  ;;  %1461 = vst [vmem:[%s6475_s2 + $0x4d8] sm:$0xff] %v821_v29  ;;  %v836_v59 = vmul.f32 %v196_v56, %v2001_v13  ;;  %v198_v61 = vld [vmem:[%s6473_s0 + $0x560] sm:$0xff]  ;;  %v199_v62 = vld [vmem:[%s6473_s0 + $0x568] sm:$0xff]  ;;  %v837_v63 = vmul.f32 %v197_v60, %v2003_v14 }
  0x56   :  { %1462 = vst [vmem:[%s6475_s2 + $0x4e0] sm:$0xff] %v822_v33  ;;  %1463 = vst [vmem:[%s6475_s2 + $0x4e8] sm:$0xff] %v823_v34  ;;  %v838_v0 = vmul.f32 %v198_v61, %v2014_v19  ;;  %v839_v1 = vmul.f32 %v199_v62, %v2016_v20  ;;  %v200_v2 = vld [vmem:[%s6473_s0 + $0x570] sm:$0xf]  ;;  %v201_v3 = vld [vmem:[%s6473_s0 + $0x578] sm:$0xff] }
  0x57   :  { %1464 = vst [vmem:[%s6475_s2 + $0x4f0] sm:$0xff] %v824_v35  ;;  %1465 = vst [vmem:[%s6475_s2 + $0x4f8] sm:$0xf] %v825_v39  ;;  %v202_v4 = vld [vmem:[%s6473_s0 + $0x580] sm:$0xff]  ;;  %v840_v5 = vmul.f32 %v200_v2, %v2029_v26  ;;  %v841_v6 = vmul.f32 %v201_v3, %v2001_v13  ;;  %v203_v8 = vld [vmem:[%s6473_s0 + $0x588] sm:$0xff] }
  0x58   :  { %1466 = vst [vmem:[%s6475_s2 + $0x500] sm:$0xff] %v826_v40  ;;  %1467 = vst [vmem:[%s6475_s2 + $0x508] sm:$0xff] %v827_v41  ;;  %v842_v7 = vmul.f32 %v202_v4, %v2003_v14  ;;  %v204_v9 = vld [vmem:[%s6473_s0 + $0x590] sm:$0xff]  ;;  %v205_v10 = vld [vmem:[%s6473_s0 + $0x598] sm:$0xf]  ;;  %v843_v11 = vmul.f32 %v203_v8, %v2014_v19 }
  0x59   :  { %1468 = vst [vmem:[%s6475_s2 + $0x510] sm:$0xff] %v828_v45  ;;  %1469 = vst [vmem:[%s6475_s2 + $0x518] sm:$0xff] %v829_v46  ;;  %v844_v12 = vmul.f32 %v204_v9, %v2016_v20  ;;  %v845_v15 = vmul.f32 %v205_v10, %v2029_v26  ;;  %v206_v16 = vld [vmem:[%s6473_s0 + $0x5a0] sm:$0xff]  ;;  %v207_v17 = vld [vmem:[%s6473_s0 + $0x5a8] sm:$0xff] }
  0x5a   :  { %1470 = vst [vmem:[%s6475_s2 + $0x520] sm:$0xf] %v830_v47  ;;  %1471 = vst [vmem:[%s6475_s2 + $0x528] sm:$0xff] %v831_v51  ;;  %v208_v18 = vld [vmem:[%s6473_s0 + $0x5b0] sm:$0xff]  ;;  %v846_v21 = vmul.f32 %v206_v16, %v2001_v13  ;;  %v847_v22 = vmul.f32 %v207_v17, %v2003_v14  ;;  %v209_v24 = vld [vmem:[%s6473_s0 + $0x5b8] sm:$0xff] }
  0x5b   :  { %1472 = vst [vmem:[%s6475_s2 + $0x530] sm:$0xff] %v832_v52  ;;  %1473 = vst [vmem:[%s6475_s2 + $0x538] sm:$0xff] %v833_v53  ;;  %v848_v23 = vmul.f32 %v208_v18, %v2014_v19  ;;  %v210_v25 = vld [vmem:[%s6473_s0 + $0x5c0] sm:$0xf]  ;;  %v211_v27 = vld [vmem:[%s6473_s0 + $0x5c8] sm:$0xff]  ;;  %v849_v28 = vmul.f32 %v209_v24, %v2016_v20 }
  0x5c   :  { %1474 = vst [vmem:[%s6475_s2 + $0x540] sm:$0xff] %v834_v57  ;;  %1475 = vst [vmem:[%s6475_s2 + $0x548] sm:$0xf] %v835_v58  ;;  %v850_v29 = vmul.f32 %v210_v25, %v2029_v26  ;;  %v851_v30 = vmul.f32 %v211_v27, %v2001_v13  ;;  %v212_v31 = vld [vmem:[%s6473_s0 + $0x5d0] sm:$0xff]  ;;  %v213_v32 = vld [vmem:[%s6473_s0 + $0x5d8] sm:$0xff] }
  0x5d   :  { %1476 = vst [vmem:[%s6475_s2 + $0x550] sm:$0xff] %v836_v59  ;;  %1477 = vst [vmem:[%s6475_s2 + $0x558] sm:$0xff] %v837_v63  ;;  %v214_v33 = vld [vmem:[%s6473_s0 + $0x5e0] sm:$0xff]  ;;  %v852_v34 = vmul.f32 %v212_v31, %v2003_v14  ;;  %v853_v35 = vmul.f32 %v213_v32, %v2014_v19  ;;  %v215_v37 = vld [vmem:[%s6473_s0 + $0x5e8] sm:$0xf] }
  0x5e   :  { %1478 = vst [vmem:[%s6475_s2 + $0x560] sm:$0xff] %v838_v0  ;;  %1479 = vst [vmem:[%s6475_s2 + $0x568] sm:$0xff] %v839_v1  ;;  %v854_v36 = vmul.f32 %v214_v33, %v2016_v20  ;;  %v216_v38 = vld [vmem:[%s6473_s0 + $0x5f0] sm:$0xff]  ;;  %v217_v39 = vld [vmem:[%s6473_s0 + $0x5f8] sm:$0xff]  ;;  %v855_v40 = vmul.f32 %v215_v37, %v2029_v26 }
  0x5f   :  { %1480 = vst [vmem:[%s6475_s2 + $0x570] sm:$0xf] %v840_v5  ;;  %1481 = vst [vmem:[%s6475_s2 + $0x578] sm:$0xff] %v841_v6  ;;  %v856_v41 = vmul.f32 %v216_v38, %v2001_v13  ;;  %v857_v42 = vmul.f32 %v217_v39, %v2003_v14  ;;  %v218_v43 = vld [vmem:[%s6473_s0 + $0x600] sm:$0xff]  ;;  %v219_v44 = vld [vmem:[%s6473_s0 + $0x608] sm:$0xff] }
  0x60   :  { %1482 = vst [vmem:[%s6475_s2 + $0x580] sm:$0xff] %v842_v7  ;;  %1483 = vst [vmem:[%s6475_s2 + $0x588] sm:$0xff] %v843_v11  ;;  %v220_v45 = vld [vmem:[%s6473_s0 + $0x610] sm:$0xf]  ;;  %v858_v46 = vmul.f32 %v218_v43, %v2014_v19  ;;  %v859_v47 = vmul.f32 %v219_v44, %v2016_v20  ;;  %v221_v49 = vld [vmem:[%s6473_s0 + $0x618] sm:$0xff] }
  0x61   :  { %1484 = vst [vmem:[%s6475_s2 + $0x590] sm:$0xff] %v844_v12  ;;  %1485 = vst [vmem:[%s6475_s2 + $0x598] sm:$0xf] %v845_v15  ;;  %v860_v48 = vmul.f32 %v220_v45, %v2029_v26  ;;  %v222_v50 = vld [vmem:[%s6473_s0 + $0x620] sm:$0xff]  ;;  %v223_v51 = vld [vmem:[%s6473_s0 + $0x628] sm:$0xff]  ;;  %v861_v52 = vmul.f32 %v221_v49, %v2001_v13 }
  0x62   :  { %1486 = vst [vmem:[%s6475_s2 + $0x5a0] sm:$0xff] %v846_v21  ;;  %1487 = vst [vmem:[%s6475_s2 + $0x5a8] sm:$0xff] %v847_v22  ;;  %v862_v53 = vmul.f32 %v222_v50, %v2003_v14  ;;  %v863_v54 = vmul.f32 %v223_v51, %v2014_v19  ;;  %v224_v55 = vld [vmem:[%s6473_s0 + $0x630] sm:$0xff]  ;;  %v225_v56 = vld [vmem:[%s6473_s0 + $0x638] sm:$0xf] }
  0x63   :  { %1488 = vst [vmem:[%s6475_s2 + $0x5b0] sm:$0xff] %v848_v23  ;;  %1489 = vst [vmem:[%s6475_s2 + $0x5b8] sm:$0xff] %v849_v28  ;;  %v226_v57 = vld [vmem:[%s6473_s0 + $0x640] sm:$0xff]  ;;  %v864_v58 = vmul.f32 %v224_v55, %v2016_v20  ;;  %v865_v59 = vmul.f32 %v225_v56, %v2029_v26  ;;  %v227_v61 = vld [vmem:[%s6473_s0 + $0x648] sm:$0xff] }
  0x64   :  { %1490 = vst [vmem:[%s6475_s2 + $0x5c0] sm:$0xf] %v850_v29  ;;  %1491 = vst [vmem:[%s6475_s2 + $0x5c8] sm:$0xff] %v851_v30  ;;  %v866_v60 = vmul.f32 %v226_v57, %v2001_v13  ;;  %v228_v62 = vld [vmem:[%s6473_s0 + $0x650] sm:$0xff]  ;;  %v229_v63 = vld [vmem:[%s6473_s0 + $0x658] sm:$0xff]  ;;  %v867_v0 = vmul.f32 %v227_v61, %v2003_v14 }
  0x65   :  { %1492 = vst [vmem:[%s6475_s2 + $0x5d0] sm:$0xff] %v852_v34  ;;  %1493 = vst [vmem:[%s6475_s2 + $0x5d8] sm:$0xff] %v853_v35  ;;  %v868_v1 = vmul.f32 %v228_v62, %v2014_v19  ;;  %v869_v2 = vmul.f32 %v229_v63, %v2016_v20  ;;  %v230_v3 = vld [vmem:[%s6473_s0 + $0x660] sm:$0xf]  ;;  %v231_v4 = vld [vmem:[%s6473_s0 + $0x668] sm:$0xff] }
  0x66   :  { %1494 = vst [vmem:[%s6475_s2 + $0x5e0] sm:$0xff] %v854_v36  ;;  %1495 = vst [vmem:[%s6475_s2 + $0x5e8] sm:$0xf] %v855_v40  ;;  %v232_v5 = vld [vmem:[%s6473_s0 + $0x670] sm:$0xff]  ;;  %v870_v6 = vmul.f32 %v230_v3, %v2029_v26  ;;  %v871_v7 = vmul.f32 %v231_v4, %v2001_v13  ;;  %v233_v9 = vld [vmem:[%s6473_s0 + $0x678] sm:$0xff] }
  0x67   :  { %1496 = vst [vmem:[%s6475_s2 + $0x5f0] sm:$0xff] %v856_v41  ;;  %1497 = vst [vmem:[%s6475_s2 + $0x5f8] sm:$0xff] %v857_v42  ;;  %v872_v8 = vmul.f32 %v232_v5, %v2003_v14  ;;  %v234_v10 = vld [vmem:[%s6473_s0 + $0x680] sm:$0xff]  ;;  %v235_v11 = vld [vmem:[%s6473_s0 + $0x688] sm:$0xf]  ;;  %v873_v12 = vmul.f32 %v233_v9, %v2014_v19 }
  0x68   :  { %1498 = vst [vmem:[%s6475_s2 + $0x600] sm:$0xff] %v858_v46  ;;  %1499 = vst [vmem:[%s6475_s2 + $0x608] sm:$0xff] %v859_v47  ;;  %v874_v15 = vmul.f32 %v234_v10, %v2016_v20  ;;  %v875_v16 = vmul.f32 %v235_v11, %v2029_v26  ;;  %v236_v17 = vld [vmem:[%s6473_s0 + $0x690] sm:$0xff]  ;;  %v237_v18 = vld [vmem:[%s6473_s0 + $0x698] sm:$0xff] }
  0x69   :  { %1500 = vst [vmem:[%s6475_s2 + $0x610] sm:$0xf] %v860_v48  ;;  %1501 = vst [vmem:[%s6475_s2 + $0x618] sm:$0xff] %v861_v52  ;;  %v238_v21 = vld [vmem:[%s6473_s0 + $0x6a0] sm:$0xff]  ;;  %v876_v22 = vmul.f32 %v236_v17, %v2001_v13  ;;  %v877_v23 = vmul.f32 %v237_v18, %v2003_v14  ;;  %v239_v25 = vld [vmem:[%s6473_s0 + $0x6a8] sm:$0xff] }
  0x6a   :  { %1502 = vst [vmem:[%s6475_s2 + $0x620] sm:$0xff] %v862_v53  ;;  %1503 = vst [vmem:[%s6475_s2 + $0x628] sm:$0xff] %v863_v54  ;;  %v878_v24 = vmul.f32 %v238_v21, %v2014_v19  ;;  %v240_v27 = vld [vmem:[%s6473_s0 + $0x6b0] sm:$0xf]  ;;  %v241_v28 = vld [vmem:[%s6473_s0 + $0x6b8] sm:$0xff]  ;;  %v879_v29 = vmul.f32 %v239_v25, %v2016_v20 }
  0x6b   :  { %1504 = vst [vmem:[%s6475_s2 + $0x630] sm:$0xff] %v864_v58  ;;  %1505 = vst [vmem:[%s6475_s2 + $0x638] sm:$0xf] %v865_v59  ;;  %v880_v30 = vmul.f32 %v240_v27, %v2029_v26  ;;  %v881_v31 = vmul.f32 %v241_v28, %v2001_v13  ;;  %v242_v32 = vld [vmem:[%s6473_s0 + $0x6c0] sm:$0xff]  ;;  %v243_v33 = vld [vmem:[%s6473_s0 + $0x6c8] sm:$0xff] }
  0x6c   :  { %1506 = vst [vmem:[%s6475_s2 + $0x640] sm:$0xff] %v866_v60  ;;  %1507 = vst [vmem:[%s6475_s2 + $0x648] sm:$0xff] %v867_v0  ;;  %v244_v34 = vld [vmem:[%s6473_s0 + $0x6d0] sm:$0xff]  ;;  %v882_v35 = vmul.f32 %v242_v32, %v2003_v14  ;;  %v883_v36 = vmul.f32 %v243_v33, %v2014_v19  ;;  %v245_v38 = vld [vmem:[%s6473_s0 + $0x6d8] sm:$0xf] }
  0x6d   :  { %1508 = vst [vmem:[%s6475_s2 + $0x650] sm:$0xff] %v868_v1  ;;  %1509 = vst [vmem:[%s6475_s2 + $0x658] sm:$0xff] %v869_v2  ;;  %v884_v37 = vmul.f32 %v244_v34, %v2016_v20  ;;  %v246_v39 = vld [vmem:[%s6473_s0 + $0x6e0] sm:$0xff]  ;;  %v247_v40 = vld [vmem:[%s6473_s0 + $0x6e8] sm:$0xff]  ;;  %v885_v41 = vmul.f32 %v245_v38, %v2029_v26 }
  0x6e   :  { %1510 = vst [vmem:[%s6475_s2 + $0x660] sm:$0xf] %v870_v6  ;;  %1511 = vst [vmem:[%s6475_s2 + $0x668] sm:$0xff] %v871_v7  ;;  %v886_v42 = vmul.f32 %v246_v39, %v2001_v13  ;;  %v887_v43 = vmul.f32 %v247_v40, %v2003_v14  ;;  %v248_v44 = vld [vmem:[%s6473_s0 + $0x6f0] sm:$0xff]  ;;  %v249_v45 = vld [vmem:[%s6473_s0 + $0x6f8] sm:$0xff] }
  0x6f   :  { %1512 = vst [vmem:[%s6475_s2 + $0x670] sm:$0xff] %v872_v8  ;;  %1513 = vst [vmem:[%s6475_s2 + $0x678] sm:$0xff] %v873_v12  ;;  %v250_v46 = vld [vmem:[%s6473_s0 + $0x700] sm:$0xf]  ;;  %v888_v47 = vmul.f32 %v248_v44, %v2014_v19  ;;  %v889_v48 = vmul.f32 %v249_v45, %v2016_v20  ;;  %v251_v50 = vld [vmem:[%s6473_s0 + $0x708] sm:$0xff] }
  0x70   :  { %1514 = vst [vmem:[%s6475_s2 + $0x680] sm:$0xff] %v874_v15  ;;  %1515 = vst [vmem:[%s6475_s2 + $0x688] sm:$0xf] %v875_v16  ;;  %v890_v49 = vmul.f32 %v250_v46, %v2029_v26  ;;  %v252_v51 = vld [vmem:[%s6473_s0 + $0x710] sm:$0xff]  ;;  %v253_v52 = vld [vmem:[%s6473_s0 + $0x718] sm:$0xff]  ;;  %v891_v53 = vmul.f32 %v251_v50, %v2001_v13 }
  0x71   :  { %1516 = vst [vmem:[%s6475_s2 + $0x690] sm:$0xff] %v876_v22  ;;  %1517 = vst [vmem:[%s6475_s2 + $0x698] sm:$0xff] %v877_v23  ;;  %v892_v54 = vmul.f32 %v252_v51, %v2003_v14  ;;  %v893_v55 = vmul.f32 %v253_v52, %v2014_v19  ;;  %v254_v56 = vld [vmem:[%s6473_s0 + $0x720] sm:$0xff]  ;;  %v255_v57 = vld [vmem:[%s6473_s0 + $0x728] sm:$0xf] }
  0x72   :  { %1518 = vst [vmem:[%s6475_s2 + $0x6a0] sm:$0xff] %v878_v24  ;;  %1519 = vst [vmem:[%s6475_s2 + $0x6a8] sm:$0xff] %v879_v29  ;;  %v256_v58 = vld [vmem:[%s6473_s0 + $0x730] sm:$0xff]  ;;  %v894_v59 = vmul.f32 %v254_v56, %v2016_v20  ;;  %v895_v60 = vmul.f32 %v255_v57, %v2029_v26  ;;  %v257_v62 = vld [vmem:[%s6473_s0 + $0x738] sm:$0xff] }
  0x73   :  { %1520 = vst [vmem:[%s6475_s2 + $0x6b0] sm:$0xf] %v880_v30  ;;  %1521 = vst [vmem:[%s6475_s2 + $0x6b8] sm:$0xff] %v881_v31  ;;  %v896_v61 = vmul.f32 %v256_v58, %v2001_v13  ;;  %v258_v63 = vld [vmem:[%s6473_s0 + $0x740] sm:$0xff]  ;;  %v259_v0 = vld [vmem:[%s6473_s0 + $0x748] sm:$0xff]  ;;  %v897_v1 = vmul.f32 %v257_v62, %v2003_v14 }
  0x74   :  { %1522 = vst [vmem:[%s6475_s2 + $0x6c0] sm:$0xff] %v882_v35  ;;  %1523 = vst [vmem:[%s6475_s2 + $0x6c8] sm:$0xff] %v883_v36  ;;  %v898_v2 = vmul.f32 %v258_v63, %v2014_v19  ;;  %v899_v3 = vmul.f32 %v259_v0, %v2016_v20  ;;  %v260_v4 = vld [vmem:[%s6473_s0 + $0x750] sm:$0xf]  ;;  %v261_v5 = vld [vmem:[%s6473_s0 + $0x758] sm:$0xff] }
  0x75   :  { %1524 = vst [vmem:[%s6475_s2 + $0x6d0] sm:$0xff] %v884_v37  ;;  %1525 = vst [vmem:[%s6475_s2 + $0x6d8] sm:$0xf] %v885_v41  ;;  %v262_v6 = vld [vmem:[%s6473_s0 + $0x760] sm:$0xff]  ;;  %v900_v7 = vmul.f32 %v260_v4, %v2029_v26  ;;  %v901_v8 = vmul.f32 %v261_v5, %v2001_v13  ;;  %v263_v10 = vld [vmem:[%s6473_s0 + $0x768] sm:$0xff] }
  0x76   :  { %1526 = vst [vmem:[%s6475_s2 + $0x6e0] sm:$0xff] %v886_v42  ;;  %1527 = vst [vmem:[%s6475_s2 + $0x6e8] sm:$0xff] %v887_v43  ;;  %v902_v9 = vmul.f32 %v262_v6, %v2003_v14  ;;  %v264_v11 = vld [vmem:[%s6473_s0 + $0x770] sm:$0xff]  ;;  %v265_v12 = vld [vmem:[%s6473_s0 + $0x778] sm:$0xf]  ;;  %v903_v15 = vmul.f32 %v263_v10, %v2014_v19 }
  0x77   :  { %1528 = vst [vmem:[%s6475_s2 + $0x6f0] sm:$0xff] %v888_v47  ;;  %1529 = vst [vmem:[%s6475_s2 + $0x6f8] sm:$0xff] %v889_v48  ;;  %v904_v16 = vmul.f32 %v264_v11, %v2016_v20  ;;  %v905_v17 = vmul.f32 %v265_v12, %v2029_v26  ;;  %v266_v18 = vld [vmem:[%s6473_s0 + $0x780] sm:$0xff]  ;;  %v267_v21 = vld [vmem:[%s6473_s0 + $0x788] sm:$0xff] }
  0x78   :  { %1530 = vst [vmem:[%s6475_s2 + $0x700] sm:$0xf] %v890_v49  ;;  %1531 = vst [vmem:[%s6475_s2 + $0x708] sm:$0xff] %v891_v53  ;;  %v268_v22 = vld [vmem:[%s6473_s0 + $0x790] sm:$0xff]  ;;  %v906_v23 = vmul.f32 %v266_v18, %v2001_v13  ;;  %v907_v24 = vmul.f32 %v267_v21, %v2003_v14  ;;  %v269_v27 = vld [vmem:[%s6473_s0 + $0x798] sm:$0xff] }
  0x79   :  { %1532 = vst [vmem:[%s6475_s2 + $0x710] sm:$0xff] %v892_v54  ;;  %1533 = vst [vmem:[%s6475_s2 + $0x718] sm:$0xff] %v893_v55  ;;  %v908_v25 = vmul.f32 %v268_v22, %v2014_v19  ;;  %v270_v28 = vld [vmem:[%s6473_s0 + $0x7a0] sm:$0xf]  ;;  %v271_v29 = vld [vmem:[%s6473_s0 + $0x7a8] sm:$0xff]  ;;  %v909_v30 = vmul.f32 %v269_v27, %v2016_v20 }
  0x7a   :  { %1534 = vst [vmem:[%s6475_s2 + $0x720] sm:$0xff] %v894_v59  ;;  %1535 = vst [vmem:[%s6475_s2 + $0x728] sm:$0xf] %v895_v60  ;;  %v910_v31 = vmul.f32 %v270_v28, %v2029_v26  ;;  %v911_v32 = vmul.f32 %v271_v29, %v2001_v13  ;;  %v272_v33 = vld [vmem:[%s6473_s0 + $0x7b0] sm:$0xff]  ;;  %v273_v34 = vld [vmem:[%s6473_s0 + $0x7b8] sm:$0xff] }
  0x7b   :  { %1536 = vst [vmem:[%s6475_s2 + $0x730] sm:$0xff] %v896_v61  ;;  %1537 = vst [vmem:[%s6475_s2 + $0x738] sm:$0xff] %v897_v1  ;;  %v274_v35 = vld [vmem:[%s6473_s0 + $0x7c0] sm:$0xff]  ;;  %v912_v36 = vmul.f32 %v272_v33, %v2003_v14  ;;  %v913_v37 = vmul.f32 %v273_v34, %v2014_v19  ;;  %v275_v39 = vld [vmem:[%s6473_s0 + $0x7c8] sm:$0xf] }
  0x7c   :  { %1538 = vst [vmem:[%s6475_s2 + $0x740] sm:$0xff] %v898_v2  ;;  %1539 = vst [vmem:[%s6475_s2 + $0x748] sm:$0xff] %v899_v3  ;;  %v914_v38 = vmul.f32 %v274_v35, %v2016_v20  ;;  %v276_v40 = vld [vmem:[%s6473_s0 + $0x7d0] sm:$0xff]  ;;  %v277_v41 = vld [vmem:[%s6473_s0 + $0x7d8] sm:$0xff]  ;;  %v915_v42 = vmul.f32 %v275_v39, %v2029_v26 }
  0x7d   :  { %1540 = vst [vmem:[%s6475_s2 + $0x750] sm:$0xf] %v900_v7  ;;  %1541 = vst [vmem:[%s6475_s2 + $0x758] sm:$0xff] %v901_v8  ;;  %v916_v43 = vmul.f32 %v276_v40, %v2001_v13  ;;  %v917_v44 = vmul.f32 %v277_v41, %v2003_v14  ;;  %v278_v45 = vld [vmem:[%s6473_s0 + $0x7e0] sm:$0xff]  ;;  %v279_v46 = vld [vmem:[%s6473_s0 + $0x7e8] sm:$0xff] }
  0x7e   :  { %1542 = vst [vmem:[%s6475_s2 + $0x760] sm:$0xff] %v902_v9  ;;  %1543 = vst [vmem:[%s6475_s2 + $0x768] sm:$0xff] %v903_v15  ;;  %v280_v47 = vld [vmem:[%s6473_s0 + $0x7f0] sm:$0xf]  ;;  %v918_v48 = vmul.f32 %v278_v45, %v2014_v19  ;;  %v919_v49 = vmul.f32 %v279_v46, %v2016_v20  ;;  %v281_v51 = vld [vmem:[%s6473_s0 + $0x7f8] sm:$0xff] }
  0x7f   :  { %1544 = vst [vmem:[%s6475_s2 + $0x770] sm:$0xff] %v904_v16  ;;  %1545 = vst [vmem:[%s6475_s2 + $0x778] sm:$0xf] %v905_v17  ;;  %v920_v50 = vmul.f32 %v280_v47, %v2029_v26  ;;  %v282_v52 = vld [vmem:[%s6473_s0 + $0x800] sm:$0xff]  ;;  %v283_v53 = vld [vmem:[%s6473_s0 + $0x808] sm:$0xff]  ;;  %v921_v54 = vmul.f32 %v281_v51, %v2001_v13 }
  0x80   :  { %1546 = vst [vmem:[%s6475_s2 + $0x780] sm:$0xff] %v906_v23  ;;  %1547 = vst [vmem:[%s6475_s2 + $0x788] sm:$0xff] %v907_v24  ;;  %v922_v55 = vmul.f32 %v282_v52, %v2003_v14  ;;  %v923_v56 = vmul.f32 %v283_v53, %v2014_v19  ;;  %v284_v57 = vld [vmem:[%s6473_s0 + $0x810] sm:$0xff]  ;;  %v285_v58 = vld [vmem:[%s6473_s0 + $0x818] sm:$0xf] }
  0x81   :  { %1548 = vst [vmem:[%s6475_s2 + $0x790] sm:$0xff] %v908_v25  ;;  %1549 = vst [vmem:[%s6475_s2 + $0x798] sm:$0xff] %v909_v30  ;;  %v286_v59 = vld [vmem:[%s6473_s0 + $0x820] sm:$0xff]  ;;  %v924_v60 = vmul.f32 %v284_v57, %v2016_v20  ;;  %v925_v61 = vmul.f32 %v285_v58, %v2029_v26  ;;  %v287_v63 = vld [vmem:[%s6473_s0 + $0x828] sm:$0xff] }
  0x82   :  { %1550 = vst [vmem:[%s6475_s2 + $0x7a0] sm:$0xf] %v910_v31  ;;  %1551 = vst [vmem:[%s6475_s2 + $0x7a8] sm:$0xff] %v911_v32  ;;  %v926_v62 = vmul.f32 %v286_v59, %v2001_v13  ;;  %v288_v0 = vld [vmem:[%s6473_s0 + $0x830] sm:$0xff]  ;;  %v289_v1 = vld [vmem:[%s6473_s0 + $0x838] sm:$0xff]  ;;  %v927_v2 = vmul.f32 %v287_v63, %v2003_v14 }
  0x83   :  { %1552 = vst [vmem:[%s6475_s2 + $0x7b0] sm:$0xff] %v912_v36  ;;  %1553 = vst [vmem:[%s6475_s2 + $0x7b8] sm:$0xff] %v913_v37  ;;  %v928_v3 = vmul.f32 %v288_v0, %v2014_v19  ;;  %v929_v4 = vmul.f32 %v289_v1, %v2016_v20  ;;  %v290_v5 = vld [vmem:[%s6473_s0 + $0x840] sm:$0xf]  ;;  %v291_v6 = vld [vmem:[%s6473_s0 + $0x848] sm:$0xff] }
  0x84   :  { %1554 = vst [vmem:[%s6475_s2 + $0x7c0] sm:$0xff] %v914_v38  ;;  %1555 = vst [vmem:[%s6475_s2 + $0x7c8] sm:$0xf] %v915_v42  ;;  %v292_v7 = vld [vmem:[%s6473_s0 + $0x850] sm:$0xff]  ;;  %v930_v8 = vmul.f32 %v290_v5, %v2029_v26  ;;  %v931_v9 = vmul.f32 %v291_v6, %v2001_v13  ;;  %v293_v11 = vld [vmem:[%s6473_s0 + $0x858] sm:$0xff] }
  0x85   :  { %1556 = vst [vmem:[%s6475_s2 + $0x7d0] sm:$0xff] %v916_v43  ;;  %1557 = vst [vmem:[%s6475_s2 + $0x7d8] sm:$0xff] %v917_v44  ;;  %v932_v10 = vmul.f32 %v292_v7, %v2003_v14  ;;  %v294_v12 = vld [vmem:[%s6473_s0 + $0x860] sm:$0xff]  ;;  %v295_v15 = vld [vmem:[%s6473_s0 + $0x868] sm:$0xf]  ;;  %v933_v16 = vmul.f32 %v293_v11, %v2014_v19 }
  0x86   :  { %1558 = vst [vmem:[%s6475_s2 + $0x7e0] sm:$0xff] %v918_v48  ;;  %1559 = vst [vmem:[%s6475_s2 + $0x7e8] sm:$0xff] %v919_v49  ;;  %v934_v17 = vmul.f32 %v294_v12, %v2016_v20  ;;  %v935_v18 = vmul.f32 %v295_v15, %v2029_v26  ;;  %v296_v21 = vld [vmem:[%s6473_s0 + $0x870] sm:$0xff]  ;;  %v297_v22 = vld [vmem:[%s6473_s0 + $0x878] sm:$0xff] }
  0x87   :  { %1560 = vst [vmem:[%s6475_s2 + $0x7f0] sm:$0xf] %v920_v50  ;;  %1561 = vst [vmem:[%s6475_s2 + $0x7f8] sm:$0xff] %v921_v54  ;;  %v298_v23 = vld [vmem:[%s6473_s0 + $0x880] sm:$0xff]  ;;  %v936_v24 = vmul.f32 %v296_v21, %v2001_v13  ;;  %v937_v25 = vmul.f32 %v297_v22, %v2003_v14  ;;  %v299_v28 = vld [vmem:[%s6473_s0 + $0x888] sm:$0xff] }
  0x88   :  { %1562 = vst [vmem:[%s6475_s2 + $0x800] sm:$0xff] %v922_v55  ;;  %1563 = vst [vmem:[%s6475_s2 + $0x808] sm:$0xff] %v923_v56  ;;  %v938_v27 = vmul.f32 %v298_v23, %v2014_v19  ;;  %v300_v29 = vld [vmem:[%s6473_s0 + $0x890] sm:$0xf]  ;;  %v301_v30 = vld [vmem:[%s6473_s0 + $0x898] sm:$0xff]  ;;  %v939_v31 = vmul.f32 %v299_v28, %v2016_v20 }
  0x89   :  { %1564 = vst [vmem:[%s6475_s2 + $0x810] sm:$0xff] %v924_v60  ;;  %1565 = vst [vmem:[%s6475_s2 + $0x818] sm:$0xf] %v925_v61  ;;  %v940_v32 = vmul.f32 %v300_v29, %v2029_v26  ;;  %v941_v33 = vmul.f32 %v301_v30, %v2001_v13  ;;  %v302_v34 = vld [vmem:[%s6473_s0 + $0x8a0] sm:$0xff]  ;;  %v303_v35 = vld [vmem:[%s6473_s0 + $0x8a8] sm:$0xff] }
  0x8a   :  { %1566 = vst [vmem:[%s6475_s2 + $0x820] sm:$0xff] %v926_v62  ;;  %1567 = vst [vmem:[%s6475_s2 + $0x828] sm:$0xff] %v927_v2  ;;  %v304_v36 = vld [vmem:[%s6473_s0 + $0x8b0] sm:$0xff]  ;;  %v942_v37 = vmul.f32 %v302_v34, %v2003_v14  ;;  %v943_v38 = vmul.f32 %v303_v35, %v2014_v19  ;;  %v305_v40 = vld [vmem:[%s6473_s0 + $0x8b8] sm:$0xf] }
  0x8b   :  { %1568 = vst [vmem:[%s6475_s2 + $0x830] sm:$0xff] %v928_v3  ;;  %1569 = vst [vmem:[%s6475_s2 + $0x838] sm:$0xff] %v929_v4  ;;  %v944_v39 = vmul.f32 %v304_v36, %v2016_v20  ;;  %v306_v41 = vld [vmem:[%s6473_s0 + $0x8c0] sm:$0xff]  ;;  %v307_v42 = vld [vmem:[%s6473_s0 + $0x8c8] sm:$0xff]  ;;  %v945_v43 = vmul.f32 %v305_v40, %v2029_v26 }
  0x8c   :  { %1570 = vst [vmem:[%s6475_s2 + $0x840] sm:$0xf] %v930_v8  ;;  %1571 = vst [vmem:[%s6475_s2 + $0x848] sm:$0xff] %v931_v9  ;;  %v946_v44 = vmul.f32 %v306_v41, %v2001_v13  ;;  %v947_v45 = vmul.f32 %v307_v42, %v2003_v14  ;;  %v308_v46 = vld [vmem:[%s6473_s0 + $0x8d0] sm:$0xff]  ;;  %v309_v47 = vld [vmem:[%s6473_s0 + $0x8d8] sm:$0xff] }
  0x8d   :  { %1572 = vst [vmem:[%s6475_s2 + $0x850] sm:$0xff] %v932_v10  ;;  %1573 = vst [vmem:[%s6475_s2 + $0x858] sm:$0xff] %v933_v16  ;;  %v310_v48 = vld [vmem:[%s6473_s0 + $0x8e0] sm:$0xf]  ;;  %v948_v49 = vmul.f32 %v308_v46, %v2014_v19  ;;  %v949_v50 = vmul.f32 %v309_v47, %v2016_v20  ;;  %v311_v52 = vld [vmem:[%s6473_s0 + $0x8e8] sm:$0xff] }
  0x8e   :  { %1574 = vst [vmem:[%s6475_s2 + $0x860] sm:$0xff] %v934_v17  ;;  %1575 = vst [vmem:[%s6475_s2 + $0x868] sm:$0xf] %v935_v18  ;;  %v950_v51 = vmul.f32 %v310_v48, %v2029_v26  ;;  %v312_v53 = vld [vmem:[%s6473_s0 + $0x8f0] sm:$0xff]  ;;  %v313_v54 = vld [vmem:[%s6473_s0 + $0x8f8] sm:$0xff]  ;;  %v951_v55 = vmul.f32 %v311_v52, %v2001_v13 }
  0x8f   :  { %1576 = vst [vmem:[%s6475_s2 + $0x870] sm:$0xff] %v936_v24  ;;  %1577 = vst [vmem:[%s6475_s2 + $0x878] sm:$0xff] %v937_v25  ;;  %v952_v56 = vmul.f32 %v312_v53, %v2003_v14  ;;  %v953_v57 = vmul.f32 %v313_v54, %v2014_v19  ;;  %v314_v58 = vld [vmem:[%s6473_s0 + $0x900] sm:$0xff]  ;;  %v315_v59 = vld [vmem:[%s6473_s0 + $0x908] sm:$0xf] }
  0x90   :  { %1578 = vst [vmem:[%s6475_s2 + $0x880] sm:$0xff] %v938_v27  ;;  %1579 = vst [vmem:[%s6475_s2 + $0x888] sm:$0xff] %v939_v31  ;;  %v316_v60 = vld [vmem:[%s6473_s0 + $0x910] sm:$0xff]  ;;  %v954_v61 = vmul.f32 %v314_v58, %v2016_v20  ;;  %v955_v62 = vmul.f32 %v315_v59, %v2029_v26  ;;  %v317_v0 = vld [vmem:[%s6473_s0 + $0x918] sm:$0xff] }
  0x91   :  { %1580 = vst [vmem:[%s6475_s2 + $0x890] sm:$0xf] %v940_v32  ;;  %1581 = vst [vmem:[%s6475_s2 + $0x898] sm:$0xff] %v941_v33  ;;  %v956_v63 = vmul.f32 %v316_v60, %v2001_v13  ;;  %v318_v1 = vld [vmem:[%s6473_s0 + $0x920] sm:$0xff]  ;;  %v319_v2 = vld [vmem:[%s6473_s0 + $0x928] sm:$0xff]  ;;  %v957_v3 = vmul.f32 %v317_v0, %v2003_v14 }
  0x92   :  { %1582 = vst [vmem:[%s6475_s2 + $0x8a0] sm:$0xff] %v942_v37  ;;  %1583 = vst [vmem:[%s6475_s2 + $0x8a8] sm:$0xff] %v943_v38  ;;  %v958_v4 = vmul.f32 %v318_v1, %v2014_v19  ;;  %v959_v5 = vmul.f32 %v319_v2, %v2016_v20  ;;  %v320_v6 = vld [vmem:[%s6473_s0 + $0x930] sm:$0xf]  ;;  %v321_v7 = vld [vmem:[%s6473_s0 + $0x938] sm:$0xff] }
  0x93   :  { %1584 = vst [vmem:[%s6475_s2 + $0x8b0] sm:$0xff] %v944_v39  ;;  %1585 = vst [vmem:[%s6475_s2 + $0x8b8] sm:$0xf] %v945_v43  ;;  %v322_v8 = vld [vmem:[%s6473_s0 + $0x940] sm:$0xff]  ;;  %v960_v9 = vmul.f32 %v320_v6, %v2029_v26  ;;  %v961_v10 = vmul.f32 %v321_v7, %v2001_v13  ;;  %v323_v12 = vld [vmem:[%s6473_s0 + $0x948] sm:$0xff] }
  0x94   :  { %1586 = vst [vmem:[%s6475_s2 + $0x8c0] sm:$0xff] %v946_v44  ;;  %1587 = vst [vmem:[%s6475_s2 + $0x8c8] sm:$0xff] %v947_v45  ;;  %v962_v11 = vmul.f32 %v322_v8, %v2003_v14  ;;  %v324_v15 = vld [vmem:[%s6473_s0 + $0x950] sm:$0xff]  ;;  %v325_v16 = vld [vmem:[%s6473_s0 + $0x958] sm:$0xf]  ;;  %v963_v17 = vmul.f32 %v323_v12, %v2014_v19 }
  0x95   :  { %1588 = vst [vmem:[%s6475_s2 + $0x8d0] sm:$0xff] %v948_v49  ;;  %1589 = vst [vmem:[%s6475_s2 + $0x8d8] sm:$0xff] %v949_v50  ;;  %v964_v18 = vmul.f32 %v324_v15, %v2016_v20  ;;  %v965_v21 = vmul.f32 %v325_v16, %v2029_v26  ;;  %v326_v22 = vld [vmem:[%s6473_s0 + $0x960] sm:$0xff]  ;;  %v327_v23 = vld [vmem:[%s6473_s0 + $0x968] sm:$0xff] }
  0x96   :  { %1590 = vst [vmem:[%s6475_s2 + $0x8e0] sm:$0xf] %v950_v51  ;;  %1591 = vst [vmem:[%s6475_s2 + $0x8e8] sm:$0xff] %v951_v55  ;;  %v328_v24 = vld [vmem:[%s6473_s0 + $0x970] sm:$0xff]  ;;  %v966_v25 = vmul.f32 %v326_v22, %v2001_v13  ;;  %v967_v27 = vmul.f32 %v327_v23, %v2003_v14  ;;  %v329_v29 = vld [vmem:[%s6473_s0 + $0x978] sm:$0xff] }
  0x97   :  { %1592 = vst [vmem:[%s6475_s2 + $0x8f0] sm:$0xff] %v952_v56  ;;  %1593 = vst [vmem:[%s6475_s2 + $0x8f8] sm:$0xff] %v953_v57  ;;  %v968_v28 = vmul.f32 %v328_v24, %v2014_v19  ;;  %v330_v30 = vld [vmem:[%s6473_s0 + $0x980] sm:$0xf]  ;;  %v331_v31 = vld [vmem:[%s6473_s0 + $0x988] sm:$0xff]  ;;  %v969_v32 = vmul.f32 %v329_v29, %v2016_v20 }
  0x98   :  { %1594 = vst [vmem:[%s6475_s2 + $0x900] sm:$0xff] %v954_v61  ;;  %1595 = vst [vmem:[%s6475_s2 + $0x908] sm:$0xf] %v955_v62  ;;  %v970_v33 = vmul.f32 %v330_v30, %v2029_v26  ;;  %v971_v34 = vmul.f32 %v331_v31, %v2001_v13  ;;  %v332_v35 = vld [vmem:[%s6473_s0 + $0x990] sm:$0xff]  ;;  %v333_v36 = vld [vmem:[%s6473_s0 + $0x998] sm:$0xff] }
  0x99   :  { %1596 = vst [vmem:[%s6475_s2 + $0x910] sm:$0xff] %v956_v63  ;;  %1597 = vst [vmem:[%s6475_s2 + $0x918] sm:$0xff] %v957_v3  ;;  %v334_v37 = vld [vmem:[%s6473_s0 + $0x9a0] sm:$0xff]  ;;  %v972_v38 = vmul.f32 %v332_v35, %v2003_v14  ;;  %v973_v39 = vmul.f32 %v333_v36, %v2014_v19  ;;  %v335_v41 = vld [vmem:[%s6473_s0 + $0x9a8] sm:$0xf] }
  0x9a   :  { %1598 = vst [vmem:[%s6475_s2 + $0x920] sm:$0xff] %v958_v4  ;;  %1599 = vst [vmem:[%s6475_s2 + $0x928] sm:$0xff] %v959_v5  ;;  %v974_v40 = vmul.f32 %v334_v37, %v2016_v20  ;;  %v336_v42 = vld [vmem:[%s6473_s0 + $0x9b0] sm:$0xff]  ;;  %v337_v43 = vld [vmem:[%s6473_s0 + $0x9b8] sm:$0xff]  ;;  %v975_v44 = vmul.f32 %v335_v41, %v2029_v26 }
  0x9b   :  { %1600 = vst [vmem:[%s6475_s2 + $0x930] sm:$0xf] %v960_v9  ;;  %1601 = vst [vmem:[%s6475_s2 + $0x938] sm:$0xff] %v961_v10  ;;  %v976_v45 = vmul.f32 %v336_v42, %v2001_v13  ;;  %v977_v46 = vmul.f32 %v337_v43, %v2003_v14  ;;  %v338_v47 = vld [vmem:[%s6473_s0 + $0x9c0] sm:$0xff]  ;;  %v339_v48 = vld [vmem:[%s6473_s0 + $0x9c8] sm:$0xff] }
  0x9c   :  { %1602 = vst [vmem:[%s6475_s2 + $0x940] sm:$0xff] %v962_v11  ;;  %1603 = vst [vmem:[%s6475_s2 + $0x948] sm:$0xff] %v963_v17  ;;  %v340_v49 = vld [vmem:[%s6473_s0 + $0x9d0] sm:$0xf]  ;;  %v978_v50 = vmul.f32 %v338_v47, %v2014_v19  ;;  %v979_v51 = vmul.f32 %v339_v48, %v2016_v20  ;;  %v341_v53 = vld [vmem:[%s6473_s0 + $0x9d8] sm:$0xff] }
  0x9d   :  { %1604 = vst [vmem:[%s6475_s2 + $0x950] sm:$0xff] %v964_v18  ;;  %1605 = vst [vmem:[%s6475_s2 + $0x958] sm:$0xf] %v965_v21  ;;  %v980_v52 = vmul.f32 %v340_v49, %v2029_v26  ;;  %v342_v54 = vld [vmem:[%s6473_s0 + $0x9e0] sm:$0xff]  ;;  %v343_v55 = vld [vmem:[%s6473_s0 + $0x9e8] sm:$0xff]  ;;  %v981_v56 = vmul.f32 %v341_v53, %v2001_v13 }
  0x9e   :  { %1606 = vst [vmem:[%s6475_s2 + $0x960] sm:$0xff] %v966_v25  ;;  %1607 = vst [vmem:[%s6475_s2 + $0x968] sm:$0xff] %v967_v27  ;;  %v982_v57 = vmul.f32 %v342_v54, %v2003_v14  ;;  %v983_v58 = vmul.f32 %v343_v55, %v2014_v19  ;;  %v344_v59 = vld [vmem:[%s6473_s0 + $0x9f0] sm:$0xff]  ;;  %v345_v60 = vld [vmem:[%s6473_s0 + $0x9f8] sm:$0xf] }
  0x9f   :  { %1608 = vst [vmem:[%s6475_s2 + $0x970] sm:$0xff] %v968_v28  ;;  %1609 = vst [vmem:[%s6475_s2 + $0x978] sm:$0xff] %v969_v32  ;;  %v346_v61 = vld [vmem:[%s6473_s0 + $0xa00] sm:$0xff]  ;;  %v984_v62 = vmul.f32 %v344_v59, %v2016_v20  ;;  %v985_v63 = vmul.f32 %v345_v60, %v2029_v26  ;;  %v347_v1 = vld [vmem:[%s6473_s0 + $0xa08] sm:$0xff] }
  0xa0   :  { %1610 = vst [vmem:[%s6475_s2 + $0x980] sm:$0xf] %v970_v33  ;;  %1611 = vst [vmem:[%s6475_s2 + $0x988] sm:$0xff] %v971_v34  ;;  %v986_v0 = vmul.f32 %v346_v61, %v2001_v13  ;;  %v348_v2 = vld [vmem:[%s6473_s0 + $0xa10] sm:$0xff]  ;;  %v349_v3 = vld [vmem:[%s6473_s0 + $0xa18] sm:$0xff]  ;;  %v987_v4 = vmul.f32 %v347_v1, %v2003_v14 }
  0xa1   :  { %1612 = vst [vmem:[%s6475_s2 + $0x990] sm:$0xff] %v972_v38  ;;  %1613 = vst [vmem:[%s6475_s2 + $0x998] sm:$0xff] %v973_v39  ;;  %v988_v5 = vmul.f32 %v348_v2, %v2014_v19  ;;  %v989_v6 = vmul.f32 %v349_v3, %v2016_v20  ;;  %v350_v7 = vld [vmem:[%s6473_s0 + $0xa20] sm:$0xf]  ;;  %v351_v8 = vld [vmem:[%s6473_s0 + $0xa28] sm:$0xff] }
  0xa2   :  { %1614 = vst [vmem:[%s6475_s2 + $0x9a0] sm:$0xff] %v974_v40  ;;  %1615 = vst [vmem:[%s6475_s2 + $0x9a8] sm:$0xf] %v975_v44  ;;  %v352_v9 = vld [vmem:[%s6473_s0 + $0xa30] sm:$0xff]  ;;  %v990_v10 = vmul.f32 %v350_v7, %v2029_v26  ;;  %v991_v11 = vmul.f32 %v351_v8, %v2001_v13  ;;  %v353_v15 = vld [vmem:[%s6473_s0 + $0xa38] sm:$0xff] }
  0xa3   :  { %1616 = vst [vmem:[%s6475_s2 + $0x9b0] sm:$0xff] %v976_v45  ;;  %1617 = vst [vmem:[%s6475_s2 + $0x9b8] sm:$0xff] %v977_v46  ;;  %v992_v12 = vmul.f32 %v352_v9, %v2003_v14  ;;  %v354_v16 = vld [vmem:[%s6473_s0 + $0xa40] sm:$0xff]  ;;  %v355_v17 = vld [vmem:[%s6473_s0 + $0xa48] sm:$0xf]  ;;  %v993_v18 = vmul.f32 %v353_v15, %v2014_v19 }
  0xa4   :  { %1618 = vst [vmem:[%s6475_s2 + $0x9c0] sm:$0xff] %v978_v50  ;;  %1619 = vst [vmem:[%s6475_s2 + $0x9c8] sm:$0xff] %v979_v51  ;;  %v994_v21 = vmul.f32 %v354_v16, %v2016_v20  ;;  %v995_v22 = vmul.f32 %v355_v17, %v2029_v26  ;;  %v356_v23 = vld [vmem:[%s6473_s0 + $0xa50] sm:$0xff]  ;;  %v357_v24 = vld [vmem:[%s6473_s0 + $0xa58] sm:$0xff] }
  0xa5   :  { %1620 = vst [vmem:[%s6475_s2 + $0x9d0] sm:$0xf] %v980_v52  ;;  %1621 = vst [vmem:[%s6475_s2 + $0x9d8] sm:$0xff] %v981_v56  ;;  %v358_v25 = vld [vmem:[%s6473_s0 + $0xa60] sm:$0xff]  ;;  %v996_v27 = vmul.f32 %v356_v23, %v2001_v13  ;;  %v997_v28 = vmul.f32 %v357_v24, %v2003_v14  ;;  %v359_v30 = vld [vmem:[%s6473_s0 + $0xa68] sm:$0xff] }
  0xa6   :  { %1622 = vst [vmem:[%s6475_s2 + $0x9e0] sm:$0xff] %v982_v57  ;;  %1623 = vst [vmem:[%s6475_s2 + $0x9e8] sm:$0xff] %v983_v58  ;;  %v998_v29 = vmul.f32 %v358_v25, %v2014_v19  ;;  %v360_v31 = vld [vmem:[%s6473_s0 + $0xa70] sm:$0xf]  ;;  %v361_v32 = vld [vmem:[%s6473_s0 + $0xa78] sm:$0xff]  ;;  %v999_v33 = vmul.f32 %v359_v30, %v2016_v20 }
  0xa7   :  { %1624 = vst [vmem:[%s6475_s2 + $0x9f0] sm:$0xff] %v984_v62  ;;  %1625 = vst [vmem:[%s6475_s2 + $0x9f8] sm:$0xf] %v985_v63  ;;  %v1000_v34 = vmul.f32 %v360_v31, %v2029_v26  ;;  %v1001_v35 = vmul.f32 %v361_v32, %v2001_v13  ;;  %v362_v36 = vld [vmem:[%s6473_s0 + $0xa80] sm:$0xff]  ;;  %v363_v37 = vld [vmem:[%s6473_s0 + $0xa88] sm:$0xff] }
  0xa8   :  { %1626 = vst [vmem:[%s6475_s2 + $0xa00] sm:$0xff] %v986_v0  ;;  %1627 = vst [vmem:[%s6475_s2 + $0xa08] sm:$0xff] %v987_v4  ;;  %v364_v38 = vld [vmem:[%s6473_s0 + $0xa90] sm:$0xff]  ;;  %v1002_v39 = vmul.f32 %v362_v36, %v2003_v14  ;;  %v1003_v40 = vmul.f32 %v363_v37, %v2014_v19  ;;  %v365_v42 = vld [vmem:[%s6473_s0 + $0xa98] sm:$0xf] }
  0xa9   :  { %1628 = vst [vmem:[%s6475_s2 + $0xa10] sm:$0xff] %v988_v5  ;;  %1629 = vst [vmem:[%s6475_s2 + $0xa18] sm:$0xff] %v989_v6  ;;  %v1004_v41 = vmul.f32 %v364_v38, %v2016_v20  ;;  %v366_v43 = vld [vmem:[%s6473_s0 + $0xaa0] sm:$0xff]  ;;  %v367_v44 = vld [vmem:[%s6473_s0 + $0xaa8] sm:$0xff]  ;;  %v1005_v45 = vmul.f32 %v365_v42, %v2029_v26 }
  0xaa   :  { %1630 = vst [vmem:[%s6475_s2 + $0xa20] sm:$0xf] %v990_v10  ;;  %1631 = vst [vmem:[%s6475_s2 + $0xa28] sm:$0xff] %v991_v11  ;;  %v1006_v46 = vmul.f32 %v366_v43, %v2001_v13  ;;  %v1007_v47 = vmul.f32 %v367_v44, %v2003_v14  ;;  %v368_v48 = vld [vmem:[%s6473_s0 + $0xab0] sm:$0xff]  ;;  %v369_v49 = vld [vmem:[%s6473_s0 + $0xab8] sm:$0xff] }
  0xab   :  { %1632 = vst [vmem:[%s6475_s2 + $0xa30] sm:$0xff] %v992_v12  ;;  %1633 = vst [vmem:[%s6475_s2 + $0xa38] sm:$0xff] %v993_v18  ;;  %v370_v50 = vld [vmem:[%s6473_s0 + $0xac0] sm:$0xf]  ;;  %v1008_v51 = vmul.f32 %v368_v48, %v2014_v19  ;;  %v1009_v52 = vmul.f32 %v369_v49, %v2016_v20  ;;  %v371_v54 = vld [vmem:[%s6473_s0 + $0xac8] sm:$0xff] }
  0xac   :  { %1634 = vst [vmem:[%s6475_s2 + $0xa40] sm:$0xff] %v994_v21  ;;  %1635 = vst [vmem:[%s6475_s2 + $0xa48] sm:$0xf] %v995_v22  ;;  %v1010_v53 = vmul.f32 %v370_v50, %v2029_v26  ;;  %v372_v55 = vld [vmem:[%s6473_s0 + $0xad0] sm:$0xff]  ;;  %v373_v56 = vld [vmem:[%s6473_s0 + $0xad8] sm:$0xff]  ;;  %v1011_v57 = vmul.f32 %v371_v54, %v2001_v13 }
  0xad   :  { %1636 = vst [vmem:[%s6475_s2 + $0xa50] sm:$0xff] %v996_v27  ;;  %1637 = vst [vmem:[%s6475_s2 + $0xa58] sm:$0xff] %v997_v28  ;;  %v1012_v58 = vmul.f32 %v372_v55, %v2003_v14  ;;  %v1013_v59 = vmul.f32 %v373_v56, %v2014_v19  ;;  %v374_v60 = vld [vmem:[%s6473_s0 + $0xae0] sm:$0xff]  ;;  %v375_v61 = vld [vmem:[%s6473_s0 + $0xae8] sm:$0xf] }
  0xae   :  { %1638 = vst [vmem:[%s6475_s2 + $0xa60] sm:$0xff] %v998_v29  ;;  %1639 = vst [vmem:[%s6475_s2 + $0xa68] sm:$0xff] %v999_v33  ;;  %v376_v62 = vld [vmem:[%s6473_s0 + $0xaf0] sm:$0xff]  ;;  %v1014_v63 = vmul.f32 %v374_v60, %v2016_v20  ;;  %v1015_v0 = vmul.f32 %v375_v61, %v2029_v26  ;;  %v377_v2 = vld [vmem:[%s6473_s0 + $0xaf8] sm:$0xff] }
  0xaf   :  { %1640 = vst [vmem:[%s6475_s2 + $0xa70] sm:$0xf] %v1000_v34  ;;  %1641 = vst [vmem:[%s6475_s2 + $0xa78] sm:$0xff] %v1001_v35  ;;  %v1016_v1 = vmul.f32 %v376_v62, %v2001_v13  ;;  %v378_v3 = vld [vmem:[%s6473_s0 + $0xb00] sm:$0xff]  ;;  %v379_v4 = vld [vmem:[%s6473_s0 + $0xb08] sm:$0xff]  ;;  %v1017_v5 = vmul.f32 %v377_v2, %v2003_v14 }
  0xb0   :  { %1642 = vst [vmem:[%s6475_s2 + $0xa80] sm:$0xff] %v1002_v39  ;;  %1643 = vst [vmem:[%s6475_s2 + $0xa88] sm:$0xff] %v1003_v40  ;;  %v1018_v6 = vmul.f32 %v378_v3, %v2014_v19  ;;  %v1019_v7 = vmul.f32 %v379_v4, %v2016_v20  ;;  %v380_v8 = vld [vmem:[%s6473_s0 + $0xb10] sm:$0xf]  ;;  %v381_v9 = vld [vmem:[%s6473_s0 + $0xb18] sm:$0xff] }
  0xb1   :  { %1644 = vst [vmem:[%s6475_s2 + $0xa90] sm:$0xff] %v1004_v41  ;;  %1645 = vst [vmem:[%s6475_s2 + $0xa98] sm:$0xf] %v1005_v45  ;;  %v382_v10 = vld [vmem:[%s6473_s0 + $0xb20] sm:$0xff]  ;;  %v1020_v11 = vmul.f32 %v380_v8, %v2029_v26  ;;  %v1021_v12 = vmul.f32 %v381_v9, %v2001_v13  ;;  %v383_v16 = vld [vmem:[%s6473_s0 + $0xb28] sm:$0xff] }
  0xb2   :  { %1646 = vst [vmem:[%s6475_s2 + $0xaa0] sm:$0xff] %v1006_v46  ;;  %1647 = vst [vmem:[%s6475_s2 + $0xaa8] sm:$0xff] %v1007_v47  ;;  %v1022_v15 = vmul.f32 %v382_v10, %v2003_v14  ;;  %v384_v17 = vld [vmem:[%s6473_s0 + $0xb30] sm:$0xff]  ;;  %v385_v18 = vld [vmem:[%s6473_s0 + $0xb38] sm:$0xf]  ;;  %v1023_v21 = vmul.f32 %v383_v16, %v2014_v19 }
  0xb3   :  { %1648 = vst [vmem:[%s6475_s2 + $0xab0] sm:$0xff] %v1008_v51  ;;  %1649 = vst [vmem:[%s6475_s2 + $0xab8] sm:$0xff] %v1009_v52  ;;  %v1024_v22 = vmul.f32 %v384_v17, %v2016_v20  ;;  %v1025_v23 = vmul.f32 %v385_v18, %v2029_v26  ;;  %v386_v24 = vld [vmem:[%s6473_s0 + $0xb40] sm:$0xff]  ;;  %v387_v25 = vld [vmem:[%s6473_s0 + $0xb48] sm:$0xff] }
  0xb4   :  { %1650 = vst [vmem:[%s6475_s2 + $0xac0] sm:$0xf] %v1010_v53  ;;  %1651 = vst [vmem:[%s6475_s2 + $0xac8] sm:$0xff] %v1011_v57  ;;  %v388_v27 = vld [vmem:[%s6473_s0 + $0xb50] sm:$0xff]  ;;  %v1026_v28 = vmul.f32 %v386_v24, %v2001_v13  ;;  %v1027_v29 = vmul.f32 %v387_v25, %v2003_v14  ;;  %v389_v31 = vld [vmem:[%s6473_s0 + $0xb58] sm:$0xff] }
  0xb5   :  { %1652 = vst [vmem:[%s6475_s2 + $0xad0] sm:$0xff] %v1012_v58  ;;  %1653 = vst [vmem:[%s6475_s2 + $0xad8] sm:$0xff] %v1013_v59  ;;  %v1028_v30 = vmul.f32 %v388_v27, %v2014_v19  ;;  %v390_v32 = vld [vmem:[%s6473_s0 + $0xb60] sm:$0xf]  ;;  %v391_v33 = vld [vmem:[%s6473_s0 + $0xb68] sm:$0xff]  ;;  %v1029_v34 = vmul.f32 %v389_v31, %v2016_v20 }
  0xb6   :  { %1654 = vst [vmem:[%s6475_s2 + $0xae0] sm:$0xff] %v1014_v63  ;;  %1655 = vst [vmem:[%s6475_s2 + $0xae8] sm:$0xf] %v1015_v0  ;;  %v1030_v35 = vmul.f32 %v390_v32, %v2029_v26  ;;  %v1031_v36 = vmul.f32 %v391_v33, %v2001_v13  ;;  %v392_v37 = vld [vmem:[%s6473_s0 + $0xb70] sm:$0xff]  ;;  %v393_v38 = vld [vmem:[%s6473_s0 + $0xb78] sm:$0xff] }
  0xb7   :  { %1656 = vst [vmem:[%s6475_s2 + $0xaf0] sm:$0xff] %v1016_v1  ;;  %1657 = vst [vmem:[%s6475_s2 + $0xaf8] sm:$0xff] %v1017_v5  ;;  %v394_v39 = vld [vmem:[%s6473_s0 + $0xb80] sm:$0xff]  ;;  %v1032_v40 = vmul.f32 %v392_v37, %v2003_v14  ;;  %v1033_v41 = vmul.f32 %v393_v38, %v2014_v19  ;;  %v395_v43 = vld [vmem:[%s6473_s0 + $0xb88] sm:$0xf] }
  0xb8   :  { %1658 = vst [vmem:[%s6475_s2 + $0xb00] sm:$0xff] %v1018_v6  ;;  %1659 = vst [vmem:[%s6475_s2 + $0xb08] sm:$0xff] %v1019_v7  ;;  %v1034_v42 = vmul.f32 %v394_v39, %v2016_v20  ;;  %v396_v44 = vld [vmem:[%s6473_s0 + $0xb90] sm:$0xff]  ;;  %v397_v45 = vld [vmem:[%s6473_s0 + $0xb98] sm:$0xff]  ;;  %v1035_v46 = vmul.f32 %v395_v43, %v2029_v26 }
  0xb9   :  { %1660 = vst [vmem:[%s6475_s2 + $0xb10] sm:$0xf] %v1020_v11  ;;  %1661 = vst [vmem:[%s6475_s2 + $0xb18] sm:$0xff] %v1021_v12  ;;  %v1036_v47 = vmul.f32 %v396_v44, %v2001_v13  ;;  %v1037_v48 = vmul.f32 %v397_v45, %v2003_v14  ;;  %v398_v49 = vld [vmem:[%s6473_s0 + $0xba0] sm:$0xff]  ;;  %v399_v50 = vld [vmem:[%s6473_s0 + $0xba8] sm:$0xff] }
  0xba   :  { %1662 = vst [vmem:[%s6475_s2 + $0xb20] sm:$0xff] %v1022_v15  ;;  %1663 = vst [vmem:[%s6475_s2 + $0xb28] sm:$0xff] %v1023_v21  ;;  %v400_v51 = vld [vmem:[%s6473_s0 + $0xbb0] sm:$0xf]  ;;  %v1038_v52 = vmul.f32 %v398_v49, %v2014_v19  ;;  %v1039_v53 = vmul.f32 %v399_v50, %v2016_v20  ;;  %v401_v55 = vld [vmem:[%s6473_s0 + $0xbb8] sm:$0xff] }
  0xbb   :  { %1664 = vst [vmem:[%s6475_s2 + $0xb30] sm:$0xff] %v1024_v22  ;;  %1665 = vst [vmem:[%s6475_s2 + $0xb38] sm:$0xf] %v1025_v23  ;;  %v1040_v54 = vmul.f32 %v400_v51, %v2029_v26  ;;  %v402_v56 = vld [vmem:[%s6473_s0 + $0xbc0] sm:$0xff]  ;;  %v403_v57 = vld [vmem:[%s6473_s0 + $0xbc8] sm:$0xff]  ;;  %v1041_v58 = vmul.f32 %v401_v55, %v2001_v13 }
  0xbc   :  { %1666 = vst [vmem:[%s6475_s2 + $0xb40] sm:$0xff] %v1026_v28  ;;  %1667 = vst [vmem:[%s6475_s2 + $0xb48] sm:$0xff] %v1027_v29  ;;  %v1042_v59 = vmul.f32 %v402_v56, %v2003_v14  ;;  %v1043_v60 = vmul.f32 %v403_v57, %v2014_v19  ;;  %v404_v61 = vld [vmem:[%s6473_s0 + $0xbd0] sm:$0xff]  ;;  %v405_v62 = vld [vmem:[%s6473_s0 + $0xbd8] sm:$0xf] }
  0xbd   :  { %1668 = vst [vmem:[%s6475_s2 + $0xb50] sm:$0xff] %v1028_v30  ;;  %1669 = vst [vmem:[%s6475_s2 + $0xb58] sm:$0xff] %v1029_v34  ;;  %v406_v63 = vld [vmem:[%s6473_s0 + $0xbe0] sm:$0xff]  ;;  %v1044_v0 = vmul.f32 %v404_v61, %v2016_v20  ;;  %v1045_v1 = vmul.f32 %v405_v62, %v2029_v26  ;;  %v407_v3 = vld [vmem:[%s6473_s0 + $0xbe8] sm:$0xff] }
  0xbe   :  { %1670 = vst [vmem:[%s6475_s2 + $0xb60] sm:$0xf] %v1030_v35  ;;  %1671 = vst [vmem:[%s6475_s2 + $0xb68] sm:$0xff] %v1031_v36  ;;  %v1046_v2 = vmul.f32 %v406_v63, %v2001_v13  ;;  %v408_v4 = vld [vmem:[%s6473_s0 + $0xbf0] sm:$0xff]  ;;  %v409_v5 = vld [vmem:[%s6473_s0 + $0xbf8] sm:$0xff]  ;;  %v1047_v6 = vmul.f32 %v407_v3, %v2003_v14 }
  0xbf   :  { %1672 = vst [vmem:[%s6475_s2 + $0xb70] sm:$0xff] %v1032_v40  ;;  %1673 = vst [vmem:[%s6475_s2 + $0xb78] sm:$0xff] %v1033_v41  ;;  %v1048_v7 = vmul.f32 %v408_v4, %v2014_v19  ;;  %v1049_v8 = vmul.f32 %v409_v5, %v2016_v20  ;;  %v410_v9 = vld [vmem:[%s6473_s0 + $0xc00] sm:$0xf]  ;;  %v411_v10 = vld [vmem:[%s6473_s0 + $0xc08] sm:$0xff] }
  0xc0   :  { %1674 = vst [vmem:[%s6475_s2 + $0xb80] sm:$0xff] %v1034_v42  ;;  %1675 = vst [vmem:[%s6475_s2 + $0xb88] sm:$0xf] %v1035_v46  ;;  %v412_v11 = vld [vmem:[%s6473_s0 + $0xc10] sm:$0xff]  ;;  %v1050_v12 = vmul.f32 %v410_v9, %v2029_v26  ;;  %v1051_v15 = vmul.f32 %v411_v10, %v2001_v13  ;;  %v413_v17 = vld [vmem:[%s6473_s0 + $0xc18] sm:$0xff] }
  0xc1   :  { %1676 = vst [vmem:[%s6475_s2 + $0xb90] sm:$0xff] %v1036_v47  ;;  %1677 = vst [vmem:[%s6475_s2 + $0xb98] sm:$0xff] %v1037_v48  ;;  %v1052_v16 = vmul.f32 %v412_v11, %v2003_v14  ;;  %v414_v18 = vld [vmem:[%s6473_s0 + $0xc20] sm:$0xff]  ;;  %v415_v21 = vld [vmem:[%s6473_s0 + $0xc28] sm:$0xf]  ;;  %v1053_v22 = vmul.f32 %v413_v17, %v2014_v19 }
  0xc2   :  { %1678 = vst [vmem:[%s6475_s2 + $0xba0] sm:$0xff] %v1038_v52  ;;  %1679 = vst [vmem:[%s6475_s2 + $0xba8] sm:$0xff] %v1039_v53  ;;  %v1054_v23 = vmul.f32 %v414_v18, %v2016_v20  ;;  %v1055_v24 = vmul.f32 %v415_v21, %v2029_v26  ;;  %v416_v25 = vld [vmem:[%s6473_s0 + $0xc30] sm:$0xff]  ;;  %v417_v27 = vld [vmem:[%s6473_s0 + $0xc38] sm:$0xff] }
  0xc3   :  { %1680 = vst [vmem:[%s6475_s2 + $0xbb0] sm:$0xf] %v1040_v54  ;;  %1681 = vst [vmem:[%s6475_s2 + $0xbb8] sm:$0xff] %v1041_v58  ;;  %v418_v28 = vld [vmem:[%s6473_s0 + $0xc40] sm:$0xff]  ;;  %v1056_v29 = vmul.f32 %v416_v25, %v2001_v13  ;;  %v1057_v30 = vmul.f32 %v417_v27, %v2003_v14  ;;  %v419_v32 = vld [vmem:[%s6473_s0 + $0xc48] sm:$0xff] }
  0xc4   :  { %1682 = vst [vmem:[%s6475_s2 + $0xbc0] sm:$0xff] %v1042_v59  ;;  %1683 = vst [vmem:[%s6475_s2 + $0xbc8] sm:$0xff] %v1043_v60  ;;  %v1058_v31 = vmul.f32 %v418_v28, %v2014_v19  ;;  %v420_v33 = vld [vmem:[%s6473_s0 + $0xc50] sm:$0xf]  ;;  %v421_v34 = vld [vmem:[%s6473_s0 + $0xc58] sm:$0xff]  ;;  %v1059_v35 = vmul.f32 %v419_v32, %v2016_v20 }
  0xc5   :  { %1684 = vst [vmem:[%s6475_s2 + $0xbd0] sm:$0xff] %v1044_v0  ;;  %1685 = vst [vmem:[%s6475_s2 + $0xbd8] sm:$0xf] %v1045_v1  ;;  %v1060_v36 = vmul.f32 %v420_v33, %v2029_v26  ;;  %v1061_v37 = vmul.f32 %v421_v34, %v2001_v13  ;;  %v422_v38 = vld [vmem:[%s6473_s0 + $0xc60] sm:$0xff]  ;;  %v423_v39 = vld [vmem:[%s6473_s0 + $0xc68] sm:$0xff] }
  0xc6   :  { %1686 = vst [vmem:[%s6475_s2 + $0xbe0] sm:$0xff] %v1046_v2  ;;  %1687 = vst [vmem:[%s6475_s2 + $0xbe8] sm:$0xff] %v1047_v6  ;;  %v424_v40 = vld [vmem:[%s6473_s0 + $0xc70] sm:$0xff]  ;;  %v1062_v41 = vmul.f32 %v422_v38, %v2003_v14  ;;  %v1063_v42 = vmul.f32 %v423_v39, %v2014_v19  ;;  %v425_v44 = vld [vmem:[%s6473_s0 + $0xc78] sm:$0xf] }
  0xc7   :  { %1688 = vst [vmem:[%s6475_s2 + $0xbf0] sm:$0xff] %v1048_v7  ;;  %1689 = vst [vmem:[%s6475_s2 + $0xbf8] sm:$0xff] %v1049_v8  ;;  %v1064_v43 = vmul.f32 %v424_v40, %v2016_v20  ;;  %v426_v45 = vld [vmem:[%s6473_s0 + $0xc80] sm:$0xff]  ;;  %v427_v46 = vld [vmem:[%s6473_s0 + $0xc88] sm:$0xff]  ;;  %v1065_v47 = vmul.f32 %v425_v44, %v2029_v26 }
  0xc8   :  { %1690 = vst [vmem:[%s6475_s2 + $0xc00] sm:$0xf] %v1050_v12  ;;  %1691 = vst [vmem:[%s6475_s2 + $0xc08] sm:$0xff] %v1051_v15  ;;  %v1066_v48 = vmul.f32 %v426_v45, %v2001_v13  ;;  %v1067_v49 = vmul.f32 %v427_v46, %v2003_v14  ;;  %v428_v50 = vld [vmem:[%s6473_s0 + $0xc90] sm:$0xff]  ;;  %v429_v51 = vld [vmem:[%s6473_s0 + $0xc98] sm:$0xff] }
  0xc9   :  { %1692 = vst [vmem:[%s6475_s2 + $0xc10] sm:$0xff] %v1052_v16  ;;  %1693 = vst [vmem:[%s6475_s2 + $0xc18] sm:$0xff] %v1053_v22  ;;  %v430_v52 = vld [vmem:[%s6473_s0 + $0xca0] sm:$0xf]  ;;  %v1068_v53 = vmul.f32 %v428_v50, %v2014_v19  ;;  %v1069_v54 = vmul.f32 %v429_v51, %v2016_v20  ;;  %v431_v56 = vld [vmem:[%s6473_s0 + $0xca8] sm:$0xff] }
  0xca   :  { %1694 = vst [vmem:[%s6475_s2 + $0xc20] sm:$0xff] %v1054_v23  ;;  %1695 = vst [vmem:[%s6475_s2 + $0xc28] sm:$0xf] %v1055_v24  ;;  %v1070_v55 = vmul.f32 %v430_v52, %v2029_v26  ;;  %v432_v57 = vld [vmem:[%s6473_s0 + $0xcb0] sm:$0xff]  ;;  %v433_v58 = vld [vmem:[%s6473_s0 + $0xcb8] sm:$0xff]  ;;  %v1071_v59 = vmul.f32 %v431_v56, %v2001_v13 }
  0xcb   :  { %1696 = vst [vmem:[%s6475_s2 + $0xc30] sm:$0xff] %v1056_v29  ;;  %1697 = vst [vmem:[%s6475_s2 + $0xc38] sm:$0xff] %v1057_v30  ;;  %v1072_v60 = vmul.f32 %v432_v57, %v2003_v14  ;;  %v1073_v61 = vmul.f32 %v433_v58, %v2014_v19  ;;  %v434_v62 = vld [vmem:[%s6473_s0 + $0xcc0] sm:$0xff]  ;;  %v435_v63 = vld [vmem:[%s6473_s0 + $0xcc8] sm:$0xf] }
  0xcc   :  { %1698 = vst [vmem:[%s6475_s2 + $0xc40] sm:$0xff] %v1058_v31  ;;  %1699 = vst [vmem:[%s6475_s2 + $0xc48] sm:$0xff] %v1059_v35  ;;  %v436_v0 = vld [vmem:[%s6473_s0 + $0xcd0] sm:$0xff]  ;;  %v1074_v1 = vmul.f32 %v434_v62, %v2016_v20  ;;  %v1075_v2 = vmul.f32 %v435_v63, %v2029_v26  ;;  %v437_v4 = vld [vmem:[%s6473_s0 + $0xcd8] sm:$0xff] }
  0xcd   :  { %1700 = vst [vmem:[%s6475_s2 + $0xc50] sm:$0xf] %v1060_v36  ;;  %1701 = vst [vmem:[%s6475_s2 + $0xc58] sm:$0xff] %v1061_v37  ;;  %v1076_v3 = vmul.f32 %v436_v0, %v2001_v13  ;;  %v438_v5 = vld [vmem:[%s6473_s0 + $0xce0] sm:$0xff]  ;;  %v439_v6 = vld [vmem:[%s6473_s0 + $0xce8] sm:$0xff]  ;;  %v1077_v7 = vmul.f32 %v437_v4, %v2003_v14 }
  0xce   :  { %1702 = vst [vmem:[%s6475_s2 + $0xc60] sm:$0xff] %v1062_v41  ;;  %1703 = vst [vmem:[%s6475_s2 + $0xc68] sm:$0xff] %v1063_v42  ;;  %v1078_v8 = vmul.f32 %v438_v5, %v2014_v19  ;;  %v1079_v9 = vmul.f32 %v439_v6, %v2016_v20  ;;  %v440_v10 = vld [vmem:[%s6473_s0 + $0xcf0] sm:$0xf]  ;;  %v441_v11 = vld [vmem:[%s6473_s0 + $0xcf8] sm:$0xff] }
  0xcf   :  { %1704 = vst [vmem:[%s6475_s2 + $0xc70] sm:$0xff] %v1064_v43  ;;  %1705 = vst [vmem:[%s6475_s2 + $0xc78] sm:$0xf] %v1065_v47  ;;  %v442_v12 = vld [vmem:[%s6473_s0 + $0xd00] sm:$0xff]  ;;  %v1080_v15 = vmul.f32 %v440_v10, %v2029_v26  ;;  %v1081_v16 = vmul.f32 %v441_v11, %v2001_v13  ;;  %v443_v18 = vld [vmem:[%s6473_s0 + $0xd08] sm:$0xff] }
  0xd0   :  { %1706 = vst [vmem:[%s6475_s2 + $0xc80] sm:$0xff] %v1066_v48  ;;  %1707 = vst [vmem:[%s6475_s2 + $0xc88] sm:$0xff] %v1067_v49  ;;  %v1082_v17 = vmul.f32 %v442_v12, %v2003_v14  ;;  %v444_v21 = vld [vmem:[%s6473_s0 + $0xd10] sm:$0xff]  ;;  %v445_v22 = vld [vmem:[%s6473_s0 + $0xd18] sm:$0xf]  ;;  %v1083_v23 = vmul.f32 %v443_v18, %v2014_v19 }
  0xd1   :  { %1708 = vst [vmem:[%s6475_s2 + $0xc90] sm:$0xff] %v1068_v53  ;;  %1709 = vst [vmem:[%s6475_s2 + $0xc98] sm:$0xff] %v1069_v54  ;;  %v1084_v24 = vmul.f32 %v444_v21, %v2016_v20  ;;  %v1085_v25 = vmul.f32 %v445_v22, %v2029_v26  ;;  %v446_v27 = vld [vmem:[%s6473_s0 + $0xd20] sm:$0xff]  ;;  %v447_v28 = vld [vmem:[%s6473_s0 + $0xd28] sm:$0xff] }
  0xd2   :  { %1710 = vst [vmem:[%s6475_s2 + $0xca0] sm:$0xf] %v1070_v55  ;;  %1711 = vst [vmem:[%s6475_s2 + $0xca8] sm:$0xff] %v1071_v59  ;;  %v448_v29 = vld [vmem:[%s6473_s0 + $0xd30] sm:$0xff]  ;;  %v1086_v30 = vmul.f32 %v446_v27, %v2001_v13  ;;  %v1087_v31 = vmul.f32 %v447_v28, %v2003_v14  ;;  %v449_v33 = vld [vmem:[%s6473_s0 + $0xd38] sm:$0xff] }
  0xd3   :  { %1712 = vst [vmem:[%s6475_s2 + $0xcb0] sm:$0xff] %v1072_v60  ;;  %1713 = vst [vmem:[%s6475_s2 + $0xcb8] sm:$0xff] %v1073_v61  ;;  %v1088_v32 = vmul.f32 %v448_v29, %v2014_v19  ;;  %v450_v34 = vld [vmem:[%s6473_s0 + $0xd40] sm:$0xf]  ;;  %v451_v35 = vld [vmem:[%s6473_s0 + $0xd48] sm:$0xff]  ;;  %v1089_v36 = vmul.f32 %v449_v33, %v2016_v20 }
  0xd4   :  { %1714 = vst [vmem:[%s6475_s2 + $0xcc0] sm:$0xff] %v1074_v1  ;;  %1715 = vst [vmem:[%s6475_s2 + $0xcc8] sm:$0xf] %v1075_v2  ;;  %v1090_v37 = vmul.f32 %v450_v34, %v2029_v26  ;;  %v1091_v38 = vmul.f32 %v451_v35, %v2001_v13  ;;  %v452_v39 = vld [vmem:[%s6473_s0 + $0xd50] sm:$0xff]  ;;  %v453_v40 = vld [vmem:[%s6473_s0 + $0xd58] sm:$0xff] }
  0xd5   :  { %1716 = vst [vmem:[%s6475_s2 + $0xcd0] sm:$0xff] %v1076_v3  ;;  %1717 = vst [vmem:[%s6475_s2 + $0xcd8] sm:$0xff] %v1077_v7  ;;  %v454_v41 = vld [vmem:[%s6473_s0 + $0xd60] sm:$0xff]  ;;  %v1092_v42 = vmul.f32 %v452_v39, %v2003_v14  ;;  %v1093_v43 = vmul.f32 %v453_v40, %v2014_v19  ;;  %v455_v45 = vld [vmem:[%s6473_s0 + $0xd68] sm:$0xf] }
  0xd6   :  { %1718 = vst [vmem:[%s6475_s2 + $0xce0] sm:$0xff] %v1078_v8  ;;  %1719 = vst [vmem:[%s6475_s2 + $0xce8] sm:$0xff] %v1079_v9  ;;  %v1094_v44 = vmul.f32 %v454_v41, %v2016_v20  ;;  %v456_v46 = vld [vmem:[%s6473_s0 + $0xd70] sm:$0xff]  ;;  %v457_v47 = vld [vmem:[%s6473_s0 + $0xd78] sm:$0xff]  ;;  %v1095_v48 = vmul.f32 %v455_v45, %v2029_v26 }
  0xd7   :  { %1720 = vst [vmem:[%s6475_s2 + $0xcf0] sm:$0xf] %v1080_v15  ;;  %1721 = vst [vmem:[%s6475_s2 + $0xcf8] sm:$0xff] %v1081_v16  ;;  %v1096_v49 = vmul.f32 %v456_v46, %v2001_v13  ;;  %v1097_v50 = vmul.f32 %v457_v47, %v2003_v14  ;;  %v458_v51 = vld [vmem:[%s6473_s0 + $0xd80] sm:$0xff]  ;;  %v459_v52 = vld [vmem:[%s6473_s0 + $0xd88] sm:$0xff] }
  0xd8   :  { %1722 = vst [vmem:[%s6475_s2 + $0xd00] sm:$0xff] %v1082_v17  ;;  %1723 = vst [vmem:[%s6475_s2 + $0xd08] sm:$0xff] %v1083_v23  ;;  %v460_v53 = vld [vmem:[%s6473_s0 + $0xd90] sm:$0xf]  ;;  %v1098_v54 = vmul.f32 %v458_v51, %v2014_v19  ;;  %v1099_v55 = vmul.f32 %v459_v52, %v2016_v20  ;;  %v461_v57 = vld [vmem:[%s6473_s0 + $0xd98] sm:$0xff] }
  0xd9   :  { %1724 = vst [vmem:[%s6475_s2 + $0xd10] sm:$0xff] %v1084_v24  ;;  %1725 = vst [vmem:[%s6475_s2 + $0xd18] sm:$0xf] %v1085_v25  ;;  %v1100_v56 = vmul.f32 %v460_v53, %v2029_v26  ;;  %v462_v58 = vld [vmem:[%s6473_s0 + $0xda0] sm:$0xff]  ;;  %v463_v59 = vld [vmem:[%s6473_s0 + $0xda8] sm:$0xff]  ;;  %v1101_v60 = vmul.f32 %v461_v57, %v2001_v13 }
  0xda   :  { %1726 = vst [vmem:[%s6475_s2 + $0xd20] sm:$0xff] %v1086_v30  ;;  %1727 = vst [vmem:[%s6475_s2 + $0xd28] sm:$0xff] %v1087_v31  ;;  %v1102_v61 = vmul.f32 %v462_v58, %v2003_v14  ;;  %v1103_v62 = vmul.f32 %v463_v59, %v2014_v19  ;;  %v464_v63 = vld [vmem:[%s6473_s0 + $0xdb0] sm:$0xff]  ;;  %v465_v0 = vld [vmem:[%s6473_s0 + $0xdb8] sm:$0xf] }
  0xdb   :  { %1728 = vst [vmem:[%s6475_s2 + $0xd30] sm:$0xff] %v1088_v32  ;;  %1729 = vst [vmem:[%s6475_s2 + $0xd38] sm:$0xff] %v1089_v36  ;;  %v466_v1 = vld [vmem:[%s6473_s0 + $0xdc0] sm:$0xff]  ;;  %v1104_v2 = vmul.f32 %v464_v63, %v2016_v20  ;;  %v1105_v3 = vmul.f32 %v465_v0, %v2029_v26  ;;  %v467_v5 = vld [vmem:[%s6473_s0 + $0xdc8] sm:$0xff] }
  0xdc   :  { %1730 = vst [vmem:[%s6475_s2 + $0xd40] sm:$0xf] %v1090_v37  ;;  %1731 = vst [vmem:[%s6475_s2 + $0xd48] sm:$0xff] %v1091_v38  ;;  %v1106_v4 = vmul.f32 %v466_v1, %v2001_v13  ;;  %v468_v6 = vld [vmem:[%s6473_s0 + $0xdd0] sm:$0xff]  ;;  %v469_v7 = vld [vmem:[%s6473_s0 + $0xdd8] sm:$0xff]  ;;  %v1107_v8 = vmul.f32 %v467_v5, %v2003_v14 }
  0xdd   :  { %1732 = vst [vmem:[%s6475_s2 + $0xd50] sm:$0xff] %v1092_v42  ;;  %1733 = vst [vmem:[%s6475_s2 + $0xd58] sm:$0xff] %v1093_v43  ;;  %v1108_v9 = vmul.f32 %v468_v6, %v2014_v19  ;;  %v1109_v10 = vmul.f32 %v469_v7, %v2016_v20  ;;  %v470_v11 = vld [vmem:[%s6473_s0 + $0xde0] sm:$0xf]  ;;  %v471_v12 = vld [vmem:[%s6473_s0 + $0xde8] sm:$0xff] }
  0xde   :  { %1734 = vst [vmem:[%s6475_s2 + $0xd60] sm:$0xff] %v1094_v44  ;;  %1735 = vst [vmem:[%s6475_s2 + $0xd68] sm:$0xf] %v1095_v48  ;;  %v472_v15 = vld [vmem:[%s6473_s0 + $0xdf0] sm:$0xff]  ;;  %v1110_v16 = vmul.f32 %v470_v11, %v2029_v26  ;;  %v1111_v17 = vmul.f32 %v471_v12, %v2001_v13  ;;  %v473_v21 = vld [vmem:[%s6473_s0 + $0xdf8] sm:$0xff] }
  0xdf   :  { %1736 = vst [vmem:[%s6475_s2 + $0xd70] sm:$0xff] %v1096_v49  ;;  %1737 = vst [vmem:[%s6475_s2 + $0xd78] sm:$0xff] %v1097_v50  ;;  %v1112_v18 = vmul.f32 %v472_v15, %v2003_v14  ;;  %v474_v22 = vld [vmem:[%s6473_s0 + $0xe00] sm:$0xff]  ;;  %v475_v23 = vld [vmem:[%s6473_s0 + $0xe08] sm:$0xf]  ;;  %v1113_v24 = vmul.f32 %v473_v21, %v2014_v19 }
  0xe0   :  { %1738 = vst [vmem:[%s6475_s2 + $0xd80] sm:$0xff] %v1098_v54  ;;  %1739 = vst [vmem:[%s6475_s2 + $0xd88] sm:$0xff] %v1099_v55  ;;  %v1114_v25 = vmul.f32 %v474_v22, %v2016_v20  ;;  %v1115_v27 = vmul.f32 %v475_v23, %v2029_v26  ;;  %v476_v28 = vld [vmem:[%s6473_s0 + $0xe10] sm:$0xff]  ;;  %v477_v29 = vld [vmem:[%s6473_s0 + $0xe18] sm:$0xff] }
  0xe1   :  { %1740 = vst [vmem:[%s6475_s2 + $0xd90] sm:$0xf] %v1100_v56  ;;  %1741 = vst [vmem:[%s6475_s2 + $0xd98] sm:$0xff] %v1101_v60  ;;  %v478_v30 = vld [vmem:[%s6473_s0 + $0xe20] sm:$0xff]  ;;  %v1116_v31 = vmul.f32 %v476_v28, %v2001_v13  ;;  %v1117_v32 = vmul.f32 %v477_v29, %v2003_v14  ;;  %v479_v34 = vld [vmem:[%s6473_s0 + $0xe28] sm:$0xff] }
  0xe2   :  { %1742 = vst [vmem:[%s6475_s2 + $0xda0] sm:$0xff] %v1102_v61  ;;  %1743 = vst [vmem:[%s6475_s2 + $0xda8] sm:$0xff] %v1103_v62  ;;  %v1118_v33 = vmul.f32 %v478_v30, %v2014_v19  ;;  %v480_v35 = vld [vmem:[%s6473_s0 + $0xe30] sm:$0xf]  ;;  %v481_v36 = vld [vmem:[%s6473_s0 + $0xe38] sm:$0xff]  ;;  %v1119_v37 = vmul.f32 %v479_v34, %v2016_v20 }
  0xe3   :  { %1744 = vst [vmem:[%s6475_s2 + $0xdb0] sm:$0xff] %v1104_v2  ;;  %1745 = vst [vmem:[%s6475_s2 + $0xdb8] sm:$0xf] %v1105_v3  ;;  %v1120_v38 = vmul.f32 %v480_v35, %v2029_v26  ;;  %v1121_v39 = vmul.f32 %v481_v36, %v2001_v13  ;;  %v482_v40 = vld [vmem:[%s6473_s0 + $0xe40] sm:$0xff]  ;;  %v483_v41 = vld [vmem:[%s6473_s0 + $0xe48] sm:$0xff] }
  0xe4   :  { %1746 = vst [vmem:[%s6475_s2 + $0xdc0] sm:$0xff] %v1106_v4  ;;  %1747 = vst [vmem:[%s6475_s2 + $0xdc8] sm:$0xff] %v1107_v8  ;;  %v484_v42 = vld [vmem:[%s6473_s0 + $0xe50] sm:$0xff]  ;;  %v1122_v43 = vmul.f32 %v482_v40, %v2003_v14  ;;  %v1123_v44 = vmul.f32 %v483_v41, %v2014_v19  ;;  %v485_v46 = vld [vmem:[%s6473_s0 + $0xe58] sm:$0xf] }
  0xe5   :  { %1748 = vst [vmem:[%s6475_s2 + $0xdd0] sm:$0xff] %v1108_v9  ;;  %1749 = vst [vmem:[%s6475_s2 + $0xdd8] sm:$0xff] %v1109_v10  ;;  %v1124_v45 = vmul.f32 %v484_v42, %v2016_v20  ;;  %v486_v47 = vld [vmem:[%s6473_s0 + $0xe60] sm:$0xff]  ;;  %v487_v48 = vld [vmem:[%s6473_s0 + $0xe68] sm:$0xff]  ;;  %v1125_v49 = vmul.f32 %v485_v46, %v2029_v26 }
  0xe6   :  { %1750 = vst [vmem:[%s6475_s2 + $0xde0] sm:$0xf] %v1110_v16  ;;  %1751 = vst [vmem:[%s6475_s2 + $0xde8] sm:$0xff] %v1111_v17  ;;  %v1126_v50 = vmul.f32 %v486_v47, %v2001_v13  ;;  %v1127_v51 = vmul.f32 %v487_v48, %v2003_v14  ;;  %v488_v52 = vld [vmem:[%s6473_s0 + $0xe70] sm:$0xff]  ;;  %v489_v53 = vld [vmem:[%s6473_s0 + $0xe78] sm:$0xff] }
  0xe7   :  { %1752 = vst [vmem:[%s6475_s2 + $0xdf0] sm:$0xff] %v1112_v18  ;;  %1753 = vst [vmem:[%s6475_s2 + $0xdf8] sm:$0xff] %v1113_v24  ;;  %v490_v54 = vld [vmem:[%s6473_s0 + $0xe80] sm:$0xf]  ;;  %v1128_v55 = vmul.f32 %v488_v52, %v2014_v19  ;;  %v1129_v56 = vmul.f32 %v489_v53, %v2016_v20  ;;  %v491_v58 = vld [vmem:[%s6473_s0 + $0xe88] sm:$0xff] }
  0xe8   :  { %1754 = vst [vmem:[%s6475_s2 + $0xe00] sm:$0xff] %v1114_v25  ;;  %1755 = vst [vmem:[%s6475_s2 + $0xe08] sm:$0xf] %v1115_v27  ;;  %v1130_v57 = vmul.f32 %v490_v54, %v2029_v26  ;;  %v492_v59 = vld [vmem:[%s6473_s0 + $0xe90] sm:$0xff]  ;;  %v493_v60 = vld [vmem:[%s6473_s0 + $0xe98] sm:$0xff]  ;;  %v1131_v61 = vmul.f32 %v491_v58, %v2001_v13 }
  0xe9   :  { %1756 = vst [vmem:[%s6475_s2 + $0xe10] sm:$0xff] %v1116_v31  ;;  %1757 = vst [vmem:[%s6475_s2 + $0xe18] sm:$0xff] %v1117_v32  ;;  %v1132_v62 = vmul.f32 %v492_v59, %v2003_v14  ;;  %v1133_v63 = vmul.f32 %v493_v60, %v2014_v19  ;;  %v494_v0 = vld [vmem:[%s6473_s0 + $0xea0] sm:$0xff]  ;;  %v495_v1 = vld [vmem:[%s6473_s0 + $0xea8] sm:$0xf] }
  0xea   :  { %1758 = vst [vmem:[%s6475_s2 + $0xe20] sm:$0xff] %v1118_v33  ;;  %1759 = vst [vmem:[%s6475_s2 + $0xe28] sm:$0xff] %v1119_v37  ;;  %v496_v2 = vld [vmem:[%s6473_s0 + $0xeb0] sm:$0xff]  ;;  %v1134_v3 = vmul.f32 %v494_v0, %v2016_v20  ;;  %v1135_v4 = vmul.f32 %v495_v1, %v2029_v26  ;;  %v497_v6 = vld [vmem:[%s6473_s0 + $0xeb8] sm:$0xff] }
  0xeb   :  { %1760 = vst [vmem:[%s6475_s2 + $0xe30] sm:$0xf] %v1120_v38  ;;  %1761 = vst [vmem:[%s6475_s2 + $0xe38] sm:$0xff] %v1121_v39  ;;  %v1136_v5 = vmul.f32 %v496_v2, %v2001_v13  ;;  %v498_v7 = vld [vmem:[%s6473_s0 + $0xec0] sm:$0xff]  ;;  %v499_v8 = vld [vmem:[%s6473_s0 + $0xec8] sm:$0xff]  ;;  %v1137_v9 = vmul.f32 %v497_v6, %v2003_v14 }
  0xec   :  { %1762 = vst [vmem:[%s6475_s2 + $0xe40] sm:$0xff] %v1122_v43  ;;  %1763 = vst [vmem:[%s6475_s2 + $0xe48] sm:$0xff] %v1123_v44  ;;  %v1138_v10 = vmul.f32 %v498_v7, %v2014_v19  ;;  %v1139_v11 = vmul.f32 %v499_v8, %v2016_v20  ;;  %v500_v12 = vld [vmem:[%s6473_s0 + $0xed0] sm:$0xf]  ;;  %v501_v15 = vld [vmem:[%s6473_s0 + $0xed8] sm:$0xff] }
  0xed   :  { %1764 = vst [vmem:[%s6475_s2 + $0xe50] sm:$0xff] %v1124_v45  ;;  %1765 = vst [vmem:[%s6475_s2 + $0xe58] sm:$0xf] %v1125_v49  ;;  %v502_v16 = vld [vmem:[%s6473_s0 + $0xee0] sm:$0xff]  ;;  %v1140_v17 = vmul.f32 %v500_v12, %v2029_v26  ;;  %v1141_v18 = vmul.f32 %v501_v15, %v2001_v13  ;;  %v503_v22 = vld [vmem:[%s6473_s0 + $0xee8] sm:$0xff] }
  0xee   :  { %1766 = vst [vmem:[%s6475_s2 + $0xe60] sm:$0xff] %v1126_v50  ;;  %1767 = vst [vmem:[%s6475_s2 + $0xe68] sm:$0xff] %v1127_v51  ;;  %v1142_v21 = vmul.f32 %v502_v16, %v2003_v14  ;;  %v504_v23 = vld [vmem:[%s6473_s0 + $0xef0] sm:$0xff]  ;;  %v505_v24 = vld [vmem:[%s6473_s0 + $0xef8] sm:$0xf]  ;;  %v1143_v25 = vmul.f32 %v503_v22, %v2014_v19 }
  0xef   :  { %1768 = vst [vmem:[%s6475_s2 + $0xe70] sm:$0xff] %v1128_v55  ;;  %1769 = vst [vmem:[%s6475_s2 + $0xe78] sm:$0xff] %v1129_v56  ;;  %v1144_v27 = vmul.f32 %v504_v23, %v2016_v20  ;;  %v1145_v28 = vmul.f32 %v505_v24, %v2029_v26  ;;  %v506_v29 = vld [vmem:[%s6473_s0 + $0xf00] sm:$0xff]  ;;  %v507_v30 = vld [vmem:[%s6473_s0 + $0xf08] sm:$0xff] }
  0xf0   :  { %1770 = vst [vmem:[%s6475_s2 + $0xe80] sm:$0xf] %v1130_v57  ;;  %1771 = vst [vmem:[%s6475_s2 + $0xe88] sm:$0xff] %v1131_v61  ;;  %v508_v31 = vld [vmem:[%s6473_s0 + $0xf10] sm:$0xff]  ;;  %v1146_v32 = vmul.f32 %v506_v29, %v2001_v13  ;;  %v1147_v33 = vmul.f32 %v507_v30, %v2003_v14  ;;  %v509_v35 = vld [vmem:[%s6473_s0 + $0xf18] sm:$0xff] }
  0xf1   :  { %1772 = vst [vmem:[%s6475_s2 + $0xe90] sm:$0xff] %v1132_v62  ;;  %1773 = vst [vmem:[%s6475_s2 + $0xe98] sm:$0xff] %v1133_v63  ;;  %v1148_v34 = vmul.f32 %v508_v31, %v2014_v19  ;;  %v510_v36 = vld [vmem:[%s6473_s0 + $0xf20] sm:$0xf]  ;;  %v511_v37 = vld [vmem:[%s6473_s0 + $0xf28] sm:$0xff]  ;;  %v1149_v38 = vmul.f32 %v509_v35, %v2016_v20 }
  0xf2   :  { %1774 = vst [vmem:[%s6475_s2 + $0xea0] sm:$0xff] %v1134_v3  ;;  %1775 = vst [vmem:[%s6475_s2 + $0xea8] sm:$0xf] %v1135_v4  ;;  %v1150_v39 = vmul.f32 %v510_v36, %v2029_v26  ;;  %v1151_v40 = vmul.f32 %v511_v37, %v2001_v13  ;;  %v512_v41 = vld [vmem:[%s6473_s0 + $0xf30] sm:$0xff]  ;;  %v513_v42 = vld [vmem:[%s6473_s0 + $0xf38] sm:$0xff] }
  0xf3   :  { %1776 = vst [vmem:[%s6475_s2 + $0xeb0] sm:$0xff] %v1136_v5  ;;  %1777 = vst [vmem:[%s6475_s2 + $0xeb8] sm:$0xff] %v1137_v9  ;;  %v514_v43 = vld [vmem:[%s6473_s0 + $0xf40] sm:$0xff]  ;;  %v1152_v44 = vmul.f32 %v512_v41, %v2003_v14  ;;  %v1153_v45 = vmul.f32 %v513_v42, %v2014_v19  ;;  %v515_v47 = vld [vmem:[%s6473_s0 + $0xf48] sm:$0xf] }
  0xf4   :  { %1778 = vst [vmem:[%s6475_s2 + $0xec0] sm:$0xff] %v1138_v10  ;;  %1779 = vst [vmem:[%s6475_s2 + $0xec8] sm:$0xff] %v1139_v11  ;;  %v1154_v46 = vmul.f32 %v514_v43, %v2016_v20  ;;  %v516_v48 = vld [vmem:[%s6473_s0 + $0xf50] sm:$0xff]  ;;  %v517_v49 = vld [vmem:[%s6473_s0 + $0xf58] sm:$0xff]  ;;  %v1155_v50 = vmul.f32 %v515_v47, %v2029_v26 }
  0xf5   :  { %1780 = vst [vmem:[%s6475_s2 + $0xed0] sm:$0xf] %v1140_v17  ;;  %1781 = vst [vmem:[%s6475_s2 + $0xed8] sm:$0xff] %v1141_v18  ;;  %v1156_v51 = vmul.f32 %v516_v48, %v2001_v13  ;;  %v1157_v52 = vmul.f32 %v517_v49, %v2003_v14  ;;  %v518_v53 = vld [vmem:[%s6473_s0 + $0xf60] sm:$0xff]  ;;  %v519_v54 = vld [vmem:[%s6473_s0 + $0xf68] sm:$0xff] }
  0xf6   :  { %1782 = vst [vmem:[%s6475_s2 + $0xee0] sm:$0xff] %v1142_v21  ;;  %1783 = vst [vmem:[%s6475_s2 + $0xee8] sm:$0xff] %v1143_v25  ;;  %v520_v55 = vld [vmem:[%s6473_s0 + $0xf70] sm:$0xf]  ;;  %v1158_v56 = vmul.f32 %v518_v53, %v2014_v19  ;;  %v1159_v57 = vmul.f32 %v519_v54, %v2016_v20  ;;  %v521_v59 = vld [vmem:[%s6473_s0 + $0xf78] sm:$0xff] }
  0xf7   :  { %1784 = vst [vmem:[%s6475_s2 + $0xef0] sm:$0xff] %v1144_v27  ;;  %1785 = vst [vmem:[%s6475_s2 + $0xef8] sm:$0xf] %v1145_v28  ;;  %v1160_v58 = vmul.f32 %v520_v55, %v2029_v26  ;;  %v522_v60 = vld [vmem:[%s6473_s0 + $0xf80] sm:$0xff]  ;;  %v523_v61 = vld [vmem:[%s6473_s0 + $0xf88] sm:$0xff]  ;;  %v1161_v62 = vmul.f32 %v521_v59, %v2001_v13 }
  0xf8   :  { %1786 = vst [vmem:[%s6475_s2 + $0xf00] sm:$0xff] %v1146_v32  ;;  %1787 = vst [vmem:[%s6475_s2 + $0xf08] sm:$0xff] %v1147_v33  ;;  %v1162_v63 = vmul.f32 %v522_v60, %v2003_v14  ;;  %v1163_v0 = vmul.f32 %v523_v61, %v2014_v19  ;;  %v524_v1 = vld [vmem:[%s6473_s0 + $0xf90] sm:$0xff]  ;;  %v525_v2 = vld [vmem:[%s6473_s0 + $0xf98] sm:$0xf] }
  0xf9   :  { %1788 = vst [vmem:[%s6475_s2 + $0xf10] sm:$0xff] %v1148_v34  ;;  %1789 = vst [vmem:[%s6475_s2 + $0xf18] sm:$0xff] %v1149_v38  ;;  %v526_v3 = vld [vmem:[%s6473_s0 + $0xfa0] sm:$0xff]  ;;  %v1164_v4 = vmul.f32 %v524_v1, %v2016_v20  ;;  %v1165_v5 = vmul.f32 %v525_v2, %v2029_v26  ;;  %v527_v7 = vld [vmem:[%s6473_s0 + $0xfa8] sm:$0xff] }
  0xfa   :  { %1790 = vst [vmem:[%s6475_s2 + $0xf20] sm:$0xf] %v1150_v39  ;;  %1791 = vst [vmem:[%s6475_s2 + $0xf28] sm:$0xff] %v1151_v40  ;;  %v1166_v6 = vmul.f32 %v526_v3, %v2001_v13  ;;  %v528_v8 = vld [vmem:[%s6473_s0 + $0xfb0] sm:$0xff]  ;;  %v529_v9 = vld [vmem:[%s6473_s0 + $0xfb8] sm:$0xff]  ;;  %v1167_v10 = vmul.f32 %v527_v7, %v2003_v14 }
  0xfb   :  { %1792 = vst [vmem:[%s6475_s2 + $0xf30] sm:$0xff] %v1152_v44  ;;  %1793 = vst [vmem:[%s6475_s2 + $0xf38] sm:$0xff] %v1153_v45  ;;  %v1168_v11 = vmul.f32 %v528_v8, %v2014_v19  ;;  %v1169_v12 = vmul.f32 %v529_v9, %v2016_v20  ;;  %v530_v15 = vld [vmem:[%s6473_s0 + $0xfc0] sm:$0xf]  ;;  %v531_v16 = vld [vmem:[%s6473_s0 + $0xfc8] sm:$0xff] }
  0xfc   :  { %1794 = vst [vmem:[%s6475_s2 + $0xf40] sm:$0xff] %v1154_v46  ;;  %1795 = vst [vmem:[%s6475_s2 + $0xf48] sm:$0xf] %v1155_v50  ;;  %v532_v17 = vld [vmem:[%s6473_s0 + $0xfd0] sm:$0xff]  ;;  %v1170_v18 = vmul.f32 %v530_v15, %v2029_v26  ;;  %v1171_v21 = vmul.f32 %v531_v16, %v2001_v13  ;;  %v533_v23 = vld [vmem:[%s6473_s0 + $0xfd8] sm:$0xff] }
  0xfd   :  { %1796 = vst [vmem:[%s6475_s2 + $0xf50] sm:$0xff] %v1156_v51  ;;  %1797 = vst [vmem:[%s6475_s2 + $0xf58] sm:$0xff] %v1157_v52  ;;  %v1172_v22 = vmul.f32 %v532_v17, %v2003_v14  ;;  %v534_v24 = vld [vmem:[%s6473_s0 + $0xfe0] sm:$0xff]  ;;  %v535_v25 = vld [vmem:[%s6473_s0 + $0xfe8] sm:$0xf]  ;;  %v1173_v27 = vmul.f32 %v533_v23, %v2014_v19 }
  0xfe   :  { %1798 = vst [vmem:[%s6475_s2 + $0xf60] sm:$0xff] %v1158_v56  ;;  %1799 = vst [vmem:[%s6475_s2 + $0xf68] sm:$0xff] %v1159_v57  ;;  %v1174_v28 = vmul.f32 %v534_v24, %v2016_v20  ;;  %v1175_v29 = vmul.f32 %v535_v25, %v2029_v26  ;;  %v536_v30 = vld [vmem:[%s6473_s0 + $0xff0] sm:$0xff]  ;;  %v537_v31 = vld [vmem:[%s6473_s0 + $0xff8] sm:$0xff] }
  0xff   :  { %1800 = vst [vmem:[%s6475_s2 + $0xf70] sm:$0xf] %v1160_v58  ;;  %1801 = vst [vmem:[%s6475_s2 + $0xf78] sm:$0xff] %v1161_v62  ;;  %v538_v32 = vld [vmem:[%s6473_s0 + $0x1000] sm:$0xff]  ;;  %v1176_v33 = vmul.f32 %v536_v30, %v2001_v13  ;;  %v1177_v34 = vmul.f32 %v537_v31, %v2003_v14  ;;  %v539_v36 = vld [vmem:[%s6473_s0 + $0x1008] sm:$0xff] }
 0x100   :  { %1802 = vst [vmem:[%s6475_s2 + $0xf80] sm:$0xff] %v1162_v63  ;;  %1803 = vst [vmem:[%s6475_s2 + $0xf88] sm:$0xff] %v1163_v0  ;;  %v1178_v35 = vmul.f32 %v538_v32, %v2014_v19  ;;  %v540_v37 = vld [vmem:[%s6473_s0 + $0x1010] sm:$0xf]  ;;  %v541_v38 = vld [vmem:[%s6473_s0 + $0x1018] sm:$0xff]  ;;  %v1179_v39 = vmul.f32 %v539_v36, %v2016_v20 }
 0x101   :  { %1804 = vst [vmem:[%s6475_s2 + $0xf90] sm:$0xff] %v1164_v4  ;;  %1805 = vst [vmem:[%s6475_s2 + $0xf98] sm:$0xf] %v1165_v5  ;;  %v1180_v40 = vmul.f32 %v540_v37, %v2029_v26  ;;  %v1181_v41 = vmul.f32 %v541_v38, %v2001_v13  ;;  %v542_v42 = vld [vmem:[%s6473_s0 + $0x1020] sm:$0xff]  ;;  %v543_v43 = vld [vmem:[%s6473_s0 + $0x1028] sm:$0xff] }
 0x102   :  { %1806 = vst [vmem:[%s6475_s2 + $0xfa0] sm:$0xff] %v1166_v6  ;;  %1807 = vst [vmem:[%s6475_s2 + $0xfa8] sm:$0xff] %v1167_v10  ;;  %v544_v44 = vld [vmem:[%s6473_s0 + $0x1030] sm:$0xff]  ;;  %v1182_v45 = vmul.f32 %v542_v42, %v2003_v14  ;;  %v1183_v46 = vmul.f32 %v543_v43, %v2014_v19  ;;  %v545_v48 = vld [vmem:[%s6473_s0 + $0x1038] sm:$0xf] }
 0x103   :  { %1808 = vst [vmem:[%s6475_s2 + $0xfb0] sm:$0xff] %v1168_v11  ;;  %1809 = vst [vmem:[%s6475_s2 + $0xfb8] sm:$0xff] %v1169_v12  ;;  %v1184_v47 = vmul.f32 %v544_v44, %v2016_v20  ;;  %v546_v49 = vld [vmem:[%s6473_s0 + $0x1040] sm:$0xff]  ;;  %v547_v50 = vld [vmem:[%s6473_s0 + $0x1048] sm:$0xff]  ;;  %v1185_v51 = vmul.f32 %v545_v48, %v2029_v26 }
 0x104   :  { %1810 = vst [vmem:[%s6475_s2 + $0xfc0] sm:$0xf] %v1170_v18  ;;  %1811 = vst [vmem:[%s6475_s2 + $0xfc8] sm:$0xff] %v1171_v21  ;;  %v1186_v52 = vmul.f32 %v546_v49, %v2001_v13  ;;  %v1187_v53 = vmul.f32 %v547_v50, %v2003_v14  ;;  %v548_v54 = vld [vmem:[%s6473_s0 + $0x1050] sm:$0xff]  ;;  %v549_v55 = vld [vmem:[%s6473_s0 + $0x1058] sm:$0xff] }
 0x105   :  { %1812 = vst [vmem:[%s6475_s2 + $0xfd0] sm:$0xff] %v1172_v22  ;;  %1813 = vst [vmem:[%s6475_s2 + $0xfd8] sm:$0xff] %v1173_v27  ;;  %v550_v56 = vld [vmem:[%s6473_s0 + $0x1060] sm:$0xf]  ;;  %v1188_v57 = vmul.f32 %v548_v54, %v2014_v19  ;;  %v1189_v58 = vmul.f32 %v549_v55, %v2016_v20  ;;  %v551_v60 = vld [vmem:[%s6473_s0 + $0x1068] sm:$0xff] }
 0x106   :  { %1814 = vst [vmem:[%s6475_s2 + $0xfe0] sm:$0xff] %v1174_v28  ;;  %1815 = vst [vmem:[%s6475_s2 + $0xfe8] sm:$0xf] %v1175_v29  ;;  %v1190_v59 = vmul.f32 %v550_v56, %v2029_v26  ;;  %v552_v61 = vld [vmem:[%s6473_s0 + $0x1070] sm:$0xff]  ;;  %v553_v62 = vld [vmem:[%s6473_s0 + $0x1078] sm:$0xff]  ;;  %v1191_v63 = vmul.f32 %v551_v60, %v2001_v13 }
 0x107   :  { %1816 = vst [vmem:[%s6475_s2 + $0xff0] sm:$0xff] %v1176_v33  ;;  %1817 = vst [vmem:[%s6475_s2 + $0xff8] sm:$0xff] %v1177_v34  ;;  %v1192_v0 = vmul.f32 %v552_v61, %v2003_v14  ;;  %v1193_v1 = vmul.f32 %v553_v62, %v2014_v19  ;;  %v554_v2 = vld [vmem:[%s6473_s0 + $0x1080] sm:$0xff]  ;;  %v555_v3 = vld [vmem:[%s6473_s0 + $0x1088] sm:$0xf] }
 0x108   :  { %1818 = vst [vmem:[%s6475_s2 + $0x1000] sm:$0xff] %v1178_v35  ;;  %1819 = vst [vmem:[%s6475_s2 + $0x1008] sm:$0xff] %v1179_v39  ;;  %v556_v4 = vld [vmem:[%s6473_s0 + $0x1090] sm:$0xff]  ;;  %v1194_v5 = vmul.f32 %v554_v2, %v2016_v20  ;;  %v1195_v6 = vmul.f32 %v555_v3, %v2029_v26  ;;  %v557_v8 = vld [vmem:[%s6473_s0 + $0x1098] sm:$0xff] }
 0x109   :  { %1820 = vst [vmem:[%s6475_s2 + $0x1010] sm:$0xf] %v1180_v40  ;;  %1821 = vst [vmem:[%s6475_s2 + $0x1018] sm:$0xff] %v1181_v41  ;;  %v1196_v7 = vmul.f32 %v556_v4, %v2001_v13  ;;  %v558_v9 = vld [vmem:[%s6473_s0 + $0x10a0] sm:$0xff]  ;;  %v559_v10 = vld [vmem:[%s6473_s0 + $0x10a8] sm:$0xff]  ;;  %v1197_v11 = vmul.f32 %v557_v8, %v2003_v14 }
 0x10a   :  { %1822 = vst [vmem:[%s6475_s2 + $0x1020] sm:$0xff] %v1182_v45  ;;  %1823 = vst [vmem:[%s6475_s2 + $0x1028] sm:$0xff] %v1183_v46  ;;  %v1198_v12 = vmul.f32 %v558_v9, %v2014_v19  ;;  %v1199_v15 = vmul.f32 %v559_v10, %v2016_v20  ;;  %v560_v16 = vld [vmem:[%s6473_s0 + $0x10b0] sm:$0xf]  ;;  %v561_v17 = vld [vmem:[%s6473_s0 + $0x10b8] sm:$0xff] }
 0x10b   :  { %1824 = vst [vmem:[%s6475_s2 + $0x1030] sm:$0xff] %v1184_v47  ;;  %1825 = vst [vmem:[%s6475_s2 + $0x1038] sm:$0xf] %v1185_v51  ;;  %v562_v18 = vld [vmem:[%s6473_s0 + $0x10c0] sm:$0xff]  ;;  %v1200_v21 = vmul.f32 %v560_v16, %v2029_v26  ;;  %v1201_v22 = vmul.f32 %v561_v17, %v2001_v13  ;;  %v563_v24 = vld [vmem:[%s6473_s0 + $0x10c8] sm:$0xff] }
 0x10c   :  { %1826 = vst [vmem:[%s6475_s2 + $0x1040] sm:$0xff] %v1186_v52  ;;  %1827 = vst [vmem:[%s6475_s2 + $0x1048] sm:$0xff] %v1187_v53  ;;  %v1202_v23 = vmul.f32 %v562_v18, %v2003_v14  ;;  %v564_v25 = vld [vmem:[%s6473_s0 + $0x10d0] sm:$0xff]  ;;  %v565_v27 = vld [vmem:[%s6473_s0 + $0x10d8] sm:$0xf]  ;;  %v1203_v28 = vmul.f32 %v563_v24, %v2014_v19 }
 0x10d   :  { %1828 = vst [vmem:[%s6475_s2 + $0x1050] sm:$0xff] %v1188_v57  ;;  %1829 = vst [vmem:[%s6475_s2 + $0x1058] sm:$0xff] %v1189_v58  ;;  %v1204_v29 = vmul.f32 %v564_v25, %v2016_v20  ;;  %v1205_v30 = vmul.f32 %v565_v27, %v2029_v26  ;;  %v566_v31 = vld [vmem:[%s6473_s0 + $0x10e0] sm:$0xff]  ;;  %v567_v32 = vld [vmem:[%s6473_s0 + $0x10e8] sm:$0xff] }
 0x10e   :  { %1830 = vst [vmem:[%s6475_s2 + $0x1060] sm:$0xf] %v1190_v59  ;;  %1831 = vst [vmem:[%s6475_s2 + $0x1068] sm:$0xff] %v1191_v63  ;;  %v568_v33 = vld [vmem:[%s6473_s0 + $0x10f0] sm:$0xff]  ;;  %v1206_v34 = vmul.f32 %v566_v31, %v2001_v13  ;;  %v1207_v35 = vmul.f32 %v567_v32, %v2003_v14  ;;  %v569_v37 = vld [vmem:[%s6473_s0 + $0x10f8] sm:$0xff] }
 0x10f   :  { %1832 = vst [vmem:[%s6475_s2 + $0x1070] sm:$0xff] %v1192_v0  ;;  %1833 = vst [vmem:[%s6475_s2 + $0x1078] sm:$0xff] %v1193_v1  ;;  %v1208_v36 = vmul.f32 %v568_v33, %v2014_v19  ;;  %v570_v38 = vld [vmem:[%s6473_s0 + $0x1100] sm:$0xf]  ;;  %v571_v39 = vld [vmem:[%s6473_s0 + $0x1108] sm:$0xff]  ;;  %v1209_v40 = vmul.f32 %v569_v37, %v2016_v20 }
 0x110   :  { %1834 = vst [vmem:[%s6475_s2 + $0x1080] sm:$0xff] %v1194_v5  ;;  %1835 = vst [vmem:[%s6475_s2 + $0x1088] sm:$0xf] %v1195_v6  ;;  %v1210_v41 = vmul.f32 %v570_v38, %v2029_v26  ;;  %v1211_v42 = vmul.f32 %v571_v39, %v2001_v13  ;;  %v572_v43 = vld [vmem:[%s6473_s0 + $0x1110] sm:$0xff]  ;;  %v573_v44 = vld [vmem:[%s6473_s0 + $0x1118] sm:$0xff] }
 0x111   :  { %1836 = vst [vmem:[%s6475_s2 + $0x1090] sm:$0xff] %v1196_v7  ;;  %1837 = vst [vmem:[%s6475_s2 + $0x1098] sm:$0xff] %v1197_v11  ;;  %v574_v45 = vld [vmem:[%s6473_s0 + $0x1120] sm:$0xff]  ;;  %v1212_v46 = vmul.f32 %v572_v43, %v2003_v14  ;;  %v1213_v47 = vmul.f32 %v573_v44, %v2014_v19  ;;  %v575_v49 = vld [vmem:[%s6473_s0 + $0x1128] sm:$0xf] }
 0x112   :  { %1838 = vst [vmem:[%s6475_s2 + $0x10a0] sm:$0xff] %v1198_v12  ;;  %1839 = vst [vmem:[%s6475_s2 + $0x10a8] sm:$0xff] %v1199_v15  ;;  %v1214_v48 = vmul.f32 %v574_v45, %v2016_v20  ;;  %v576_v50 = vld [vmem:[%s6473_s0 + $0x1130] sm:$0xff]  ;;  %v577_v51 = vld [vmem:[%s6473_s0 + $0x1138] sm:$0xff]  ;;  %v1215_v52 = vmul.f32 %v575_v49, %v2029_v26 }
 0x113   :  { %1840 = vst [vmem:[%s6475_s2 + $0x10b0] sm:$0xf] %v1200_v21  ;;  %1841 = vst [vmem:[%s6475_s2 + $0x10b8] sm:$0xff] %v1201_v22  ;;  %v1216_v53 = vmul.f32 %v576_v50, %v2001_v13  ;;  %v1217_v54 = vmul.f32 %v577_v51, %v2003_v14  ;;  %v578_v55 = vld [vmem:[%s6473_s0 + $0x1140] sm:$0xff]  ;;  %v579_v56 = vld [vmem:[%s6473_s0 + $0x1148] sm:$0xff] }
 0x114   :  { %1842 = vst [vmem:[%s6475_s2 + $0x10c0] sm:$0xff] %v1202_v23  ;;  %1843 = vst [vmem:[%s6475_s2 + $0x10c8] sm:$0xff] %v1203_v28  ;;  %v580_v57 = vld [vmem:[%s6473_s0 + $0x1150] sm:$0xf]  ;;  %v1218_v58 = vmul.f32 %v578_v55, %v2014_v19  ;;  %v1219_v59 = vmul.f32 %v579_v56, %v2016_v20  ;;  %v581_v61 = vld [vmem:[%s6473_s0 + $0x1158] sm:$0xff] }
 0x115   :  { %1844 = vst [vmem:[%s6475_s2 + $0x10d0] sm:$0xff] %v1204_v29  ;;  %1845 = vst [vmem:[%s6475_s2 + $0x10d8] sm:$0xf] %v1205_v30  ;;  %v1220_v60 = vmul.f32 %v580_v57, %v2029_v26  ;;  %v582_v62 = vld [vmem:[%s6473_s0 + $0x1160] sm:$0xff]  ;;  %v583_v63 = vld [vmem:[%s6473_s0 + $0x1168] sm:$0xff]  ;;  %v1221_v0 = vmul.f32 %v581_v61, %v2001_v13 }
 0x116   :  { %1846 = vst [vmem:[%s6475_s2 + $0x10e0] sm:$0xff] %v1206_v34  ;;  %1847 = vst [vmem:[%s6475_s2 + $0x10e8] sm:$0xff] %v1207_v35  ;;  %v1222_v1 = vmul.f32 %v582_v62, %v2003_v14  ;;  %v1223_v2 = vmul.f32 %v583_v63, %v2014_v19  ;;  %v584_v3 = vld [vmem:[%s6473_s0 + $0x1170] sm:$0xff]  ;;  %v585_v4 = vld [vmem:[%s6473_s0 + $0x1178] sm:$0xf] }
 0x117   :  { %1848 = vst [vmem:[%s6475_s2 + $0x10f0] sm:$0xff] %v1208_v36  ;;  %1849 = vst [vmem:[%s6475_s2 + $0x10f8] sm:$0xff] %v1209_v40  ;;  %v586_v5 = vld [vmem:[%s6473_s0 + $0x1180] sm:$0xff]  ;;  %v1224_v6 = vmul.f32 %v584_v3, %v2016_v20  ;;  %v1225_v7 = vmul.f32 %v585_v4, %v2029_v26  ;;  %v587_v9 = vld [vmem:[%s6473_s0 + $0x1188] sm:$0xff] }
 0x118   :  { %1850 = vst [vmem:[%s6475_s2 + $0x1100] sm:$0xf] %v1210_v41  ;;  %1851 = vst [vmem:[%s6475_s2 + $0x1108] sm:$0xff] %v1211_v42  ;;  %v1226_v8 = vmul.f32 %v586_v5, %v2001_v13  ;;  %v588_v10 = vld [vmem:[%s6473_s0 + $0x1190] sm:$0xff]  ;;  %v589_v11 = vld [vmem:[%s6473_s0 + $0x1198] sm:$0xff]  ;;  %v1227_v12 = vmul.f32 %v587_v9, %v2003_v14 }
 0x119   :  { %1852 = vst [vmem:[%s6475_s2 + $0x1110] sm:$0xff] %v1212_v46  ;;  %1853 = vst [vmem:[%s6475_s2 + $0x1118] sm:$0xff] %v1213_v47  ;;  %v1228_v15 = vmul.f32 %v588_v10, %v2014_v19  ;;  %v1229_v16 = vmul.f32 %v589_v11, %v2016_v20  ;;  %v590_v17 = vld [vmem:[%s6473_s0 + $0x11a0] sm:$0xf]  ;;  %v591_v18 = vld [vmem:[%s6473_s0 + $0x11a8] sm:$0xff] }
 0x11a   :  { %1854 = vst [vmem:[%s6475_s2 + $0x1120] sm:$0xff] %v1214_v48  ;;  %1855 = vst [vmem:[%s6475_s2 + $0x1128] sm:$0xf] %v1215_v52  ;;  %v592_v21 = vld [vmem:[%s6473_s0 + $0x11b0] sm:$0xff]  ;;  %v1230_v22 = vmul.f32 %v590_v17, %v2029_v26  ;;  %v1231_v23 = vmul.f32 %v591_v18, %v2001_v13  ;;  %v593_v25 = vld [vmem:[%s6473_s0 + $0x11b8] sm:$0xff] }
 0x11b   :  { %1856 = vst [vmem:[%s6475_s2 + $0x1130] sm:$0xff] %v1216_v53  ;;  %1857 = vst [vmem:[%s6475_s2 + $0x1138] sm:$0xff] %v1217_v54  ;;  %v1232_v24 = vmul.f32 %v592_v21, %v2003_v14  ;;  %v594_v27 = vld [vmem:[%s6473_s0 + $0x11c0] sm:$0xff]  ;;  %v595_v28 = vld [vmem:[%s6473_s0 + $0x11c8] sm:$0xf]  ;;  %v1233_v29 = vmul.f32 %v593_v25, %v2014_v19 }
 0x11c   :  { %1858 = vst [vmem:[%s6475_s2 + $0x1140] sm:$0xff] %v1218_v58  ;;  %1859 = vst [vmem:[%s6475_s2 + $0x1148] sm:$0xff] %v1219_v59  ;;  %v1234_v30 = vmul.f32 %v594_v27, %v2016_v20  ;;  %v1235_v31 = vmul.f32 %v595_v28, %v2029_v26  ;;  %v596_v32 = vld [vmem:[%s6473_s0 + $0x11d0] sm:$0xff]  ;;  %v597_v33 = vld [vmem:[%s6473_s0 + $0x11d8] sm:$0xff] }
 0x11d   :  { %1860 = vst [vmem:[%s6475_s2 + $0x1150] sm:$0xf] %v1220_v60  ;;  %1861 = vst [vmem:[%s6475_s2 + $0x1158] sm:$0xff] %v1221_v0  ;;  %v598_v34 = vld [vmem:[%s6473_s0 + $0x11e0] sm:$0xff]  ;;  %v1236_v35 = vmul.f32 %v596_v32, %v2001_v13  ;;  %v1237_v36 = vmul.f32 %v597_v33, %v2003_v14  ;;  %v599_v38 = vld [vmem:[%s6473_s0 + $0x11e8] sm:$0xff] }
 0x11e   :  { %1862 = vst [vmem:[%s6475_s2 + $0x1160] sm:$0xff] %v1222_v1  ;;  %1863 = vst [vmem:[%s6475_s2 + $0x1168] sm:$0xff] %v1223_v2  ;;  %v1238_v37 = vmul.f32 %v598_v34, %v2014_v19  ;;  %v600_v39 = vld [vmem:[%s6473_s0 + $0x11f0] sm:$0xf]  ;;  %v601_v40 = vld [vmem:[%s6473_s0 + $0x11f8] sm:$0xff]  ;;  %v1239_v41 = vmul.f32 %v599_v38, %v2016_v20 }
 0x11f   :  { %1864 = vst [vmem:[%s6475_s2 + $0x1170] sm:$0xff] %v1224_v6  ;;  %1865 = vst [vmem:[%s6475_s2 + $0x1178] sm:$0xf] %v1225_v7  ;;  %v1240_v42 = vmul.f32 %v600_v39, %v2029_v26  ;;  %v1241_v43 = vmul.f32 %v601_v40, %v2001_v13  ;;  %v602_v44 = vld [vmem:[%s6473_s0 + $0x1200] sm:$0xff]  ;;  %v603_v45 = vld [vmem:[%s6473_s0 + $0x1208] sm:$0xff] }
 0x120   :  { %1866 = vst [vmem:[%s6475_s2 + $0x1180] sm:$0xff] %v1226_v8  ;;  %1867 = vst [vmem:[%s6475_s2 + $0x1188] sm:$0xff] %v1227_v12  ;;  %v604_v46 = vld [vmem:[%s6473_s0 + $0x1210] sm:$0xff]  ;;  %v1242_v47 = vmul.f32 %v602_v44, %v2003_v14  ;;  %v1243_v48 = vmul.f32 %v603_v45, %v2014_v19  ;;  %v605_v50 = vld [vmem:[%s6473_s0 + $0x1218] sm:$0xf] }
 0x121   :  { %1868 = vst [vmem:[%s6475_s2 + $0x1190] sm:$0xff] %v1228_v15  ;;  %1869 = vst [vmem:[%s6475_s2 + $0x1198] sm:$0xff] %v1229_v16  ;;  %v1244_v49 = vmul.f32 %v604_v46, %v2016_v20  ;;  %v606_v51 = vld [vmem:[%s6473_s0 + $0x1220] sm:$0xff]  ;;  %v607_v52 = vld [vmem:[%s6473_s0 + $0x1228] sm:$0xff]  ;;  %v1245_v53 = vmul.f32 %v605_v50, %v2029_v26 }
 0x122   :  { %1870 = vst [vmem:[%s6475_s2 + $0x11a0] sm:$0xf] %v1230_v22  ;;  %1871 = vst [vmem:[%s6475_s2 + $0x11a8] sm:$0xff] %v1231_v23  ;;  %v1246_v54 = vmul.f32 %v606_v51, %v2001_v13  ;;  %v1247_v55 = vmul.f32 %v607_v52, %v2003_v14  ;;  %v608_v56 = vld [vmem:[%s6473_s0 + $0x1230] sm:$0xff]  ;;  %v609_v57 = vld [vmem:[%s6473_s0 + $0x1238] sm:$0xff] }
 0x123   :  { %1872 = vst [vmem:[%s6475_s2 + $0x11b0] sm:$0xff] %v1232_v24  ;;  %1873 = vst [vmem:[%s6475_s2 + $0x11b8] sm:$0xff] %v1233_v29  ;;  %v610_v58 = vld [vmem:[%s6473_s0 + $0x1240] sm:$0xf]  ;;  %v1248_v59 = vmul.f32 %v608_v56, %v2014_v19  ;;  %v1249_v60 = vmul.f32 %v609_v57, %v2016_v20  ;;  %v611_v62 = vld [vmem:[%s6473_s0 + $0x1248] sm:$0xff] }
 0x124   :  { %1874 = vst [vmem:[%s6475_s2 + $0x11c0] sm:$0xff] %v1234_v30  ;;  %1875 = vst [vmem:[%s6475_s2 + $0x11c8] sm:$0xf] %v1235_v31  ;;  %v1250_v61 = vmul.f32 %v610_v58, %v2029_v26  ;;  %v612_v63 = vld [vmem:[%s6473_s0 + $0x1250] sm:$0xff]  ;;  %v613_v0 = vld [vmem:[%s6473_s0 + $0x1258] sm:$0xff]  ;;  %v1251_v1 = vmul.f32 %v611_v62, %v2001_v13 }
 0x125   :  { %1876 = vst [vmem:[%s6475_s2 + $0x11d0] sm:$0xff] %v1236_v35  ;;  %1877 = vst [vmem:[%s6475_s2 + $0x11d8] sm:$0xff] %v1237_v36  ;;  %v1252_v2 = vmul.f32 %v612_v63, %v2003_v14  ;;  %v1253_v3 = vmul.f32 %v613_v0, %v2014_v19  ;;  %v614_v4 = vld [vmem:[%s6473_s0 + $0x1260] sm:$0xff]  ;;  %v615_v5 = vld [vmem:[%s6473_s0 + $0x1268] sm:$0xf] }
 0x126   :  { %1878 = vst [vmem:[%s6475_s2 + $0x11e0] sm:$0xff] %v1238_v37  ;;  %1879 = vst [vmem:[%s6475_s2 + $0x11e8] sm:$0xff] %v1239_v41  ;;  %v616_v6 = vld [vmem:[%s6473_s0 + $0x1270] sm:$0xff]  ;;  %v1254_v7 = vmul.f32 %v614_v4, %v2016_v20  ;;  %v1255_v8 = vmul.f32 %v615_v5, %v2029_v26  ;;  %v617_v10 = vld [vmem:[%s6473_s0 + $0x1278] sm:$0xff] }
 0x127   :  { %1880 = vst [vmem:[%s6475_s2 + $0x11f0] sm:$0xf] %v1240_v42  ;;  %1881 = vst [vmem:[%s6475_s2 + $0x11f8] sm:$0xff] %v1241_v43  ;;  %v1256_v9 = vmul.f32 %v616_v6, %v2001_v13  ;;  %v618_v11 = vld [vmem:[%s6473_s0 + $0x1280] sm:$0xff]  ;;  %v619_v12 = vld [vmem:[%s6473_s0 + $0x1288] sm:$0xff]  ;;  %v1257_v15 = vmul.f32 %v617_v10, %v2003_v14 }
 0x128   :  { %1882 = vst [vmem:[%s6475_s2 + $0x1200] sm:$0xff] %v1242_v47  ;;  %1883 = vst [vmem:[%s6475_s2 + $0x1208] sm:$0xff] %v1243_v48  ;;  %v1258_v16 = vmul.f32 %v618_v11, %v2014_v19  ;;  %v1259_v17 = vmul.f32 %v619_v12, %v2016_v20  ;;  %v620_v18 = vld [vmem:[%s6473_s0 + $0x1290] sm:$0xf]  ;;  %v621_v21 = vld [vmem:[%s6473_s0 + $0x1298] sm:$0xff] }
 0x129   :  { %1884 = vst [vmem:[%s6475_s2 + $0x1210] sm:$0xff] %v1244_v49  ;;  %1885 = vst [vmem:[%s6475_s2 + $0x1218] sm:$0xf] %v1245_v53  ;;  %v622_v22 = vld [vmem:[%s6473_s0 + $0x12a0] sm:$0xff]  ;;  %v1260_v23 = vmul.f32 %v620_v18, %v2029_v26  ;;  %v1261_v24 = vmul.f32 %v621_v21, %v2001_v13  ;;  %v623_v27 = vld [vmem:[%s6473_s0 + $0x12a8] sm:$0xff] }
 0x12a   :  { %1886 = vst [vmem:[%s6475_s2 + $0x1220] sm:$0xff] %v1246_v54  ;;  %1887 = vst [vmem:[%s6475_s2 + $0x1228] sm:$0xff] %v1247_v55  ;;  %v1262_v25 = vmul.f32 %v622_v22, %v2003_v14  ;;  %v624_v28 = vld [vmem:[%s6473_s0 + $0x12b0] sm:$0xff]  ;;  %v625_v29 = vld [vmem:[%s6473_s0 + $0x12b8] sm:$0xf]  ;;  %v1263_v30 = vmul.f32 %v623_v27, %v2014_v19 }
 0x12b   :  { %1888 = vst [vmem:[%s6475_s2 + $0x1230] sm:$0xff] %v1248_v59  ;;  %1889 = vst [vmem:[%s6475_s2 + $0x1238] sm:$0xff] %v1249_v60  ;;  %v1264_v31 = vmul.f32 %v624_v28, %v2016_v20  ;;  %v1265_v32 = vmul.f32 %v625_v29, %v2029_v26  ;;  %v626_v33 = vld [vmem:[%s6473_s0 + $0x12c0] sm:$0xff]  ;;  %v627_v34 = vld [vmem:[%s6473_s0 + $0x12c8] sm:$0xff] }
 0x12c   :  { %1890 = vst [vmem:[%s6475_s2 + $0x1240] sm:$0xf] %v1250_v61  ;;  %1891 = vst [vmem:[%s6475_s2 + $0x1248] sm:$0xff] %v1251_v1  ;;  %v628_v35 = vld [vmem:[%s6473_s0 + $0x12d0] sm:$0xff]  ;;  %v1266_v36 = vmul.f32 %v626_v33, %v2001_v13  ;;  %v1267_v37 = vmul.f32 %v627_v34, %v2003_v14  ;;  %v629_v39 = vld [vmem:[%s6473_s0 + $0x12d8] sm:$0xff] }
 0x12d   :  { %1892 = vst [vmem:[%s6475_s2 + $0x1250] sm:$0xff] %v1252_v2  ;;  %1893 = vst [vmem:[%s6475_s2 + $0x1258] sm:$0xff] %v1253_v3  ;;  %v1268_v38 = vmul.f32 %v628_v35, %v2014_v19  ;;  %v630_v40 = vld [vmem:[%s6473_s0 + $0x12e0] sm:$0xf]  ;;  %v631_v41 = vld [vmem:[%s6473_s0 + $0x12e8] sm:$0xff]  ;;  %v1269_v42 = vmul.f32 %v629_v39, %v2016_v20 }
 0x12e   :  { %1894 = vst [vmem:[%s6475_s2 + $0x1260] sm:$0xff] %v1254_v7  ;;  %1895 = vst [vmem:[%s6475_s2 + $0x1268] sm:$0xf] %v1255_v8  ;;  %v1270_v43 = vmul.f32 %v630_v40, %v2029_v26  ;;  %v1271_v44 = vmul.f32 %v631_v41, %v2001_v13  ;;  %v632_v45 = vld [vmem:[%s6473_s0 + $0x12f0] sm:$0xff]  ;;  %v633_v46 = vld [vmem:[%s6473_s0 + $0x12f8] sm:$0xff] }
 0x12f   :  { %1896 = vst [vmem:[%s6475_s2 + $0x1270] sm:$0xff] %v1256_v9  ;;  %1897 = vst [vmem:[%s6475_s2 + $0x1278] sm:$0xff] %v1257_v15  ;;  %v634_v47 = vld [vmem:[%s6473_s0 + $0x1300] sm:$0xff]  ;;  %v1272_v48 = vmul.f32 %v632_v45, %v2003_v14  ;;  %v1273_v49 = vmul.f32 %v633_v46, %v2014_v19  ;;  %v635_v51 = vld [vmem:[%s6473_s0 + $0x1308] sm:$0xf] }
 0x130   :  { %1898 = vst [vmem:[%s6475_s2 + $0x1280] sm:$0xff] %v1258_v16  ;;  %1899 = vst [vmem:[%s6475_s2 + $0x1288] sm:$0xff] %v1259_v17  ;;  %v1274_v50 = vmul.f32 %v634_v47, %v2016_v20  ;;  %v636_v52 = vld [vmem:[%s6473_s0 + $0x1310] sm:$0xff]  ;;  %v637_v53 = vld [vmem:[%s6473_s0 + $0x1318] sm:$0xff]  ;;  %v1275_v54 = vmul.f32 %v635_v51, %v2029_v26 }
 0x131   :  { %1900 = vst [vmem:[%s6475_s2 + $0x1290] sm:$0xf] %v1260_v23  ;;  %1901 = vst [vmem:[%s6475_s2 + $0x1298] sm:$0xff] %v1261_v24  ;;  %v1276_v55 = vmul.f32 %v636_v52, %v2001_v13  ;;  %v1277_v56 = vmul.f32 %v637_v53, %v2003_v14  ;;  %v638_v57 = vld [vmem:[%s6473_s0 + $0x1320] sm:$0xff]  ;;  %v639_v58 = vld [vmem:[%s6473_s0 + $0x1328] sm:$0xff] }
 0x132   :  { %1902 = vst [vmem:[%s6475_s2 + $0x12a0] sm:$0xff] %v1262_v25  ;;  %1903 = vst [vmem:[%s6475_s2 + $0x12a8] sm:$0xff] %v1263_v30  ;;  %v640_v59 = vld [vmem:[%s6473_s0 + $0x1330] sm:$0xf]  ;;  %v1278_v60 = vmul.f32 %v638_v57, %v2014_v19  ;;  %v1279_v61 = vmul.f32 %v639_v58, %v2016_v20  ;;  %v641_v63 = vld [vmem:[%s6473_s0 + $0x1338] sm:$0xff] }
 0x133   :  { %1904 = vst [vmem:[%s6475_s2 + $0x12b0] sm:$0xff] %v1264_v31  ;;  %1905 = vst [vmem:[%s6475_s2 + $0x12b8] sm:$0xf] %v1265_v32  ;;  %v1280_v62 = vmul.f32 %v640_v59, %v2029_v26  ;;  %v642_v0 = vld [vmem:[%s6473_s0 + $0x1340] sm:$0xff]  ;;  %v643_v1 = vld [vmem:[%s6473_s0 + $0x1348] sm:$0xff]  ;;  %v1281_v2 = vmul.f32 %v641_v63, %v2001_v13 }
 0x134   :  { %1906 = vst [vmem:[%s6475_s2 + $0x12c0] sm:$0xff] %v1266_v36  ;;  %1907 = vst [vmem:[%s6475_s2 + $0x12c8] sm:$0xff] %v1267_v37  ;;  %v1282_v3 = vmul.f32 %v642_v0, %v2003_v14  ;;  %v1283_v4 = vmul.f32 %v643_v1, %v2014_v19  ;;  %v644_v5 = vld [vmem:[%s6473_s0 + $0x1350] sm:$0xff]  ;;  %v645_v6 = vld [vmem:[%s6473_s0 + $0x1358] sm:$0xf] }
 0x135   :  { %1908 = vst [vmem:[%s6475_s2 + $0x12d0] sm:$0xff] %v1268_v38  ;;  %1909 = vst [vmem:[%s6475_s2 + $0x12d8] sm:$0xff] %v1269_v42  ;;  %v646_v7 = vld [vmem:[%s6473_s0 + $0x1360] sm:$0xff]  ;;  %v1284_v8 = vmul.f32 %v644_v5, %v2016_v20  ;;  %v1285_v9 = vmul.f32 %v645_v6, %v2029_v26  ;;  %v647_v11 = vld [vmem:[%s6473_s0 + $0x1368] sm:$0xff] }
 0x136   :  { %1910 = vst [vmem:[%s6475_s2 + $0x12e0] sm:$0xf] %v1270_v43  ;;  %1911 = vst [vmem:[%s6475_s2 + $0x12e8] sm:$0xff] %v1271_v44  ;;  %v1286_v10 = vmul.f32 %v646_v7, %v2001_v13  ;;  %v648_v12 = vld [vmem:[%s6473_s0 + $0x1370] sm:$0xff]  ;;  %v649_v15 = vld [vmem:[%s6473_s0 + $0x1378] sm:$0xff]  ;;  %v1287_v16 = vmul.f32 %v647_v11, %v2003_v14 }
 0x137   :  { %1912 = vst [vmem:[%s6475_s2 + $0x12f0] sm:$0xff] %v1272_v48  ;;  %1913 = vst [vmem:[%s6475_s2 + $0x12f8] sm:$0xff] %v1273_v49  ;;  %v1288_v17 = vmul.f32 %v648_v12, %v2014_v19  ;;  %v1289_v18 = vmul.f32 %v649_v15, %v2016_v20  ;;  %v650_v21 = vld [vmem:[%s6473_s0 + $0x1380] sm:$0xf]  ;;  %v651_v22 = vld [vmem:[%s6473_s0 + $0x1388] sm:$0xff] }
 0x138   :  { %1914 = vst [vmem:[%s6475_s2 + $0x1300] sm:$0xff] %v1274_v50  ;;  %1915 = vst [vmem:[%s6475_s2 + $0x1308] sm:$0xf] %v1275_v54  ;;  %v652_v23 = vld [vmem:[%s6473_s0 + $0x1390] sm:$0xff]  ;;  %v1290_v24 = vmul.f32 %v650_v21, %v2029_v26  ;;  %v1291_v25 = vmul.f32 %v651_v22, %v2001_v13  ;;  %v653_v28 = vld [vmem:[%s6473_s0 + $0x1398] sm:$0xff] }
 0x139   :  { %1916 = vst [vmem:[%s6475_s2 + $0x1310] sm:$0xff] %v1276_v55  ;;  %1917 = vst [vmem:[%s6475_s2 + $0x1318] sm:$0xff] %v1277_v56  ;;  %v1292_v27 = vmul.f32 %v652_v23, %v2003_v14  ;;  %v654_v29 = vld [vmem:[%s6473_s0 + $0x13a0] sm:$0xff]  ;;  %v655_v30 = vld [vmem:[%s6473_s0 + $0x13a8] sm:$0xf]  ;;  %v1293_v31 = vmul.f32 %v653_v28, %v2014_v19 }
 0x13a   :  { %1918 = vst [vmem:[%s6475_s2 + $0x1320] sm:$0xff] %v1278_v60  ;;  %1919 = vst [vmem:[%s6475_s2 + $0x1328] sm:$0xff] %v1279_v61  ;;  %v1294_v32 = vmul.f32 %v654_v29, %v2016_v20  ;;  %v1295_v33 = vmul.f32 %v655_v30, %v2029_v26  ;;  %v656_v34 = vld [vmem:[%s6473_s0 + $0x13b0] sm:$0xff]  ;;  %v657_v35 = vld [vmem:[%s6473_s0 + $0x13b8] sm:$0xff] }
 0x13b   :  { %1920 = vst [vmem:[%s6475_s2 + $0x1330] sm:$0xf] %v1280_v62  ;;  %1921 = vst [vmem:[%s6475_s2 + $0x1338] sm:$0xff] %v1281_v2  ;;  %v658_v36 = vld [vmem:[%s6473_s0 + $0x13c0] sm:$0xff]  ;;  %v1296_v37 = vmul.f32 %v656_v34, %v2001_v13  ;;  %v1297_v38 = vmul.f32 %v657_v35, %v2003_v14  ;;  %v659_v40 = vld [vmem:[%s6473_s0 + $0x13c8] sm:$0xff] }
 0x13c   :  { %1922 = vst [vmem:[%s6475_s2 + $0x1340] sm:$0xff] %v1282_v3  ;;  %1923 = vst [vmem:[%s6475_s2 + $0x1348] sm:$0xff] %v1283_v4  ;;  %v1298_v39 = vmul.f32 %v658_v36, %v2014_v19  ;;  %v660_v41 = vld [vmem:[%s6473_s0 + $0x13d0] sm:$0xf]  ;;  %v661_v42 = vld [vmem:[%s6473_s0 + $0x13d8] sm:$0xff]  ;;  %v1299_v43 = vmul.f32 %v659_v40, %v2016_v20 }
 0x13d   :  { %1924 = vst [vmem:[%s6475_s2 + $0x1350] sm:$0xff] %v1284_v8  ;;  %1925 = vst [vmem:[%s6475_s2 + $0x1358] sm:$0xf] %v1285_v9  ;;  %v1300_v44 = vmul.f32 %v660_v41, %v2029_v26  ;;  %v1301_v45 = vmul.f32 %v661_v42, %v2001_v13  ;;  %v662_v46 = vld [vmem:[%s6473_s0 + $0x13e0] sm:$0xff]  ;;  %v663_v47 = vld [vmem:[%s6473_s0 + $0x13e8] sm:$0xff] }
 0x13e   :  { %1926 = vst [vmem:[%s6475_s2 + $0x1360] sm:$0xff] %v1286_v10  ;;  %1927 = vst [vmem:[%s6475_s2 + $0x1368] sm:$0xff] %v1287_v16  ;;  %v664_v48 = vld [vmem:[%s6473_s0 + $0x13f0] sm:$0xff]  ;;  %v1302_v13 = vmul.f32 %v662_v46, %v2003_v14  ;;  %v1303_v49 = vmul.f32 %v663_v47, %v2014_v19  ;;  %v665_v51 = vld [vmem:[%s6473_s0 + $0x13f8] sm:$0xf] }
 0x13f   :  { %1928 = vst [vmem:[%s6475_s2 + $0x1370] sm:$0xff] %v1288_v17  ;;  %1929 = vst [vmem:[%s6475_s2 + $0x1378] sm:$0xff] %v1289_v18  ;;  %v1304_v50 = vmul.f32 %v664_v48, %v2016_v20  ;;  %v1305_v14 = vmul.f32 %v665_v51, %v2029_v26 }
 0x140   :  { %1930 = vst [vmem:[%s6475_s2 + $0x1380] sm:$0xf] %v1290_v24  ;;  %1931 = vst [vmem:[%s6475_s2 + $0x1388] sm:$0xff] %v1291_v25 }
 0x141   :  { %1932 = vst [vmem:[%s6475_s2 + $0x1390] sm:$0xff] %v1292_v27  ;;  %1933 = vst [vmem:[%s6475_s2 + $0x1398] sm:$0xff] %v1293_v31 }
 0x142   :  { %1934 = vst [vmem:[%s6475_s2 + $0x13a0] sm:$0xff] %v1294_v32  ;;  %1935 = vst [vmem:[%s6475_s2 + $0x13a8] sm:$0xf] %v1295_v33 }
 0x143   :  { %1936 = vst [vmem:[%s6475_s2 + $0x13b0] sm:$0xff] %v1296_v37  ;;  %1937 = vst [vmem:[%s6475_s2 + $0x13b8] sm:$0xff] %v1297_v38 }
 0x144   :  { %1938 = vst [vmem:[%s6475_s2 + $0x13c0] sm:$0xff] %v1298_v39  ;;  %1939 = vst [vmem:[%s6475_s2 + $0x13c8] sm:$0xff] %v1299_v43 }
 0x145   :  { %1940 = vst [vmem:[%s6475_s2 + $0x13d0] sm:$0xf] %v1300_v44  ;;  %1941 = vst [vmem:[%s6475_s2 + $0x13d8] sm:$0xff] %v1301_v45 }
 0x146   :  { %1942 = vst [vmem:[%s6475_s2 + $0x13e0] sm:$0xff] %v1302_v13  ;;  %1943 = vst [vmem:[%s6475_s2 + $0x13e8] sm:$0xff] %v1303_v49 }
 0x147   :  { %1944 = vst [vmem:[%s6475_s2 + $0x13f0] sm:$0xff] %v1304_v50  ;;  %1945 = vst [vmem:[%s6475_s2 + $0x13f8] sm:$0xf] %v1305_v14 }

</bundles_post_ra>
